<compile_context>
chip_gen: v7x
topology: tpu7x:2x2x1
jax: 0.10.0
libtpu: 0.0.40
codegen_flags: <defaults>
</compile_context>

<pallas_src>
import functools
import numpy as np
import jax
import jax.numpy as jnp
from jax import lax
from jax.experimental import pallas as pl
from jax.experimental.pallas import tpu as pltpu

EPS = 1e-5
NEG_BIG = -1e30


def _sum_all(a):
    """Sum a 2-D tile to a (1, 1) array (lane reduce, then sublane reduce)."""
    return jnp.sum(jnp.sum(a, axis=1, keepdims=True), axis=0, keepdims=True)


def _linear_attention_kernel(lens_ref, x_ref, wqkv_ref, wout_ref,
                             g1_ref, b1_ref, g2_ref, b2_ref, hmask_ref,
                             o_ref, *, num_head, ch_head, eps, fast):
    step = pl.program_id(0)
    G, Nmax, C = x_ref.shape                      # G instances packed per grid step
    HD = num_head * ch_head

    op_dtype = jnp.bfloat16 if fast else jnp.float32

    def mm(a, b):                                  # MXU matmul, f32 accumulation
        return jnp.dot(a.astype(op_dtype), b.astype(op_dtype),
                       preferred_element_type=jnp.float32)

    def mm_rows(a, b):
        # Contract over rows of both operands: (N,K),(N,V)->(K,V).  This dimension-number
        # form is the MXU's native transposed-LHS feed (no explicit vxpose of A).
        return lax.dot_general(a.astype(op_dtype), b.astype(op_dtype),
                               (((0,), (0,)), ((), ())),
                               preferred_element_type=jnp.float32)

    def recip(a):
        return pl.reciprocal(a, approx=True) if fast else 1.0 / a

    rows = lax.broadcasted_iota(jnp.int32, (Nmax, 1), 0)   # broadcast in the wheres

    # ---------------- GroupNorm(1, C) #1 per instance (fused affine) ---------
    # Padded rows are zero, so plain sums are exact; only the count uses n.
    gamma1 = g1_ref[...]
    beta1 = b1_ref[...]
    nf_list, valid_list, y_slabs = [], [], []
    for j in range(G):
        n = lens_ref[step * G + j]
        nf = jnp.maximum(n, 1).astype(jnp.float32)          # guard n == 0 (dummy pad)
        valid = rows < n                                    # (Nmax, 1)
        xj = x_ref[j]                                       # (Nmax, C)
        cnt = nf * float(C)
        mean = _sum_all(xj) / cnt
        inv = lax.rsqrt(_sum_all(xj * xj) / cnt - mean * mean + eps)
        scale = inv * gamma1                                # (1, C)
        bias = beta1 - mean * scale
        y_slabs.append(xj * scale + bias)                   # pads become bias -> masked later
        nf_list.append(nf)
        valid_list.append(valid)

    y = jnp.concatenate(y_slabs, axis=0) if G > 1 else y_slabs[0]   # (G*Nmax, C)

    # ---------------- to_qkv: 1x1 Minkowski conv == one merged matmul --------
    qkv = mm(y, wqkv_ref[...])                              # (G*Nmax, 3*HD)
    q = qkv[:, :HD]
    k = qkv[:, HD:2 * HD]
    v = qkv[:, 2 * HD:]

    hmask = hmask_ref[...]                                  # (HD, HD) head block-diag

    # ---------------- softmax over ch_head of q * scale (merged) -------------
    # Softmax is shift-invariant per row: a single row-wide max is exact; per-head
    # denominators broadcast back to every channel of the head via one masked matmul.
    ql = q * float(ch_head) ** -0.5
    qmax = jnp.max(ql, axis=1, keepdims=True)
    eq = jnp.exp(ql - qmax)
    qden = mm(eq, hmask)
    Qs = eq * recip(qden)

    # ---------------- per-instance: k-softmax over points, ctx, attn ---------
    attn_slabs = []
    for j in range(G):
        sl = slice(j * Nmax, (j + 1) * Nmax)
        nf = nf_list[j]
        valid = valid_list[j]
        kl = jnp.where(valid, k[sl] * (1.0 / jnp.sqrt(nf)), NEG_BIG)
        kmax = jnp.max(kl, axis=0, keepdims=True)           # (1, HD)
        ek = jnp.exp(kl - kmax)                             # padded rows -> exactly 0
        A = ek * recip(jnp.sum(ek, axis=0, keepdims=True))  # (Nmax, HD)
        ctx = mm_rows(A, v[sl]) * hmask                     # (HD, HD), cross-head zeroed
        aj = mm(Qs[sl], ctx)                                # (Nmax, HD)
        attn_slabs.append(jnp.where(valid, aj, 0.0))        # zero pads -> GN2 stats exact

    attn = jnp.concatenate(attn_slabs, axis=0) if G > 1 else attn_slabs[0]

    # ---------------- to_out (merged) + GroupNorm(1, C) #2 + residual --------
    z = mm(attn, wout_ref[...])                             # (G*Nmax, C)
    gamma2 = g2_ref[...]
    beta2 = b2_ref[...]
    for j in range(G):
        zj = z[j * Nmax:(j + 1) * Nmax]
        cnt = nf_list[j] * float(C)
        mean = _sum_all(zj) / cnt
        inv = lax.rsqrt(_sum_all(zj * zj) / cnt - mean * mean + eps)
        scale = inv * gamma2
        bias = beta2 - mean * scale
        o_ref[j] = (zj * scale + bias + x_ref[j]).astype(o_ref.dtype)


def linear_attention_pallas(x_padded, lens, w_qkv, w_out, g1, b1, g2, b2,
                            head_mask, num_head, ch_head, *, pack, fast):
    B_pad, Nmax, C = x_padded.shape
    HD = num_head * ch_head
    assert B_pad % pack == 0
    steps = B_pad // pack
    kernel = functools.partial(_linear_attention_kernel, num_head=num_head,
                               ch_head=ch_head, eps=EPS, fast=fast)

    # VMEM budget as a function of block size, clamped below the chip's physical VMEM
    # (64 MiB/TC on v7x, 128 MiB on v5e/v6e) with headroom.
    row_bytes = Nmax * max(C, 3 * HD) * 4
    est = (2 * 2 * pack * Nmax * C * 4                        # in+out double buffers
           + 14 * pack * row_bytes                            # live f32 temporaries
           + (C * 3 * HD + HD * C + HD * HD + 4 * C) * 4      # resident weights/params
           + (4 << 20))                                       # slack
    try:
        cap = int(getattr(pltpu.get_tpu_info(), "vmem_capacity_bytes"))
    except Exception:
        cap = 64 << 20
    vmem_limit = int(min(max(est, 32 << 20), max(cap - (8 << 20), 32 << 20)))

    return pl.pallas_call(
        kernel,
        out_shape=jax.ShapeDtypeStruct((B_pad, Nmax, C), x_padded.dtype),
        grid_spec=pltpu.PrefetchScalarGridSpec(
            num_scalar_prefetch=1,                            # lens -> SMEM
            grid=(steps,),
            in_specs=[
                pl.BlockSpec((pack, Nmax, C), lambda s, L: (s, 0, 0)),  # packed features
                pl.BlockSpec((C, 3 * HD), lambda s, L: (0, 0)),         # W_qkv (resident)
                pl.BlockSpec((HD, C), lambda s, L: (0, 0)),             # W_out (resident)
                pl.BlockSpec((1, C), lambda s, L: (0, 0)),              # gamma1
                pl.BlockSpec((1, C), lambda s, L: (0, 0)),              # beta1
                pl.BlockSpec((1, C), lambda s, L: (0, 0)),              # gamma2
                pl.BlockSpec((1, C), lambda s, L: (0, 0)),              # beta2
                pl.BlockSpec((HD, HD), lambda s, L: (0, 0)),            # head block-diag
            ],
            out_specs=pl.BlockSpec((pack, Nmax, C), lambda s, L: (s, 0, 0)),
        ),
        compiler_params=pltpu.CompilerParams(
            dimension_semantics=("parallel",),                # steps independent
            vmem_limit_bytes=vmem_limit,
        ),
    )(lens, x_padded, w_qkv, w_out, g1.reshape(1, C), b1.reshape(1, C),
      g2.reshape(1, C), b2.reshape(1, C), head_mask)


def linear_attention_forward(feats, list_perms, w_qkv, w_out,
                             g1, b1, g2, b2, num_head, ch_head, *, fast=True):
    """LinearAttention.forward on the sparse tensor's feature matrix.

    feats: (N_total, C) == x.F; list_perms: decomposition_permutations.
    Returns features in the ORIGINAL row order (what set_feature would attach).
    """
    # TODO(synk): ME.SparseTensor / coordinate-manager bookkeeping (set_feature,
    # MinkowskiConvolution coordinate maps) has no Pallas equivalent; kernel_size=1
    # convs are per-point, so we operate directly on the (N_total, C) feature matrix.
    N_total, C = feats.shape
    HD = num_head * ch_head
    assert HD % 128 == 0, "kernel assumes num_head*ch_head is a multiple of 128 (lane-dense)"
    B = len(list_perms)
    lens_np = np.array([int(p.shape[0]) for p in list_perms], dtype=np.int32)
    Nmax = max(8, int(-(-int(lens_np.max()) // 8) * 8))       # rows padded to multiple of 8

    # Pack G instances per grid step (amortizes per-step overhead, fills MXU M dim);
    # keep the parallel grid balanced across both v7x TensorCores when steps > 1.
    pack = max(1, min(B, max(1, 512 // Nmax)))
    steps = -(-B // pack)
    if steps > 1 and steps % 2:
        steps += 1
    B_pad = steps * pack

    # One batched gather in, one scatter out (sentinel row N_total absorbs padding).
    idx_np = np.full((B_pad, Nmax), N_total, dtype=np.int64)
    for b, p in enumerate(list_perms):
        idx_np[b, :lens_np[b]] = np.asarray(p)
    idx = jnp.asarray(idx_np, dtype=jnp.int32)
    lens_pad = np.zeros((B_pad,), np.int32)
    lens_pad[:B] = lens_np

    feats_ext = jnp.concatenate([feats, jnp.zeros((1, C), feats.dtype)], axis=0)
    padded = feats_ext[idx]                                   # (B_pad, Nmax, C), pads zero

    head_mask = jnp.asarray(np.kron(np.eye(num_head, dtype=np.float32),
                                    np.ones((ch_head, ch_head), np.float32)))

    out_padded = linear_attention_pallas(padded, jnp.asarray(lens_pad),
                                         w_qkv, w_out, g1, b1, g2, b2,
                                         head_mask, num_head, ch_head,
                                         pack=pack, fast=fast)

    # Inverse permutation as a single scatter; padded rows land on the sentinel row.
    out = jnp.zeros((N_total + 1, C), out_padded.dtype)
    out = out.at[idx.reshape(-1)].set(out_padded.reshape(B_pad * Nmax, C))
    return out[:N_total]


def _linear_attention_ref(feats, list_perms, w_qkv, w_out, g1, b1, g2, b2,
                          num_head, ch_head, eps=EPS):
    """numpy (float64) reference mirroring the PyTorch forward."""
    N, C = feats.shape
    HD = num_head * ch_head
    x = feats.astype(np.float64)
    w_qkv = w_qkv.astype(np.float64); w_out = w_out.astype(np.float64)
    g1 = g1.astype(np.float64); b1 = b1.astype(np.float64)
    g2 = g2.astype(np.float64); b2 = b2.astype(np.float64)
    out = np.zeros((N, C), np.float64)
    for p in list_perms:
        xb = x[p]; n = xb.shape[0]
        y = (xb - xb.mean()) / np.sqrt(xb.var() + eps) * g1 + b1     # GroupNorm(1, C)
        qkv = y @ w_qkv
        q = qkv[:, :HD].reshape(n, num_head, ch_head)
        k = qkv[:, HD:2 * HD].reshape(n, num_head, ch_head)
        v = qkv[:, 2 * HD:].reshape(n, num_head, ch_head)
        kl = k / np.sqrt(n); kl = kl - kl.max(axis=0, keepdims=True)
        A = np.exp(kl); A /= A.sum(axis=0, keepdims=True)            # softmax over points
        ctx = np.einsum('ihk,ihv->hkv', A, v)
        ql = q * ch_head ** -0.5; ql = ql - ql.max(axis=-1, keepdims=True)
        Qs = np.exp(ql); Qs /= Qs.sum(axis=-1, keepdims=True)        # softmax over ch_head
        attn = np.einsum('ihk,hkv->ihv', Qs, ctx).reshape(n, HD)
        z = attn @ w_out
        gn2 = (z - z.mean()) / np.sqrt(z.var() + eps) * g2 + b2      # GroupNorm(1, C)
        out[p] = gn2 + xb                                            # residual
    return out


if __name__ == "__main__":
    key = jax.random.PRNGKey(0)
    ch, num_head, ch_head = 128, 4, 32                 # H*Dh = 128 -> lane-dense attention
    HD = num_head * ch_head
    inst_lens = [96, 72]                               # variable per-instance point counts
    N_total = sum(inst_lens)

    k1, k2, k3, k4 = jax.random.split(key, 4)
    feats = jax.random.normal(k1, (N_total, ch), jnp.float32)
    w_qkv = jax.random.normal(k2, (ch, 3 * HD), jnp.float32) / np.sqrt(ch)
    w_out = jax.random.normal(k3, (HD, ch), jnp.float32) / np.sqrt(HD)
    g1 = jnp.linspace(0.5, 1.5, ch, dtype=jnp.float32)
    b1 = jnp.linspace(-0.2, 0.2, ch, dtype=jnp.float32)
    g2 = jnp.linspace(1.2, 0.8, ch, dtype=jnp.float32)
    b2 = jnp.linspace(0.1, -0.1, ch, dtype=jnp.float32)

    # decomposition_permutations: a partition of arange(N_total)
    perm_all = jax.random.permutation(k4, N_total)
    list_perms, off = [], 0
    for n in inst_lens:
        list_perms.append(perm_all[off:off + n])
        off += n

    ref = _linear_attention_ref(np.asarray(feats),
                                [np.asarray(p) for p in list_perms],
                                np.asarray(w_qkv), np.asarray(w_out),
                                np.asarray(g1), np.asarray(b1),
                                np.asarray(g2), np.asarray(b2),
                                num_head, ch_head)

    # strict path (f32 MXU operands, exact reciprocals) — tight accuracy check
    out32 = jax.block_until_ready(
        linear_attention_forward(feats, list_perms, w_qkv, w_out, g1, b1, g2, b2,
                                 num_head, ch_head, fast=False))
    err32 = float(np.max(np.abs(np.asarray(out32) - ref)))
    assert np.allclose(np.asarray(out32), ref, atol=5e-4, rtol=5e-4), err32

    # fast path (bf16 MXU operands + approx reciprocal) — v6e/v7x throughput config
    outbf = jax.block_until_ready(
        linear_attention_forward(feats, list_perms, w_qkv, w_out, g1, b1, g2, b2,
                                 num_head, ch_head, fast=True))
    errbf = float(np.max(np.abs(np.asarray(outbf) - ref)))
    assert np.allclose(np.asarray(outbf), ref, atol=5e-2, rtol=5e-2), errbf

    print("KERNEL_OK")
</pallas_src>

<mosaic_0001>
module attributes {stable_mosaic.version = 11 : i64} {
  func.func @_linear_attention_kernel(%arg0: i32, %arg1: memref<2xi32, #tpu.memory_space<smem>>, %arg2: memref<2x96x128xf32, #tpu.memory_space<vmem>>, %arg3: memref<128x384xf32, #tpu.memory_space<vmem>>, %arg4: memref<128x128xf32, #tpu.memory_space<vmem>>, %arg5: memref<1x128xf32, #tpu.memory_space<vmem>>, %arg6: memref<1x128xf32, #tpu.memory_space<vmem>>, %arg7: memref<1x128xf32, #tpu.memory_space<vmem>>, %arg8: memref<1x128xf32, #tpu.memory_space<vmem>>, %arg9: memref<128x128xf32, #tpu.memory_space<vmem>>, %arg10: memref<2x96x128xf32, #tpu.memory_space<vmem>>) attributes {dimension_semantics = [#tpu.dimension_semantics<parallel>], iteration_bounds = array<i64: 1>, scalar_prefetch = 1 : i64, scratch_operands = 0 : i64, tpu.core_type = #tpu.core_type<tc>, window_params = [{transform_indices = @transform_0, window_bounds = array<i64: 2, 96, 128>}, {pipeline_mode = #tpu.pipeline_mode<synchronous>, transform_indices = @transform_1, window_bounds = array<i64: 128, 384>}, {pipeline_mode = #tpu.pipeline_mode<synchronous>, transform_indices = @transform_2, window_bounds = array<i64: 128, 128>}, {pipeline_mode = #tpu.pipeline_mode<synchronous>, transform_indices = @transform_3, window_bounds = array<i64: 1, 128>}, {pipeline_mode = #tpu.pipeline_mode<synchronous>, transform_indices = @transform_4, window_bounds = array<i64: 1, 128>}, {pipeline_mode = #tpu.pipeline_mode<synchronous>, transform_indices = @transform_5, window_bounds = array<i64: 1, 128>}, {pipeline_mode = #tpu.pipeline_mode<synchronous>, transform_indices = @transform_6, window_bounds = array<i64: 1, 128>}, {pipeline_mode = #tpu.pipeline_mode<synchronous>, transform_indices = @transform_7, window_bounds = array<i64: 128, 128>}, {transform_indices = @transform_8, window_bounds = array<i64: 2, 96, 128>}]} {
    %0 = tpu.iota {dimensions = array<i32: 0>} : vector<96x1xi32>
    %c0 = arith.constant 0 : index
    %c0_0 = arith.constant 0 : index
    %1 = vector.load %arg5[%c0, %c0_0] : memref<1x128xf32, #tpu.memory_space<vmem>>, vector<1x128xf32>
    %c0_1 = arith.constant 0 : index
    %c0_2 = arith.constant 0 : index
    %2 = vector.load %arg6[%c0_1, %c0_2] : memref<1x128xf32, #tpu.memory_space<vmem>>, vector<1x128xf32>
    %c2_i32 = arith.constant 2 : i32
    %3 = arith.muli %arg0, %c2_i32 : i32
    %c0_i32 = arith.constant 0 : i32
    %4 = arith.addi %3, %c0_i32 : i32
    %5 = arith.index_cast %4 : i32 to index
    %6 = memref.load %arg1[%5] : memref<2xi32, #tpu.memory_space<smem>>
    %c1_i32 = arith.constant 1 : i32
    %7 = arith.maxsi %6, %c1_i32 : i32
    %8 = arith.sitofp %7 : i32 to f32
    %9 = vector.broadcast %6 : i32 to vector<96x1xi32>
    %10 = arith.cmpi slt, %0, %9 : vector<96x1xi32>
    %c0_3 = arith.constant 0 : index
    %c0_4 = arith.constant 0 : index
    %c0_5 = arith.constant 0 : index
    %11 = vector.load %arg2[%c0_3, %c0_4, %c0_5] : memref<2x96x128xf32, #tpu.memory_space<vmem>>, vector<1x96x128xf32>
    %12 = vector.shape_cast %11 : vector<1x96x128xf32> to vector<96x128xf32>
    %cst = arith.constant 1.280000e+02 : f32
    %13 = arith.mulf %8, %cst : f32
    %cst_6 = arith.constant dense<0.000000e+00> : vector<96xf32>
    %14 = vector.multi_reduction <add>, %12, %cst_6 [1] : vector<96x128xf32> to vector<96xf32>
    %15 = vector.shape_cast %14 : vector<96xf32> to vector<96x1xf32>
    %cst_7 = arith.constant dense<0.000000e+00> : vector<1xf32>
    %16 = vector.multi_reduction <add>, %15, %cst_7 [0] : vector<96x1xf32> to vector<1xf32>
    %17 = vector.shape_cast %16 : vector<1xf32> to vector<1x1xf32>
    %18 = vector.broadcast %13 : f32 to vector<1x1xf32>
    %19 = arith.divf %17, %18 : vector<1x1xf32>
    %20 = arith.mulf %12, %12 : vector<96x128xf32>
    %cst_8 = arith.constant dense<0.000000e+00> : vector<96xf32>
    %21 = vector.multi_reduction <add>, %20, %cst_8 [1] : vector<96x128xf32> to vector<96xf32>
    %22 = vector.shape_cast %21 : vector<96xf32> to vector<96x1xf32>
    %cst_9 = arith.constant dense<0.000000e+00> : vector<1xf32>
    %23 = vector.multi_reduction <add>, %22, %cst_9 [0] : vector<96x1xf32> to vector<1xf32>
    %24 = vector.shape_cast %23 : vector<1xf32> to vector<1x1xf32>
    %25 = vector.broadcast %13 : f32 to vector<1x1xf32>
    %26 = arith.divf %24, %25 : vector<1x1xf32>
    %27 = arith.mulf %19, %19 : vector<1x1xf32>
    %28 = arith.subf %26, %27 : vector<1x1xf32>
    %cst_10 = arith.constant 9.99999974E-6 : f32
    %29 = vector.broadcast %cst_10 : f32 to vector<1x1xf32>
    %30 = arith.addf %28, %29 : vector<1x1xf32>
    %31 = math.rsqrt %30 : vector<1x1xf32>
    %32 = vector.broadcast %31 : vector<1x1xf32> to vector<1x128xf32>
    %33 = arith.mulf %32, %1 : vector<1x128xf32>
    %34 = vector.broadcast %19 : vector<1x1xf32> to vector<1x128xf32>
    %35 = arith.mulf %34, %33 : vector<1x128xf32>
    %36 = arith.subf %2, %35 : vector<1x128xf32>
    %37 = vector.broadcast %33 : vector<1x128xf32> to vector<96x128xf32>
    %38 = arith.mulf %12, %37 : vector<96x128xf32>
    %39 = vector.broadcast %36 : vector<1x128xf32> to vector<96x128xf32>
    %40 = arith.addf %38, %39 : vector<96x128xf32>
    %c2_i32_11 = arith.constant 2 : i32
    %41 = arith.muli %arg0, %c2_i32_11 : i32
    %c1_i32_12 = arith.constant 1 : i32
    %42 = arith.addi %41, %c1_i32_12 : i32
    %43 = arith.index_cast %42 : i32 to index
    %44 = memref.load %arg1[%43] : memref<2xi32, #tpu.memory_space<smem>>
    %c1_i32_13 = arith.constant 1 : i32
    %45 = arith.maxsi %44, %c1_i32_13 : i32
    %46 = arith.sitofp %45 : i32 to f32
    %47 = vector.broadcast %44 : i32 to vector<96x1xi32>
    %48 = arith.cmpi slt, %0, %47 : vector<96x1xi32>
    %c1 = arith.constant 1 : index
    %c0_14 = arith.constant 0 : index
    %c0_15 = arith.constant 0 : index
    %49 = vector.load %arg2[%c1, %c0_14, %c0_15] : memref<2x96x128xf32, #tpu.memory_space<vmem>>, vector<1x96x128xf32>
    %50 = vector.shape_cast %49 : vector<1x96x128xf32> to vector<96x128xf32>
    %cst_16 = arith.constant 1.280000e+02 : f32
    %51 = arith.mulf %46, %cst_16 : f32
    %cst_17 = arith.constant dense<0.000000e+00> : vector<96xf32>
    %52 = vector.multi_reduction <add>, %50, %cst_17 [1] : vector<96x128xf32> to vector<96xf32>
    %53 = vector.shape_cast %52 : vector<96xf32> to vector<96x1xf32>
    %cst_18 = arith.constant dense<0.000000e+00> : vector<1xf32>
    %54 = vector.multi_reduction <add>, %53, %cst_18 [0] : vector<96x1xf32> to vector<1xf32>
    %55 = vector.shape_cast %54 : vector<1xf32> to vector<1x1xf32>
    %56 = vector.broadcast %51 : f32 to vector<1x1xf32>
    %57 = arith.divf %55, %56 : vector<1x1xf32>
    %58 = arith.mulf %50, %50 : vector<96x128xf32>
    %cst_19 = arith.constant dense<0.000000e+00> : vector<96xf32>
    %59 = vector.multi_reduction <add>, %58, %cst_19 [1] : vector<96x128xf32> to vector<96xf32>
    %60 = vector.shape_cast %59 : vector<96xf32> to vector<96x1xf32>
    %cst_20 = arith.constant dense<0.000000e+00> : vector<1xf32>
    %61 = vector.multi_reduction <add>, %60, %cst_20 [0] : vector<96x1xf32> to vector<1xf32>
    %62 = vector.shape_cast %61 : vector<1xf32> to vector<1x1xf32>
    %63 = vector.broadcast %51 : f32 to vector<1x1xf32>
    %64 = arith.divf %62, %63 : vector<1x1xf32>
    %65 = arith.mulf %57, %57 : vector<1x1xf32>
    %66 = arith.subf %64, %65 : vector<1x1xf32>
    %cst_21 = arith.constant 9.99999974E-6 : f32
    %67 = vector.broadcast %cst_21 : f32 to vector<1x1xf32>
    %68 = arith.addf %66, %67 : vector<1x1xf32>
    %69 = math.rsqrt %68 : vector<1x1xf32>
    %70 = vector.broadcast %69 : vector<1x1xf32> to vector<1x128xf32>
    %71 = arith.mulf %70, %1 : vector<1x128xf32>
    %72 = vector.broadcast %57 : vector<1x1xf32> to vector<1x128xf32>
    %73 = arith.mulf %72, %71 : vector<1x128xf32>
    %74 = arith.subf %2, %73 : vector<1x128xf32>
    %75 = vector.broadcast %71 : vector<1x128xf32> to vector<96x128xf32>
    %76 = arith.mulf %50, %75 : vector<96x128xf32>
    %77 = vector.broadcast %74 : vector<1x128xf32> to vector<96x128xf32>
    %78 = arith.addf %76, %77 : vector<96x128xf32>
    %79 = tpu.concatenate %40, %78 in 0 : vector<96x128xf32>, vector<96x128xf32> -> vector<192x128xf32>
    %c0_22 = arith.constant 0 : index
    %c0_23 = arith.constant 0 : index
    %80 = vector.load %arg3[%c0_22, %c0_23] : memref<128x384xf32, #tpu.memory_space<vmem>>, vector<128x384xf32>
    %cst_24 = arith.constant dense<0.000000e+00> : vector<192x384xf32>
    %81 = tpu.matmul %79, %80, %cst_24 {dimension_numbers = #tpu.dot_dimension_numbers<[1], [0], [0], [1], [0, 0, 1, 1], [], []>} : vector<192x128xf32>, vector<128x384xf32>, vector<192x384xf32> -> vector<192x384xf32>
    %82 = vector.extract_strided_slice %81 {offsets = [0, 0], sizes = [192, 128], strides = [1, 1]} : vector<192x384xf32> to vector<192x128xf32>
    %83 = vector.extract_strided_slice %81 {offsets = [0, 128], sizes = [192, 128], strides = [1, 1]} : vector<192x384xf32> to vector<192x128xf32>
    %84 = vector.extract_strided_slice %81 {offsets = [0, 256], sizes = [192, 128], strides = [1, 1]} : vector<192x384xf32> to vector<192x128xf32>
    %c0_25 = arith.constant 0 : index
    %c0_26 = arith.constant 0 : index
    %85 = vector.load %arg9[%c0_25, %c0_26] : memref<128x128xf32, #tpu.memory_space<vmem>>, vector<128x128xf32>
    %cst_27 = arith.constant 0.176776692 : f32
    %86 = vector.broadcast %cst_27 : f32 to vector<192x128xf32>
    %87 = arith.mulf %82, %86 : vector<192x128xf32>
    %cst_28 = arith.constant dense<0xFF800000> : vector<192xf32>
    %88 = vector.multi_reduction <maximumf>, %87, %cst_28 [1] : vector<192x128xf32> to vector<192xf32>
    %89 = vector.shape_cast %88 : vector<192xf32> to vector<192x1xf32>
    %90 = vector.broadcast %89 : vector<192x1xf32> to vector<192x128xf32>
    %91 = arith.subf %87, %90 : vector<192x128xf32>
    %92 = math.exp %91 : vector<192x128xf32>
    %cst_29 = arith.constant dense<0.000000e+00> : vector<192x128xf32>
    %93 = tpu.matmul %92, %85, %cst_29 {dimension_numbers = #tpu.dot_dimension_numbers<[1], [0], [0], [1], [0, 0, 1, 1], [], []>} : vector<192x128xf32>, vector<128x128xf32>, vector<192x128xf32> -> vector<192x128xf32>
    %cst_30 = arith.constant 1.000000e+00 : f32
    %94 = vector.broadcast %cst_30 : f32 to vector<192x128xf32>
    %95 = arith.divf %94, %93 : vector<192x128xf32>
    %96 = arith.mulf %92, %95 : vector<192x128xf32>
    %97 = vector.extract_strided_slice %83 {offsets = [0, 0], sizes = [96, 128], strides = [1, 1]} : vector<192x128xf32> to vector<96x128xf32>
    %98 = math.sqrt %8 : f32
    %cst_31 = arith.constant 1.000000e+00 : f32
    %99 = arith.divf %cst_31, %98 : f32
    %100 = vector.broadcast %99 : f32 to vector<96x128xf32>
    %101 = arith.mulf %97, %100 : vector<96x128xf32>
    %cst_32 = arith.constant -1.000000e+30 : f32
    %102 = vector.shape_cast %10 : vector<96x1xi1> to vector<96x1xi1>
    %103 = vector.broadcast %102 : vector<96x1xi1> to vector<96x128xi1>
    %104 = vector.broadcast %cst_32 : f32 to vector<96x128xf32>
    %105 = arith.select %103, %101, %104 : vector<96x128xi1>, vector<96x128xf32>
    %cst_33 = arith.constant dense<0xFF800000> : vector<128xf32>
    %106 = vector.multi_reduction <maximumf>, %105, %cst_33 [0] : vector<96x128xf32> to vector<128xf32>
    %107 = vector.shape_cast %106 : vector<128xf32> to vector<1x128xf32>
    %108 = vector.broadcast %107 : vector<1x128xf32> to vector<96x128xf32>
    %109 = arith.subf %105, %108 : vector<96x128xf32>
    %110 = math.exp %109 : vector<96x128xf32>
    %cst_34 = arith.constant dense<0.000000e+00> : vector<128xf32>
    %111 = vector.multi_reduction <add>, %110, %cst_34 [0] : vector<96x128xf32> to vector<128xf32>
    %112 = vector.shape_cast %111 : vector<128xf32> to vector<1x128xf32>
    %cst_35 = arith.constant 1.000000e+00 : f32
    %113 = vector.broadcast %cst_35 : f32 to vector<1x128xf32>
    %114 = arith.divf %113, %112 : vector<1x128xf32>
    %115 = vector.broadcast %114 : vector<1x128xf32> to vector<96x128xf32>
    %116 = arith.mulf %110, %115 : vector<96x128xf32>
    %117 = vector.extract_strided_slice %84 {offsets = [0, 0], sizes = [96, 128], strides = [1, 1]} : vector<192x128xf32> to vector<96x128xf32>
    %cst_36 = arith.constant dense<0.000000e+00> : vector<128x128xf32>
    %118 = tpu.matmul %116, %117, %cst_36 {dimension_numbers = #tpu.dot_dimension_numbers<[0], [0], [1], [1], [0, 1, 1, 1], [], []>} : vector<96x128xf32>, vector<96x128xf32>, vector<128x128xf32> -> vector<128x128xf32>
    %119 = arith.mulf %118, %85 : vector<128x128xf32>
    %120 = vector.extract_strided_slice %96 {offsets = [0, 0], sizes = [96, 128], strides = [1, 1]} : vector<192x128xf32> to vector<96x128xf32>
    %cst_37 = arith.constant dense<0.000000e+00> : vector<96x128xf32>
    %121 = tpu.matmul %120, %119, %cst_37 {dimension_numbers = #tpu.dot_dimension_numbers<[1], [0], [0], [1], [0, 0, 1, 1], [], []>} : vector<96x128xf32>, vector<128x128xf32>, vector<96x128xf32> -> vector<96x128xf32>
    %cst_38 = arith.constant 0.000000e+00 : f32
    %122 = vector.shape_cast %10 : vector<96x1xi1> to vector<96x1xi1>
    %123 = vector.broadcast %122 : vector<96x1xi1> to vector<96x128xi1>
    %124 = vector.broadcast %cst_38 : f32 to vector<96x128xf32>
    %125 = arith.select %123, %121, %124 : vector<96x128xi1>, vector<96x128xf32>
    %126 = vector.extract_strided_slice %83 {offsets = [96, 0], sizes = [96, 128], strides = [1, 1]} : vector<192x128xf32> to vector<96x128xf32>
    %127 = math.sqrt %46 : f32
    %cst_39 = arith.constant 1.000000e+00 : f32
    %128 = arith.divf %cst_39, %127 : f32
    %129 = vector.broadcast %128 : f32 to vector<96x128xf32>
    %130 = arith.mulf %126, %129 : vector<96x128xf32>
    %cst_40 = arith.constant -1.000000e+30 : f32
    %131 = vector.shape_cast %48 : vector<96x1xi1> to vector<96x1xi1>
    %132 = vector.broadcast %131 : vector<96x1xi1> to vector<96x128xi1>
    %133 = vector.broadcast %cst_40 : f32 to vector<96x128xf32>
    %134 = arith.select %132, %130, %133 : vector<96x128xi1>, vector<96x128xf32>
    %cst_41 = arith.constant dense<0xFF800000> : vector<128xf32>
    %135 = vector.multi_reduction <maximumf>, %134, %cst_41 [0] : vector<96x128xf32> to vector<128xf32>
    %136 = vector.shape_cast %135 : vector<128xf32> to vector<1x128xf32>
    %137 = vector.broadcast %136 : vector<1x128xf32> to vector<96x128xf32>
    %138 = arith.subf %134, %137 : vector<96x128xf32>
    %139 = math.exp %138 : vector<96x128xf32>
    %cst_42 = arith.constant dense<0.000000e+00> : vector<128xf32>
    %140 = vector.multi_reduction <add>, %139, %cst_42 [0] : vector<96x128xf32> to vector<128xf32>
    %141 = vector.shape_cast %140 : vector<128xf32> to vector<1x128xf32>
    %cst_43 = arith.constant 1.000000e+00 : f32
    %142 = vector.broadcast %cst_43 : f32 to vector<1x128xf32>
    %143 = arith.divf %142, %141 : vector<1x128xf32>
    %144 = vector.broadcast %143 : vector<1x128xf32> to vector<96x128xf32>
    %145 = arith.mulf %139, %144 : vector<96x128xf32>
    %146 = vector.extract_strided_slice %84 {offsets = [96, 0], sizes = [96, 128], strides = [1, 1]} : vector<192x128xf32> to vector<96x128xf32>
    %cst_44 = arith.constant dense<0.000000e+00> : vector<128x128xf32>
    %147 = tpu.matmul %145, %146, %cst_44 {dimension_numbers = #tpu.dot_dimension_numbers<[0], [0], [1], [1], [0, 1, 1, 1], [], []>} : vector<96x128xf32>, vector<96x128xf32>, vector<128x128xf32> -> vector<128x128xf32>
    %148 = arith.mulf %147, %85 : vector<128x128xf32>
    %149 = vector.extract_strided_slice %96 {offsets = [96, 0], sizes = [96, 128], strides = [1, 1]} : vector<192x128xf32> to vector<96x128xf32>
    %cst_45 = arith.constant dense<0.000000e+00> : vector<96x128xf32>
    %150 = tpu.matmul %149, %148, %cst_45 {dimension_numbers = #tpu.dot_dimension_numbers<[1], [0], [0], [1], [0, 0, 1, 1], [], []>} : vector<96x128xf32>, vector<128x128xf32>, vector<96x128xf32> -> vector<96x128xf32>
    %cst_46 = arith.constant 0.000000e+00 : f32
    %151 = vector.shape_cast %48 : vector<96x1xi1> to vector<96x1xi1>
    %152 = vector.broadcast %151 : vector<96x1xi1> to vector<96x128xi1>
    %153 = vector.broadcast %cst_46 : f32 to vector<96x128xf32>
    %154 = arith.select %152, %150, %153 : vector<96x128xi1>, vector<96x128xf32>
    %155 = tpu.concatenate %125, %154 in 0 : vector<96x128xf32>, vector<96x128xf32> -> vector<192x128xf32>
    %c0_47 = arith.constant 0 : index
    %c0_48 = arith.constant 0 : index
    %156 = vector.load %arg4[%c0_47, %c0_48] : memref<128x128xf32, #tpu.memory_space<vmem>>, vector<128x128xf32>
    %cst_49 = arith.constant dense<0.000000e+00> : vector<192x128xf32>
    %157 = tpu.matmul %155, %156, %cst_49 {dimension_numbers = #tpu.dot_dimension_numbers<[1], [0], [0], [1], [0, 0, 1, 1], [], []>} : vector<192x128xf32>, vector<128x128xf32>, vector<192x128xf32> -> vector<192x128xf32>
    %c0_50 = arith.constant 0 : index
    %c0_51 = arith.constant 0 : index
    %158 = vector.load %arg7[%c0_50, %c0_51] : memref<1x128xf32, #tpu.memory_space<vmem>>, vector<1x128xf32>
    %c0_52 = arith.constant 0 : index
    %c0_53 = arith.constant 0 : index
    %159 = vector.load %arg8[%c0_52, %c0_53] : memref<1x128xf32, #tpu.memory_space<vmem>>, vector<1x128xf32>
    %160 = vector.extract_strided_slice %157 {offsets = [0, 0], sizes = [96, 128], strides = [1, 1]} : vector<192x128xf32> to vector<96x128xf32>
    %cst_54 = arith.constant 1.280000e+02 : f32
    %161 = arith.mulf %8, %cst_54 : f32
    %cst_55 = arith.constant dense<0.000000e+00> : vector<96xf32>
    %162 = vector.multi_reduction <add>, %160, %cst_55 [1] : vector<96x128xf32> to vector<96xf32>
    %163 = vector.shape_cast %162 : vector<96xf32> to vector<96x1xf32>
    %cst_56 = arith.constant dense<0.000000e+00> : vector<1xf32>
    %164 = vector.multi_reduction <add>, %163, %cst_56 [0] : vector<96x1xf32> to vector<1xf32>
    %165 = vector.shape_cast %164 : vector<1xf32> to vector<1x1xf32>
    %166 = vector.broadcast %161 : f32 to vector<1x1xf32>
    %167 = arith.divf %165, %166 : vector<1x1xf32>
    %168 = arith.mulf %160, %160 : vector<96x128xf32>
    %cst_57 = arith.constant dense<0.000000e+00> : vector<96xf32>
    %169 = vector.multi_reduction <add>, %168, %cst_57 [1] : vector<96x128xf32> to vector<96xf32>
    %170 = vector.shape_cast %169 : vector<96xf32> to vector<96x1xf32>
    %cst_58 = arith.constant dense<0.000000e+00> : vector<1xf32>
    %171 = vector.multi_reduction <add>, %170, %cst_58 [0] : vector<96x1xf32> to vector<1xf32>
    %172 = vector.shape_cast %171 : vector<1xf32> to vector<1x1xf32>
    %173 = vector.broadcast %161 : f32 to vector<1x1xf32>
    %174 = arith.divf %172, %173 : vector<1x1xf32>
    %175 = arith.mulf %167, %167 : vector<1x1xf32>
    %176 = arith.subf %174, %175 : vector<1x1xf32>
    %cst_59 = arith.constant 9.99999974E-6 : f32
    %177 = vector.broadcast %cst_59 : f32 to vector<1x1xf32>
    %178 = arith.addf %176, %177 : vector<1x1xf32>
    %179 = math.rsqrt %178 : vector<1x1xf32>
    %180 = vector.broadcast %179 : vector<1x1xf32> to vector<1x128xf32>
    %181 = arith.mulf %180, %158 : vector<1x128xf32>
    %182 = vector.broadcast %167 : vector<1x1xf32> to vector<1x128xf32>
    %183 = arith.mulf %182, %181 : vector<1x128xf32>
    %184 = arith.subf %159, %183 : vector<1x128xf32>
    %185 = vector.broadcast %181 : vector<1x128xf32> to vector<96x128xf32>
    %186 = arith.mulf %160, %185 : vector<96x128xf32>
    %187 = vector.broadcast %184 : vector<1x128xf32> to vector<96x128xf32>
    %188 = arith.addf %186, %187 : vector<96x128xf32>
    %c0_60 = arith.constant 0 : index
    %c0_61 = arith.constant 0 : index
    %c0_62 = arith.constant 0 : index
    %189 = vector.load %arg2[%c0_60, %c0_61, %c0_62] : memref<2x96x128xf32, #tpu.memory_space<vmem>>, vector<1x96x128xf32>
    %190 = vector.shape_cast %189 : vector<1x96x128xf32> to vector<96x128xf32>
    %191 = arith.addf %188, %190 : vector<96x128xf32>
    %c0_63 = arith.constant 0 : index
    %c0_64 = arith.constant 0 : index
    %c0_65 = arith.constant 0 : index
    %192 = vector.load %arg10[%c0_63, %c0_64, %c0_65] : memref<2x96x128xf32, #tpu.memory_space<vmem>>, vector<1x96x128xf32>
    %193 = vector.shape_cast %192 : vector<1x96x128xf32> to vector<96x128xf32>
    %194 = vector.shape_cast %191 : vector<96x128xf32> to vector<1x96x128xf32>
    tpu.vector_store %arg10[%c0_63, %c0_64, %c0_65], %194 {strides = array<i32>} : memref<2x96x128xf32, #tpu.memory_space<vmem>>, vector<1x96x128xf32>,
    %195 = vector.extract_strided_slice %157 {offsets = [96, 0], sizes = [96, 128], strides = [1, 1]} : vector<192x128xf32> to vector<96x128xf32>
    %cst_66 = arith.constant 1.280000e+02 : f32
    %196 = arith.mulf %46, %cst_66 : f32
    %cst_67 = arith.constant dense<0.000000e+00> : vector<96xf32>
    %197 = vector.multi_reduction <add>, %195, %cst_67 [1] : vector<96x128xf32> to vector<96xf32>
    %198 = vector.shape_cast %197 : vector<96xf32> to vector<96x1xf32>
    %cst_68 = arith.constant dense<0.000000e+00> : vector<1xf32>
    %199 = vector.multi_reduction <add>, %198, %cst_68 [0] : vector<96x1xf32> to vector<1xf32>
    %200 = vector.shape_cast %199 : vector<1xf32> to vector<1x1xf32>
    %201 = vector.broadcast %196 : f32 to vector<1x1xf32>
    %202 = arith.divf %200, %201 : vector<1x1xf32>
    %203 = arith.mulf %195, %195 : vector<96x128xf32>
    %cst_69 = arith.constant dense<0.000000e+00> : vector<96xf32>
    %204 = vector.multi_reduction <add>, %203, %cst_69 [1] : vector<96x128xf32> to vector<96xf32>
    %205 = vector.shape_cast %204 : vector<96xf32> to vector<96x1xf32>
    %cst_70 = arith.constant dense<0.000000e+00> : vector<1xf32>
    %206 = vector.multi_reduction <add>, %205, %cst_70 [0] : vector<96x1xf32> to vector<1xf32>
    %207 = vector.shape_cast %206 : vector<1xf32> to vector<1x1xf32>
    %208 = vector.broadcast %196 : f32 to vector<1x1xf32>
    %209 = arith.divf %207, %208 : vector<1x1xf32>
    %210 = arith.mulf %202, %202 : vector<1x1xf32>
    %211 = arith.subf %209, %210 : vector<1x1xf32>
    %cst_71 = arith.constant 9.99999974E-6 : f32
    %212 = vector.broadcast %cst_71 : f32 to vector<1x1xf32>
    %213 = arith.addf %211, %212 : vector<1x1xf32>
    %214 = math.rsqrt %213 : vector<1x1xf32>
    %215 = vector.broadcast %214 : vector<1x1xf32> to vector<1x128xf32>
    %216 = arith.mulf %215, %158 : vector<1x128xf32>
    %217 = vector.broadcast %202 : vector<1x1xf32> to vector<1x128xf32>
    %218 = arith.mulf %217, %216 : vector<1x128xf32>
    %219 = arith.subf %159, %218 : vector<1x128xf32>
    %220 = vector.broadcast %216 : vector<1x128xf32> to vector<96x128xf32>
    %221 = arith.mulf %195, %220 : vector<96x128xf32>
    %222 = vector.broadcast %219 : vector<1x128xf32> to vector<96x128xf32>
    %223 = arith.addf %221, %222 : vector<96x128xf32>
    %c1_72 = arith.constant 1 : index
    %c0_73 = arith.constant 0 : index
    %c0_74 = arith.constant 0 : index
    %224 = vector.load %arg2[%c1_72, %c0_73, %c0_74] : memref<2x96x128xf32, #tpu.memory_space<vmem>>, vector<1x96x128xf32>
    %225 = vector.shape_cast %224 : vector<1x96x128xf32> to vector<96x128xf32>
    %226 = arith.addf %223, %225 : vector<96x128xf32>
    %c1_75 = arith.constant 1 : index
    %c0_76 = arith.constant 0 : index
    %c0_77 = arith.constant 0 : index
    %227 = vector.load %arg10[%c1_75, %c0_76, %c0_77] : memref<2x96x128xf32, #tpu.memory_space<vmem>>, vector<1x96x128xf32>
    %228 = vector.shape_cast %227 : vector<1x96x128xf32> to vector<96x128xf32>
    %229 = vector.shape_cast %226 : vector<96x128xf32> to vector<1x96x128xf32>
    tpu.vector_store %arg10[%c1_75, %c0_76, %c0_77], %229 {strides = array<i32>} : memref<2x96x128xf32, #tpu.memory_space<vmem>>, vector<1x96x128xf32>,
    return
  }
  func.func @transform_0(%arg0: i32, %arg1: memref<2xi32, #tpu.memory_space<smem>>) -> (i32, i32, i32) {
    %c0_i32 = arith.constant 0 : i32
    %c0_i32_0 = arith.constant 0 : i32
    %c0_i32_1 = arith.constant 0 : i32
    return %arg0, %c0_i32, %c0_i32_0 : i32, i32, i32
  }
  func.func @transform_1(%arg0: i32, %arg1: memref<2xi32, #tpu.memory_space<smem>>) -> (i32, i32) {
    %c0_i32 = arith.constant 0 : i32
    %c0_i32_0 = arith.constant 0 : i32
    %c0_i32_1 = arith.constant 0 : i32
    return %c0_i32, %c0_i32_0 : i32, i32
  }
  func.func @transform_2(%arg0: i32, %arg1: memref<2xi32, #tpu.memory_space<smem>>) -> (i32, i32) {
    %c0_i32 = arith.constant 0 : i32
    %c0_i32_0 = arith.constant 0 : i32
    %c0_i32_1 = arith.constant 0 : i32
    return %c0_i32, %c0_i32_0 : i32, i32
  }
  func.func @transform_3(%arg0: i32, %arg1: memref<2xi32, #tpu.memory_space<smem>>) -> (i32, i32) {
    %c0_i32 = arith.constant 0 : i32
    %c0_i32_0 = arith.constant 0 : i32
    %c0_i32_1 = arith.constant 0 : i32
    return %c0_i32, %c0_i32_0 : i32, i32
  }
  func.func @transform_4(%arg0: i32, %arg1: memref<2xi32, #tpu.memory_space<smem>>) -> (i32, i32) {
    %c0_i32 = arith.constant 0 : i32
    %c0_i32_0 = arith.constant 0 : i32
    %c0_i32_1 = arith.constant 0 : i32
    return %c0_i32, %c0_i32_0 : i32, i32
  }
  func.func @transform_5(%arg0: i32, %arg1: memref<2xi32, #tpu.memory_space<smem>>) -> (i32, i32) {
    %c0_i32 = arith.constant 0 : i32
    %c0_i32_0 = arith.constant 0 : i32
    %c0_i32_1 = arith.constant 0 : i32
    return %c0_i32, %c0_i32_0 : i32, i32
  }
  func.func @transform_6(%arg0: i32, %arg1: memref<2xi32, #tpu.memory_space<smem>>) -> (i32, i32) {
    %c0_i32 = arith.constant 0 : i32
    %c0_i32_0 = arith.constant 0 : i32
    %c0_i32_1 = arith.constant 0 : i32
    return %c0_i32, %c0_i32_0 : i32, i32
  }
  func.func @transform_7(%arg0: i32, %arg1: memref<2xi32, #tpu.memory_space<smem>>) -> (i32, i32) {
    %c0_i32 = arith.constant 0 : i32
    %c0_i32_0 = arith.constant 0 : i32
    %c0_i32_1 = arith.constant 0 : i32
    return %c0_i32, %c0_i32_0 : i32, i32
  }
  func.func @transform_8(%arg0: i32, %arg1: memref<2xi32, #tpu.memory_space<smem>>) -> (i32, i32, i32) {
    %c0_i32 = arith.constant 0 : i32
    %c0_i32_0 = arith.constant 0 : i32
    %c0_i32_1 = arith.constant 0 : i32
    return %arg0, %c0_i32, %c0_i32_0 : i32, i32, i32
  }
}

</mosaic_0001>

<bundles_post_ra>
// kernel: tpu_custom_call.1
= control target key start
LH: loop header
LB: loop body
LE: loop exit
PB: predicated region body
PF: predicated region fallthrough
CT: control target
= control target key end

     0   :  { %s5795_s0 = inlined_call_operand.hbm [shape: s32[2], index: 0, kind: input, shape index: {}]   ;;  %s5796_s1 = inlined_call_operand.hbm [shape: f32[2,96,128], index: 1, kind: input, shape index: {}]   ;;  %s5797_s2 = inlined_call_operand.hbm [shape: f32[128,384], index: 2, kind: input, shape index: {}]   ;;  %s5798_s3 = inlined_call_operand.hbm [shape: f32[128,128], index: 3, kind: input, shape index: {}]   ;;  %s5799_s4 = inlined_call_operand.vmem [shape: f32[1,128], index: 4, kind: input, shape index: {}]   ;;  %s5800_s5 = inlined_call_operand.vmem [shape: f32[1,128], index: 5, kind: input, shape index: {}]   ;;  %s5801_s6 = inlined_call_operand.vmem [shape: f32[1,128], index: 6, kind: input, shape index: {}]   ;;  %s5802_s7 = inlined_call_operand.vmem [shape: f32[1,128], index: 7, kind: input, shape index: {}]   ;;  %s5803_s8 = inlined_call_operand.hbm [shape: f32[128,128], index: 8, kind: input, shape index: {}]   ;;  %s5804_s9 = inlined_call_operand.hbm [shape: f32[2,96,128], index: 9, kind: output, shape index: {}]  }
   0x1   :  { %s4077_s11 = scalar_lea.hbm %s5795_s0, 16 }
   0x2   :  { %p4078_p0 = scmp.ne.s32.totalorder %s5795_s0, %s4077_s11  ;;  %p4081_p1 = scmp.lt.u32.totalorder %s4077_s11, %s5795_s0 }
   0x4   :  { %p4083_p2 = pnand %p4081_p1, %p4078_p0 }
   0x6   :  { %4086 = shalt.err (!%p4083_p2)  }
   0x7   :  { %s4207_s16 = smov [#allocation3]  }
   0x8   :  { %15 = dma.hbm_to_smem %s5795_s0, 16, %s4207_s16, [#allocation2] }
   0x9   :  { %4197 = dma.done.wait [#allocation2], 16 }
   0xa   :  { %4198 = vsyncadd [#allocation2], 4294967280 }
   0xb   :  { %17 = sfence }
   0xc   :  { %18 = vsyncpa [#allocation5], 0 }
   0xd   :  { %19 = vsyncpa [#allocation8], 0 }
   0xe   :  { %20 = vsyncpa [#allocation11], 0 }
   0xf   :  { %21 = vsyncpa [#allocation6], 0  ;;  %s4208_s19 = smov [#allocation7]   ;;  %s4087_s23 = scalar_lea.hbm %s5797_s2, 6144 }
  0x10   :  { %s39_s20 = sshll.u32 %s4208_s19, 4  ;;  %p4088_p3 = scmp.ne.s32.totalorder %s5797_s2, %s4087_s23  ;;  %s40_s20 = int_to_ptr.vmem [resolvable:$true] %s39_s20 }
  0x11   :  { %p4091_p4 = scmp.lt.u32.totalorder %s4087_s23, %s5797_s2 }
  0x13   :  { %p4093_p5 = pnand %p4091_p4, %p4088_p3 }
  0x15   :  { %4096 = shalt.err (!%p4093_p5)
}
  0x16   :  { %s4097_s27 = scalar_lea.vmem %s40_s20, 6144  ;;  %p4102_p7 = scmp.lt.s32.totalorder %s40_s20, %s40_s20 }
  0x17   :  { %p4098_p6 = scmp.ne.s32.totalorder %s40_s20, %s4097_s27  ;;  %p4103_p8 = scmp.lt.s32.totalorder %s4097_s27, %s4097_s27 }
  0x19   :  { %p4104_p9 = por %p4103_p8, %p4102_p7 }
  0x1b   :  { %p4105_p10 = pnand %p4104_p9, %p4098_p6 }
  0x1d   :  { %4108 = shalt.err (!%p4105_p10)
}
  0x1e   :  { %s4209_s28 = smov 384   ;;  %s4210_s29 = smov 24  }
  0x1f   :  { %45 = dma.hbm_to_vmem [thread:$0]  %s5797_s2, 6144, %s40_s20, [#allocation8], %s4209_s28, %s4209_s28, %s4210_s29  }
  0x20   :  { %s4211_s11 = smov [#allocation4]   ;;  %s4109_s15 = scalar_lea.hbm %s5796_s1, 3072 }
  0x21   :  { %s27_s12 = sshll.u32 %s4211_s11, 4  ;;  %p4110_p11 = scmp.ne.s32.totalorder %s5796_s1, %s4109_s15  ;;  %s28_s12 = int_to_ptr.vmem [resolvable:$true] %s27_s12 }
  0x22   :  { %p4113_p12 = scmp.lt.u32.totalorder %s4109_s15, %s5796_s1 }
  0x24   :  { %p4115_p13 = pnand %p4113_p12, %p4110_p11 }
  0x26   :  { %4118 = shalt.err (!%p4115_p13)
}
  0x27   :  { %s4119_s21 = scalar_lea.vmem %s28_s12, 3072  ;;  %p4124_p1 = scmp.lt.s32.totalorder %s28_s12, %s28_s12 }
  0x28   :  { %p4120_p0 = scmp.ne.s32.totalorder %s28_s12, %s4119_s21  ;;  %p4125_p2 = scmp.lt.s32.totalorder %s4119_s21, %s4119_s21 }
  0x2a   :  { %p4126_p3 = por %p4125_p2, %p4124_p1 }
  0x2c   :  { %p4127_p4 = pnand %p4126_p3, %p4120_p0 }
  0x2e   :  { %4130 = shalt.err (!%p4127_p4)
}
  0x2f   :  { %s4212_s2 = smov 128   ;;  %s4213_s20 = smov 8  }
  0x30   :  { %33 = dma.hbm_to_vmem [thread:$0]  %s5796_s1, 3072, %s28_s12, [#allocation5], %s4212_s2, %s4212_s2, %s4213_s20  }
  0x31   :  { %s4214_s24 = smov [#allocation9]   ;;  %s4215_s26 = smov [#allocation10]  }
  0x32   :  { %s51_s25 = sshll.u32 %s4214_s24, 4  ;;  %s71_s0 = sshll.u32 %s4215_s26, 4  ;;  %s52_s25 = int_to_ptr.vmem [resolvable:$true] %s51_s25  ;;  %s4307_s0 = int_to_ptr.vmem [resolvable:$true] %s71_s0 }
  0x33   :  { %s4131_s29 = scalar_lea.hbm %s5798_s3, 2048 }
  0x34   :  { %p4132_p5 = scmp.ne.s32.totalorder %s5798_s3, %s4131_s29  ;;  %p4135_p6 = scmp.lt.u32.totalorder %s4131_s29, %s5798_s3 }
  0x36   :  { %p4137_p7 = pnand %p4135_p6, %p4132_p5 }
  0x38   :  { %4140 = shalt.err (!%p4137_p7)
}
  0x39   :  { %s4141_s1 = scalar_lea.vmem %s52_s25, 2048  ;;  %p4146_p9 = scmp.lt.s32.totalorder %s52_s25, %s52_s25 }
  0x3a   :  { %p4142_p8 = scmp.ne.s32.totalorder %s52_s25, %s4141_s1  ;;  %p4147_p10 = scmp.lt.s32.totalorder %s4141_s1, %s4141_s1 }
  0x3c   :  { %p4148_p11 = por %p4147_p10, %p4146_p9 }
  0x3e   :  { %p4149_p12 = pnand %p4148_p11, %p4142_p8 }
  0x40   :  { %4152 = shalt.err (!%p4149_p12)
}
  0x41   :  { %57 = dma.hbm_to_vmem [thread:$0]  %s5798_s3, 2048, %s52_s25, [#allocation8], %s4212_s2, %s4212_s2, %s4213_s20  }
  0x42   :  { %s4153_s17 = scalar_lea.hbm %s5803_s8, 2048 }
  0x43   :  { %p4154_p13 = scmp.ne.s32.totalorder %s5803_s8, %s4153_s17  ;;  %p4157_p0 = scmp.lt.u32.totalorder %s4153_s17, %s5803_s8 }
  0x45   :  { %p4159_p1 = pnand %p4157_p0, %p4154_p13 }
  0x47   :  { %4162 = shalt.err (!%p4159_p1)
}
  0x48   :  { %s4163_s23 = scalar_lea.vmem %s4307_s0, 2048  ;;  %p4168_p3 = scmp.lt.s32.totalorder %s4307_s0, %s4307_s0 }
  0x49   :  { %p4164_p2 = scmp.ne.s32.totalorder %s4307_s0, %s4163_s23  ;;  %p4169_p4 = scmp.lt.s32.totalorder %s4163_s23, %s4163_s23 }
  0x4b   :  { %p4170_p5 = por %p4169_p4, %p4168_p3 }
  0x4d   :  { %p4171_p6 = pnand %p4170_p5, %p4164_p2 }
  0x4f   :  { %4174 = shalt.err (!%p4171_p6)
}
  0x50   :  { %77 = dma.hbm_to_vmem [thread:$0]  %s5803_s8, 2048, %s4307_s0, [#allocation11], %s4212_s2, %s4212_s2, %s4213_s20  }
  0x51   :  { %4199 = dma.done.wait [#allocation5], 3072  }
  0x52   :  { %4200 = vsyncadd [#allocation5], 4294964224 }
  0x53   :  { %4201 = dma.done.wait [#allocation8], 8192  }
  0x54   :  { %4202 = vsyncadd [#allocation8], 4294959104 }
  0x55   :  { %4203 = dma.done.wait [#allocation11], 2048  }
  0x56   :  { %4204 = vsyncadd [#allocation11], 4294965248  ;;  %v4344_v0 = vld [vmem:[#allocation4 + $0x10] sm:$0xff]  ;;  %v4346_v1 = vld [vmem:[#allocation4] sm:$0xff]  ;;  %s4465_s8 = sld [smem:[#allocation3]]  ;;  %s4476_s27 = sld [smem:[#allocation3 + $0x1]] }
  0x57   :  { %140 = vadd.xlane.f32.xlu1 %v4344_v0  ;;  %136 = vadd.xlane.f32.xlu0 %v4346_v1  ;;  %v4350_v2 = vld [vmem:[#allocation4 + $0x18] sm:$0xff]  ;;  %v4352_v3 = vld [vmem:[#allocation4 + $0x8] sm:$0xff]  ;;  %v180_v5 = vmul.f32 %v4346_v1, %v4346_v1  ;;  %v182_v6 = vmul.f32 %v4344_v0, %v4344_v0  ;;  %v4362_v7 = vld [vmem:[#allocation4 + $0x20] sm:$0xff] }
  0x58   :  { %v181_v4 = vmul.f32 %v4352_v3, %v4352_v3  ;;  %v183_v8 = vmul.f32 %v4350_v2, %v4350_v2  ;;  %v4367_v9 = vld [vmem:[#allocation4 + $0x28] sm:$0xff]  ;;  %v184_v10 = vmul.f32 %v4362_v7, %v4362_v7  ;;  %v4372_v11 = vld [vmem:[#allocation4 + $0x30] sm:$0xff]  ;;  %v4377_v13 = vld [vmem:[#allocation4 + $0x38] sm:$0xff] }
  0x59   :  { %v185_v12 = vmul.f32 %v4367_v9, %v4367_v9  ;;  %v186_v14 = vmul.f32 %v4372_v11, %v4372_v11  ;;  %v4382_v15 = vld [vmem:[#allocation4 + $0x40] sm:$0xff]  ;;  %v187_v16 = vmul.f32 %v4377_v13, %v4377_v13  ;;  %v4387_v17 = vld [vmem:[#allocation4 + $0x48] sm:$0xff]  ;;  %v4392_v19 = vld [vmem:[#allocation4 + $0x50] sm:$0xff] }
  0x5a   :  { %v188_v18 = vmul.f32 %v4382_v15, %v4382_v15  ;;  %v189_v20 = vmul.f32 %v4387_v17, %v4387_v17  ;;  %v4397_v21 = vld [vmem:[#allocation4 + $0x58] sm:$0xff]  ;;  %v190_v22 = vmul.f32 %v4392_v19, %v4392_v19  ;;  %v4404_v24 = vld [vmem:[#allocation4 + $0x60] sm:$0xff]  ;;  %v4406_v25 = vld [vmem:[#allocation4 + $0x68] sm:$0xff] }
  0x5b   :  { %142 = vadd.xlane.f32.xlu1 %v4350_v2  ;;  %138 = vadd.xlane.f32.xlu0 %v4352_v3  ;;  %v191_v23 = vmul.f32 %v4397_v21, %v4397_v21  ;;  %v353_v26 = vmul.f32 %v4404_v24, %v4404_v24  ;;  %v4412_v27 = vld [vmem:[#allocation4 + $0x70] sm:$0xff]  ;;  %v354_v28 = vmul.f32 %v4406_v25, %v4406_v25  ;;  %v4417_v29 = vld [vmem:[#allocation4 + $0x78] sm:$0xff]  ;;  %v4422_v31 = vld [vmem:[#allocation4 + $0x80] sm:$0xff] }
  0x5c   :  { %v355_v30 = vmul.f32 %v4412_v27, %v4412_v27  ;;  %v356_v32 = vmul.f32 %v4417_v29, %v4417_v29  ;;  %v4427_v33 = vld [vmem:[#allocation4 + $0x88] sm:$0xff]  ;;  %v357_v34 = vmul.f32 %v4422_v31, %v4422_v31  ;;  %v4432_v35 = vld [vmem:[#allocation4 + $0x90] sm:$0xff]  ;;  %v454_v37 = vld [vmem:[#allocation7 + $0x20] sm:$0xff]  ;;  %p107_p7 = scmp.gt.s32.totalorder %s4465_s8, 1  ;;  %p279_p8 = scmp.gt.s32.totalorder %s4476_s27, 1 }
  0x5d   :  { %v451_v36 = vld [vmem:[#allocation7 + $0x8] sm:$0xff]  ;;  %v450_v39 = vld [vmem:[#allocation7] sm:$0xff]  ;;  %v453_v40 = vld [vmem:[#allocation7 + $0x18] sm:$0xff]  ;;  %v358_v42 = vmul.f32 %v4427_v33, %v4427_v33  ;;  %v359_v51 = vmul.f32 %v4432_v35, %v4432_v35 }
  0x5e   :  { %v3606_v38 = vpack.c.bf16 %v454_v37, %v451_v36  ;;  %v452_v41 = vld [vmem:[#allocation7 + $0x10] sm:$0xff]  ;;  %v3608_v43 = vpack.c.bf16 %v453_v40, %v450_v39  ;;  %v455_v44 = vld [vmem:[#allocation7 + $0x28] sm:$0xff]  ;;  %v4437_v45 = vld [vmem:[#allocation4 + $0x98] sm:$0xff]  ;;  %s4469_s25 = scalar_select %p107_p7, %s4465_s8, 1 }
  0x5f   :  { %194 = vadd.xlane.f32.xlu0 %v181_v4  ;;  %192 = vadd.xlane.f32.xlu1 %v180_v5  ;;  %v3638_v46 = vpack.c.bf16 %v455_v44, %v452_v41  ;;  %v457_v47 = vld [vmem:[#allocation7 + $0x38] sm:$0xff]  ;;  %v460_v48 = vld [vmem:[#allocation7 + $0x50] sm:$0xff]  ;;  %v459_v50 = vld [vmem:[#allocation7 + $0x48] sm:$0xff]  ;;  %v360_v4 = vmul.f32 %v4437_v45, %v4437_v45  ;;  %s4487_s30 = scalar_select %p279_p8, %s4476_s27, 1 }
  0x60   :  { %3607 = vmatprep.subr.bf16.mxu0 %v3606_v38  ;;  %v456_v49 = vld [vmem:[#allocation7 + $0x30] sm:$0xff]  ;;  %v3610_v52 = vpack.c.bf16 %v460_v48, %v457_v47  ;;  %v458_v54 = vld [vmem:[#allocation7 + $0x40] sm:$0xff]  ;;  %v461_v55 = vld [vmem:[#allocation7 + $0x58] sm:$0xff]  ;;  %s109_s26 = scvt.s32.f32 %s4469_s25 }
  0x61   :  { %3609 = vmatpush1.bf16.msra.mxu0 %v3608_v43  ;;  %3639 = vmatprep.subr.bf16.mxu1 %v3638_v46  ;;  %v3612_v53 = vpack.c.bf16 %v459_v50, %v456_v49  ;;  %v4442_v56 = vld [vmem:[#allocation4 + $0xa0] sm:$0xff]  ;;  %v3642_v57 = vpack.c.bf16 %v461_v55, %v458_v54  ;;  %v463_v58 = vld [vmem:[#allocation7 + $0x68] sm:$0xff]  ;;  %v465_v62 = vld [vmem:[#allocation7 + $0x78] sm:$0xff] }
  0x62   :  { %3641 = vmatpush3.bf16.msra.mxu1 %v3638_v46  ;;  %3611 = vmatprep.subr.bf16.mxu0 %v3610_v52  ;;  %v466_v59 = vld [vmem:[#allocation7 + $0x80] sm:$0xff]  ;;  %v464_v63 = vld [vmem:[#allocation7 + $0x70] sm:$0xff]  ;;  %v477_v39 = vld [vmem:[#allocation7 + $0xd8] sm:$0xff]  ;;  %s135_s0 = smul.f32 128.0, %s109_s26 }
  0x63   :  { %196 = vadd.xlane.f32.xlu0 %v182_v6  ;;  %144 = vadd.xlane.f32.xlu1 %v4362_v7  ;;  %v3614_v60 = vpack.c.bf16 %v466_v59, %v463_v58  ;;  %v462_v61 = vld [vmem:[#allocation7 + $0x60] sm:$0xff]  ;;  %v467_v6 = vld [vmem:[#allocation7 + $0x88] sm:$0xff]  ;;  %v476_v40 = vld [vmem:[#allocation7 + $0xd0] sm:$0xff] }
  0x64   :  { %3643 = vmatprep.subr.bf16.mxu1 %v3642_v57  ;;  %v3616_v5 = vpack.c.bf16 %v465_v62, %v462_v61  ;;  %v478_v36 = vld [vmem:[#allocation7 + $0xe0] sm:$0xff]  ;;  %v479_v43 = vld [vmem:[#allocation7 + $0xe8] sm:$0xff]  ;;  %v4457_v44 = vld [vmem:[#allocation4 + $0xb8] sm:$0xff] }
  0x65   :  { %3613 = vmatpush1.bf16.msra.mxu0 %v3612_v53  ;;  %v474_v38 = vld [vmem:[#allocation7 + $0xc0] sm:$0xff]  ;;  %v3654_v46 = vpack.c.bf16 %v479_v43, %v476_v40  ;;  %v481_v47 = vld [vmem:[#allocation7 + $0xf8] sm:$0xff]  ;;  %v484_v48 = vld [vmem:[#allocation7 + $0x110] sm:$0xff]  ;;  %v364_v54 = vmul.f32 %v4457_v44, %v4457_v44 }
  0x66   :  { %3645 = vmatpush3.bf16.msra.mxu1 %v3642_v57  ;;  %3615 = vmatprep.subr.bf16.mxu0 %v3614_v60  ;;  %v3626_v49 = vpack.c.bf16 %v484_v48, %v481_v47  ;;  %v480_v50 = vld [vmem:[#allocation7 + $0xf0] sm:$0xff]  ;;  %v482_v52 = vld [vmem:[#allocation7 + $0x100] sm:$0xff]  ;;  %v485_v57 = vld [vmem:[#allocation7 + $0x118] sm:$0xff] }
  0x67   :  { %198 = vadd.xlane.f32.xlu0 %v183_v8  ;;  %146 = vadd.xlane.f32.xlu1 %v4367_v9  ;;  %v4447_v8 = vld [vmem:[#allocation4 + $0xa8] sm:$0xff]  ;;  %v3658_v58 = vpack.c.bf16 %v485_v57, %v482_v52  ;;  %v490_v60 = vld [vmem:[#allocation7 + $0x140] sm:$0xff] }
  0x68   :  { %v362_v41 = vmul.f32 %v4447_v8, %v4447_v8  ;;  %v487_v59 = vld [vmem:[#allocation7 + $0x128] sm:$0xff]  ;;  %v486_v62 = vld [vmem:[#allocation7 + $0x120] sm:$0xff] }
  0x69   :  { %3617 = vmatpush1.bf16.msra.mxu0 %v3616_v5  ;;  %v3630_v61 = vpack.c.bf16 %v490_v60, %v487_v59 }
  0x6b   :  { %200 = vadd.xlane.f32.xlu0 %v184_v10  ;;  %148 = vadd.xlane.f32.xlu1 %v4372_v11  ;;  %v3646_v10 = vpack.c.bf16 %v467_v6, %v464_v63  ;;  %v489_v63 = vld [vmem:[#allocation7 + $0x138] sm:$0xff]  ;;  %v491_v6 = vld [vmem:[#allocation7 + $0x148] sm:$0xff] }
  0x6c   :  { %v3632_v5 = vpack.c.bf16 %v489_v63, %v486_v62 }
  0x6d   :  { %3647 = vmatprep.subr.bf16.mxu1 %v3646_v10 }
  0x6e   :  { %3649 = vmatpush3.bf16.msra.mxu1 %v3646_v10 }
  0x6f   :  { %202 = vadd.xlane.f32.xlu0 %v185_v12  ;;  %150 = vadd.xlane.f32.xlu1 %v4377_v13  ;;  %v469_v12 = vld [vmem:[#allocation7 + $0x98] sm:$0xff] }
  0x73   :  { %204 = vadd.xlane.f32.xlu0 %v186_v14  ;;  %152 = vadd.xlane.f32.xlu1 %v4382_v15  ;;  %v472_v14 = vld [vmem:[#allocation7 + $0xb0] sm:$0xff] }
  0x77   :  { %206 = vadd.xlane.f32.xlu0 %v187_v16  ;;  %154 = vadd.xlane.f32.xlu1 %v4387_v17  ;;  %v3618_v16 = vpack.c.bf16 %v472_v14, %v469_v12  ;;  %v493_v12 = vld [vmem:[#allocation7 + $0x158] sm:$0xff]  ;;  %v496_v14 = vld [vmem:[#allocation7 + $0x170] sm:$0xff] }
  0x79   :  { %3619 = vmatprep.subr.bf16.mxu0 %v3618_v16  ;;  %v3634_v16 = vpack.c.bf16 %v496_v14, %v493_v12 }
  0x7b   :  { %208 = vadd.xlane.f32.xlu0 %v188_v18  ;;  %156 = vadd.xlane.f32.xlu1 %v4392_v19  ;;  %v468_v18 = vld [vmem:[#allocation7 + $0x90] sm:$0xff] }
  0x7f   :  { %210 = vadd.xlane.f32.xlu0 %v189_v20  ;;  %158 = vadd.xlane.f32.xlu1 %v4397_v21  ;;  %v471_v20 = vld [vmem:[#allocation7 + $0xa8] sm:$0xff] }
  0x83   :  { %212 = vadd.xlane.f32.xlu0 %v190_v22  ;;  %214 = vadd.xlane.f32.xlu1 %v191_v23  ;;  %v470_v22 = vld [vmem:[#allocation7 + $0xa0] sm:$0xff]  ;;  %v361_v23 = vmul.f32 %v4442_v56, %v4442_v56 }
  0x87   :  { %309 = vadd.xlane.f32.xlu0 %v4404_v24  ;;  %311 = vadd.xlane.f32.xlu1 %v4406_v25 }
  0x8b   :  { %313 = vadd.xlane.f32.xlu0 %v4412_v27  ;;  %365 = vadd.xlane.f32.xlu1 %v353_v26  ;;  %v3620_v26 = vpack.c.bf16 %v471_v20, %v468_v18  ;;  %v492_v18 = vld [vmem:[#allocation7 + $0x150] sm:$0xff]  ;;  %v495_v20 = vld [vmem:[#allocation7 + $0x168] sm:$0xff] }
  0x8d   :  { %3621 = vmatpush1.bf16.msra.mxu0 %v3620_v26  ;;  %v497_v26 = vld [vmem:[#allocation7 + $0x178] sm:$0xff] }
  0x8f   :  { %367 = vadd.xlane.f32.xlu0 %v354_v28  ;;  %315 = vadd.xlane.f32.xlu1 %v4417_v29  ;;  %v473_v28 = vld [vmem:[#allocation7 + $0xb8] sm:$0xff] }
  0x93   :  { %369 = vadd.xlane.f32.xlu0 %v355_v30  ;;  %317 = vadd.xlane.f32.xlu1 %v4422_v31  ;;  %v4452_v30 = vld [vmem:[#allocation4 + $0xb0] sm:$0xff] }
  0x94   :  { %v363_v53 = vmul.f32 %v4452_v30, %v4452_v30 }
  0x97   :  { %371 = vadd.xlane.f32.xlu0 %v356_v32  ;;  %319 = vadd.xlane.f32.xlu1 %v4427_v33  ;;  %v3650_v32 = vpack.c.bf16 %v473_v28, %v470_v22  ;;  %v494_v22 = vld [vmem:[#allocation7 + $0x160] sm:$0xff] }
  0x98   :  { %v3666_v28 = vpack.c.bf16 %v497_v26, %v494_v22 }
  0x99   :  { %3651 = vmatprep.subr.bf16.mxu1 %v3650_v32 }
  0x9a   :  { %3653 = vmatpush3.bf16.msra.mxu1 %v3650_v32  ;;  %v4216_v32 = vmov 0.0  }
  0x9b   :  { %373 = vadd.xlane.f32.xlu0 %v357_v34  ;;  %321 = vadd.xlane.f32.xlu1 %v4432_v35  ;;  %v475_v34 = vld [vmem:[#allocation7 + $0xc8] sm:$0xff] }
  0x9c   :  { %v3622_v37 = vpack.c.bf16 %v478_v36, %v475_v34  ;;  %3655 = vmatprep.subr.bf16.mxu1 %v3654_v46  ;;  %562 = vmatprep.mubr.f32.mxu0 %v4216_v32 }
  0x9e   :  { %3623 = vmatprep.subr.bf16.mxu0 %v3622_v37  ;;  %3657 = vmatpush3.bf16.msra.mxu1 %v3654_v46 }
  0x9f   :  { %375 = vadd.xlane.f32.xlu0 %v358_v42  ;;  %323 = vadd.xlane.f32.xlu1 %v4437_v45  ;;  %v3624_v42 = vpack.c.bf16 %v477_v39, %v474_v38 }
  0xa0   :  { %3659 = vmatprep.subr.bf16.mxu1 %v3658_v58 }
  0xa1   :  { %3625 = vmatpush1.bf16.msra.mxu0 %v3624_v42 }
  0xa2   :  { %3627 = vmatprep.subr.bf16.mxu0 %v3626_v49  ;;  %3661 = vmatpush3.bf16.msra.mxu1 %v3658_v58 }
  0xa3   :  { %377 = vadd.xlane.f32.xlu0 %v359_v51  ;;  %325 = vadd.xlane.f32.xlu1 %v4442_v56  ;;  %v483_v51 = vld [vmem:[#allocation7 + $0x108] sm:$0xff] }
  0xa4   :  { %v3628_v55 = vpack.c.bf16 %v483_v51, %v480_v50 }
  0xa6   :  { %3629 = vmatpush1.bf16.msra.mxu0 %v3628_v55 }
  0xa7   :  { %379 = vadd.xlane.f32.xlu0 %v360_v4  ;;  %327 = vadd.xlane.f32.xlu1 %v4447_v8  ;;  %v488_v4 = vld [vmem:[#allocation7 + $0x130] sm:$0xff] }
  0xa8   :  { %3631 = vmatprep.subr.bf16.mxu0 %v3630_v61  ;;  %v3662_v10 = vpack.c.bf16 %v491_v6, %v488_v4 }
  0xaa   :  { %3633 = vmatpush1.bf16.msra.mxu0 %v3632_v5  ;;  %3663 = vmatprep.subr.bf16.mxu1 %v3662_v10 }
  0xab   :  { %381 = vadd.xlane.f32.xlu0 %v361_v23  ;;  %329 = vadd.xlane.f32.xlu1 %v4452_v30  ;;  %v3636_v23 = vpack.c.bf16 %v495_v20, %v492_v18 }
  0xac   :  { %3665 = vmatpush3.bf16.msra.mxu1 %v3662_v10  ;;  %3635 = vmatprep.subr.bf16.mxu0 %v3634_v16 }
  0xad   :  { %3667 = vmatprep.subr.bf16.mxu1 %v3666_v28 }
  0xae   :  { %3637 = vmatpush1.bf16.msra.mxu0 %v3636_v23 }
  0xaf   :  { %383 = vadd.xlane.f32.xlu0 %v362_v41  ;;  %331 = vadd.xlane.f32.xlu1 %v4457_v44 }
  0xb0   :  { %3669 = vmatpush3.bf16.msra.mxu1 %v3666_v28 }
  0xb3   :  { %385 = vadd.xlane.f32.xlu0 %v363_v53  ;;  %387 = vadd.xlane.f32.xlu1 %v364_v54 }
  0xe4   :  { %v141_v34 = vpop.xlane.xlu1 %140  ;;  %v137_v36 = vpop.xlane.xlu0 %136 }
  0xe8   :  { %v143_v37 = vpop.xlane.xlu1 %142  ;;  %v139_v38 = vpop.xlane.xlu0 %138 }
  0xe9   :  { %v160_v47 = vadd.f32 %v139_v38, %v137_v36 }
  0xeb   :  { %v161_v50 = vadd.f32 %v160_v47, %v141_v34  ;;  %v177_v34 = vstv %s135_s0 }
  0xec   :  { %v195_v39 = vpop.xlane.xlu0 %194  ;;  %v193_v40 = vpop.xlane.xlu1 %192  ;;  %3881 = vrcp.f32 %v177_v34 }
  0xed   :  { %v162_v53 = vadd.f32 %v161_v50, %v143_v37  ;;  %v216_v54 = vadd.f32 %v195_v39, %v193_v40 }
  0xf0   :  { %v197_v41 = vpop.xlane.xlu0 %196  ;;  %v145_v42 = vpop.xlane.xlu1 %144 }
  0xf1   :  { %v163_v55 = vadd.f32 %v162_v53, %v145_v42  ;;  %v217_v59 = vadd.f32 %v216_v54, %v197_v41 }
  0xf4   :  { %v199_v43 = vpop.xlane.xlu0 %198  ;;  %v147_v46 = vpop.xlane.xlu1 %146 }
  0xf5   :  { %v164_v60 = vadd.f32 %v163_v55, %v147_v46  ;;  %v218_v61 = vadd.f32 %v217_v59, %v199_v43 }
  0xf6   :  { %v4472_v59 = vpop.eup %3881 }
  0xf7   :  { %5863 = vst [vmem:[#allocation18_spill] sm:$0xff] %v4472_v59 }
  0xf8   :  { %v201_v48 = vpop.xlane.xlu0 %200  ;;  %v149_v49 = vpop.xlane.xlu1 %148 }
  0xf9   :  { %v165_v62 = vadd.f32 %v164_v60, %v149_v49  ;;  %v219_v5 = vadd.f32 %v218_v61, %v201_v48  ;;  %v1309_v48 = vstv %s109_s26 }
  0xfa   :  { %3883 = vrsqrt.f32 %v1309_v48  ;;  %vm1312_vm0 = vcmp.eq.f32.partialorder %v1309_v48, inf  ;;  %vm1314_vm1 = vcmp.eq.f32.partialorder %v1309_v48, 0.0 }
  0xfc   :  { %v203_v51 = vpop.xlane.xlu0 %202  ;;  %v151_v52 = vpop.xlane.xlu1 %150 }
  0xfd   :  { %v166_v6 = vadd.f32 %v165_v62, %v151_v52  ;;  %v220_v10 = vadd.f32 %v219_v5, %v203_v51 }
 0x100   :  { %v205_v57 = vpop.xlane.xlu0 %204  ;;  %v153_v58 = vpop.xlane.xlu1 %152 }
 0x101   :  { %v167_v12 = vadd.f32 %v166_v6, %v153_v58  ;;  %v221_v18 = vadd.f32 %v220_v10, %v205_v57 }
 0x104   :  { %v207_v63 = vpop.xlane.xlu0 %206  ;;  %v155_v4 = vpop.xlane.xlu1 %154 }
 0x105   :  { %v168_v20 = vadd.f32 %v167_v12, %v155_v4  ;;  %v222_v22 = vadd.f32 %v221_v18, %v207_v63  ;;  %v1315_v18 = vand.u32 2147483648, %v1309_v48 }
 0x108   :  { %v209_v14 = vpop.xlane.xlu0 %208  ;;  %v157_v16 = vpop.xlane.xlu1 %156 }
 0x109   :  { %v169_v23 = vadd.f32 %v168_v20, %v157_v16  ;;  %v223_v36 = vadd.f32 %v222_v22, %v209_v14  ;;  %v3884_v16 = vpop.eup %3883 }
 0x10a   :  { %v1311_v22 = vmul.f32 %v3884_v16, %v1309_v48 }
 0x10c   :  { %v211_v26 = vpop.xlane.xlu0 %210  ;;  %v159_v28 = vpop.xlane.xlu1 %158 }
 0x10d   :  { %v170_v37 = vadd.f32 %v169_v23, %v159_v28  ;;  %v224_v38 = vadd.f32 %v223_v36, %v211_v26 }
 0x10f   :  { %v171_v39 = vrot.slane %v170_v37, 4 }
 0x110   :  { %v213_v40 = vpop.xlane.xlu0 %212  ;;  %v215_v41 = vpop.xlane.xlu1 %214 }
 0x111   :  { %v172_v42 = vadd.f32 %v171_v39, %v170_v37  ;;  %v225_v43 = vadd.f32 %v224_v38, %v213_v40  ;;  %v1313_v38 = vsel %vm1312_vm0, %v1309_v48, %v1311_v22 }
 0x112   :  { %v1316_v39 = vsel %vm1314_vm1, %v1315_v18, %v1313_v38 }
 0x113   :  { %v173_v46 = vrot.slane %v172_v42, 2  ;;  %v226_v47 = vadd.f32 %v225_v43, %v215_v41  ;;  %3862 = vpush %v1316_v39 }
 0x114   :  { %v310_v49 = vpop.xlane.xlu0 %309  ;;  %v312_v50 = vpop.xlane.xlu1 %311 }
 0x115   :  { %v174_v51 = vadd.f32 %v173_v46, %v172_v42  ;;  %v227_v52 = vrot.slane %v226_v47, 4  ;;  %v333_v53 = vadd.f32 %v312_v50, %v310_v49  ;;  %v90_v49 = vlaneseq }
 0x117   :  { %v175_v54 = vrot.slane %v174_v51, 1  ;;  %v228_v55 = vadd.f32 %v227_v52, %v226_v47  ;;  %v4479_v48 = vshrl.u32 %v90_v49, 7 }
 0x118   :  { %v314_v57 = vpop.xlane.xlu0 %313  ;;  %v366_v58 = vpop.xlane.xlu1 %365 }
 0x119   :  { %v176_v60 = vadd.f32 %v175_v54, %v174_v51  ;;  %v229_v61 = vrot.slane %v228_v55, 2  ;;  %v334_v62 = vadd.f32 %v333_v53, %v314_v57  ;;  %5864 = vst [vmem:[#allocation19_spill] sm:$0xff] %v4479_v48 }
 0x11b   :  { %v230_v63 = vadd.f32 %v229_v61, %v228_v55  ;;  %v179_v4 = vmul.f32 %v4472_v59, %v176_v60  ;;  %v4484_v60 = vld [vmem:[%s5799_s4] sm:$0x1]  ;;  %v4490_v61 = vsub.s32 0, %v4479_v48  ;;  %s281_s4 = scvt.s32.f32 %s4487_s30 }
 0x11c   :  { %v368_v5 = vpop.xlane.xlu0 %367  ;;  %v316_v6 = vpop.xlane.xlu1 %315 }
 0x11d   :  { %v231_v10 = vrot.slane %v230_v63, 1  ;;  %v389_v12 = vadd.f32 %v368_v5, %v366_v58  ;;  %v335_v14 = vadd.f32 %v334_v62, %v316_v6  ;;  %v234_v23 = vmul.f32 %v179_v4, %v179_v4  ;;  %5865 = vst [vmem:[#allocation20_spill] sm:$0xff] %v4490_v61  ;;  %s308_s13 = smul.f32 128.0, %s281_s4 }
 0x11f   :  { %v232_v20 = vadd.f32 %v231_v10, %v230_v63 }
 0x120   :  { %v370_v26 = vpop.xlane.xlu0 %369  ;;  %v318_v28 = vpop.xlane.xlu1 %317 }
 0x121   :  { %v233_v34 = vmul.f32 %v4472_v59, %v232_v20  ;;  %v390_v36 = vadd.f32 %v389_v12, %v370_v26  ;;  %v336_v37 = vadd.f32 %v335_v14, %v318_v28  ;;  %v4496_v14 = vld [vmem:[%s5800_s5] sm:$0x1] }
 0x123   :  { %v235_v40 = vsub.f32 %v233_v34, %v234_v23 }
 0x124   :  { %v372_v41 = vpop.xlane.xlu0 %371  ;;  %v320_v42 = vpop.xlane.xlu1 %319 }
 0x125   :  { %v236_v43 = vadd.f32 1e-05, %v235_v40  ;;  %v391_v46 = vadd.f32 %v390_v36, %v372_v41  ;;  %v337_v47 = vadd.f32 %v336_v37, %v320_v42 }
 0x127   :  { %3885 = vrsqrt.f32 %v236_v43 }
 0x128   :  { %v374_v50 = vpop.xlane.xlu0 %373  ;;  %v322_v51 = vpop.xlane.xlu1 %321 }
 0x129   :  { %v392_v52 = vadd.f32 %v391_v46, %v374_v50  ;;  %v338_v53 = vadd.f32 %v337_v47, %v322_v51  ;;  %v350_v46 = vstv %s308_s13 }
 0x12a   :  { %3887 = vrcp.f32 %v350_v46 }
 0x12c   :  { %v376_v54 = vpop.xlane.xlu0 %375  ;;  %v324_v55 = vpop.xlane.xlu1 %323 }
 0x12d   :  { %v393_v57 = vadd.f32 %v392_v52, %v376_v54  ;;  %v339_v58 = vadd.f32 %v338_v53, %v324_v55 }
 0x130   :  { %v378_v62 = vpop.xlane.xlu0 %377  ;;  %v326_v63 = vpop.xlane.xlu1 %325 }
 0x131   :  { %v3886_v5 = vpop.eup %3885  ;;  %v394_v6 = vadd.f32 %v393_v57, %v378_v62  ;;  %v340_v10 = vadd.f32 %v339_v58, %v326_v63 }
 0x132   :  { %v238_v12 = vmul.f32 %v3886_v5, %v4484_v60 }
 0x134   :  { %v239_v16 = vmul.f32 %v238_v12, %v179_v4  ;;  %v4500_v18 = vrot.slane %v238_v12, %v4490_v61  ;;  %v380_v20 = vpop.xlane.xlu0 %379  ;;  %v328_v22 = vpop.xlane.xlu1 %327 }
 0x135   :  { %v395_v23 = vadd.f32 %v394_v6, %v380_v20  ;;  %v341_v26 = vadd.f32 %v340_v10, %v328_v22 }
 0x136   :  { %v240_v28 = vsub.f32 %v4496_v14, %v239_v16  ;;  %v247_v38 = vmul.f32 %v4500_v18, %v4346_v1  ;;  %v248_v4 = vmul.f32 %v4500_v18, %v4352_v3  ;;  %v249_v43 = vmul.f32 %v4500_v18, %v4344_v0 }
 0x137   :  { %v250_v3 = vmul.f32 %v4500_v18, %v4350_v2  ;;  %v251_v0 = vmul.f32 %v4500_v18, %v4362_v7  ;;  %v252_v2 = vmul.f32 %v4500_v18, %v4367_v9  ;;  %v253_v7 = vmul.f32 %v4500_v18, %v4372_v11 }
 0x138   :  { %v4506_v34 = vrot.slane %v240_v28, %v4490_v61  ;;  %v382_v36 = vpop.xlane.xlu0 %381  ;;  %v330_v37 = vpop.xlane.xlu1 %329  ;;  %v254_v20 = vmul.f32 %v4500_v18, %v4377_v13  ;;  %v255_v9 = vmul.f32 %v4500_v18, %v4382_v15  ;;  %v256_v13 = vmul.f32 %v4500_v18, %v4387_v17 }
 0x139   :  { %v396_v39 = vadd.f32 %v395_v23, %v382_v36  ;;  %v342_v40 = vadd.f32 %v341_v26, %v330_v37  ;;  %v4537_v26 = vpop.eup %3887  ;;  %v257_v15 = vmul.f32 %v4500_v18, %v4392_v19 }
 0x13a   :  { %v265_v41 = vadd.f32 %v4506_v34, %v247_v38  ;;  %v266_v42 = vadd.f32 %v4506_v34, %v248_v4  ;;  %v267_v50 = vadd.f32 %v4506_v34, %v249_v43  ;;  %v268_v53 = vadd.f32 %v4506_v34, %v250_v3  ;;  %5866 = vst [vmem:[#allocation21_spill] sm:$0xff] %v4537_v26 }
 0x13b   :  { %v269_v57 = vadd.f32 %v4506_v34, %v251_v0  ;;  %v270_v6 = vadd.f32 %v4506_v34, %v252_v2  ;;  %v271_v10 = vadd.f32 %v4506_v34, %v253_v7  ;;  %v272_v23 = vadd.f32 %v4506_v34, %v254_v20 }
 0x13c   :  { %v384_v47 = vpop.xlane.xlu0 %383  ;;  %563 = vmatmul.mubr.f32.vlgmr.msra.gmra.mrb[0].mxu0 %v265_v41  ;;  %3238 = vmatprep.mubr.f32.mxu1 %v265_v41  ;;  %v332_v49 = vpop.xlane.xlu1 %331  ;;  %v273_v28 = vadd.f32 %v4506_v34, %v255_v9 }
 0x13d   :  { %v397_v1 = vadd.f32 %v396_v39, %v384_v47  ;;  %3239 = vmatmul.mubr.f32.vlgmr.msra.gmra.mrb[0].mxu1 %v266_v42  ;;  %v343_v51 = vadd.f32 %v342_v40, %v332_v49  ;;  %568 = vmatprep.mubr.f32.mxu0 %v4216_v32  ;;  %v274_v39 = vadd.f32 %v4506_v34, %v256_v13 }
 0x13e   :  { %3241 = vmatprep.mubr.f32.mxu1 %v267_v50  ;;  %v275_v40 = vadd.f32 %v4506_v34, %v257_v15 }
 0x13f   :  { %v344_v52 = vrot.slane %v343_v51, 4 }
 0x140   :  { %v386_v54 = vpop.xlane.xlu0 %385  ;;  %569 = vmatmul.mubr.f32.gmra.mrb[2].mxu0 %v266_v42  ;;  %v388_v55 = vpop.xlane.xlu1 %387  ;;  %v258_v42 = vmul.f32 %v4500_v18, %v4397_v21 }
 0x141   :  { %v345_v58 = vadd.f32 %v344_v52, %v343_v51  ;;  %v398_v62 = vadd.f32 %v397_v1, %v386_v54  ;;  %3242 = vmatmul.mubr.f32.gmra.mrb[2].mxu1 %v268_v53  ;;  %574 = vmatprep.mubr.f32.mxu0 %v4216_v32 }
 0x142   :  { %3244 = vmatprep.mubr.f32.mxu1 %v269_v57  ;;  %v276_v19 = vadd.f32 %v4506_v34, %v258_v42 }
 0x143   :  { %v346_v63 = vrot.slane %v345_v58, 2  ;;  %v399_v5 = vadd.f32 %v398_v62, %v388_v55 }
 0x144   :  { %575 = vmatmul.mubr.f32.gmra.mrb[4].mxu0 %v267_v50  ;;  %s3863_s5 = spop %3862 }
 0x145   :  { %v347_v12 = vadd.f32 %v346_v63, %v345_v58  ;;  %v400_v16 = vrot.slane %v399_v5, 4  ;;  %3245 = vmatmul.mubr.f32.gmra.mrb[4].mxu1 %v270_v6  ;;  %580 = vmatprep.mubr.f32.mxu0 %v4216_v32  ;;  %v1318_v50 = vstv %s3863_s5 }
 0x146   :  { %3247 = vmatprep.mubr.f32.mxu1 %v271_v10  ;;  %3889 = vrcp.f32 %v1318_v50 }
 0x147   :  { %v348_v11 = vrot.slane %v347_v12, 1  ;;  %v401_v22 = vadd.f32 %v400_v16, %v399_v5 }
 0x148   :  { %581 = vmatmul.mubr.f32.gmra.mrb[6].mxu0 %v268_v53 }
 0x149   :  { %v349_v36 = vadd.f32 %v348_v11, %v347_v12  ;;  %v402_v37 = vrot.slane %v401_v22, 2  ;;  %3248 = vmatmul.mubr.f32.gmra.mrb[6].mxu1 %v272_v23  ;;  %586 = vmatprep.mubr.f32.mxu0 %v4216_v32 }
 0x14a   :  { %3250 = vmatprep.mubr.f32.mxu1 %v273_v28 }
 0x14b   :  { %v352_v38 = vmul.f32 %v4537_v26, %v349_v36  ;;  %v403_v4 = vadd.f32 %v402_v37, %v401_v22 }
 0x14c   :  { %587 = vmatmul.mubr.f32.gmra.mrb[8].mxu0 %v269_v57 }
 0x14d   :  { %v404_v41 = vrot.slane %v403_v4, 1  ;;  %3251 = vmatmul.mubr.f32.gmra.mrb[8].mxu1 %v274_v39  ;;  %592 = vmatprep.mubr.f32.mxu0 %v4216_v32  ;;  %v407_v17 = vmul.f32 %v352_v38, %v352_v38 }
 0x14e   :  { %3253 = vmatprep.mubr.f32.mxu1 %v275_v40 }
 0x14f   :  { %v405_v43 = vadd.f32 %v404_v41, %v403_v4 }
 0x150   :  { %593 = vmatmul.mubr.f32.gmra.mrb[10].mxu0 %v270_v6  ;;  %v3890_v21 = vpop.eup %3889 }
 0x151   :  { %v406_v46 = vmul.f32 %v4537_v26, %v405_v43  ;;  %3254 = vmatmul.mubr.f32.gmra.mrb[10].mxu1 %v276_v19  ;;  %598 = vmatprep.mubr.f32.mxu0 %v4216_v32  ;;  %3864 = vpush %v3890_v21 }
 0x153   :  { %v408_v47 = vsub.f32 %v406_v46, %v407_v17 }
 0x154   :  { %599 = vmatmul.mubr.f32.gmra.mrb[12].mxu0 %v271_v10 }
 0x155   :  { %v409_v49 = vadd.f32 1e-05, %v408_v47  ;;  %604 = vmatprep.mubr.f32.mxu0 %v4216_v32 }
 0x157   :  { %3891 = vrsqrt.f32 %v409_v49 }
 0x158   :  { %605 = vmatmul.mubr.f32.gmra.mrb[14].mxu0 %v272_v23 }
 0x159   :  { %610 = vmatprep.mubr.f32.mxu0 %v4216_v32 }
 0x15c   :  { %611 = vmatmul.mubr.f32.gmra.mrb[16].mxu0 %v273_v28 }
 0x15d   :  { %616 = vmatprep.mubr.f32.mxu0 %v4216_v32 }
 0x160   :  { %617 = vmatmul.mubr.f32.gmra.mrb[18].mxu0 %v274_v39 }
 0x161   :  { %v3892_v18 = vpop.eup %3891  ;;  %622 = vmatprep.mubr.f32.mxu0 %v4216_v32 }
 0x162   :  { %v411_v34 = vmul.f32 %v3892_v18, %v4484_v60 }
 0x164   :  { %v412_v1 = vmul.f32 %v411_v34, %v352_v38  ;;  %v418_v51 = vrot.slane %v411_v34, %v4490_v61  ;;  %623 = vmatmul.mubr.f32.gmra.mrb[20].mxu0 %v275_v40  ;;  %v4608_v34 = vstv %s4465_s8 }
 0x165   :  { %628 = vmatprep.mubr.f32.mxu0 %v4216_v32  ;;  %5867 = vst [vmem:[#allocation22_spill] sm:$0xff] %v4608_v34  ;;  %vm111_vm4 = vcmp.lt.s32.totalorder %v4479_v48, %v4608_v34 }
 0x166   :  { %v413_v3 = vsub.f32 %v4496_v14, %v412_v1  ;;  %v420_v0 = vmul.f32 %v418_v51, %v4404_v24  ;;  %v421_v53 = vmul.f32 %v418_v51, %v4406_v25  ;;  %v422_v54 = vmul.f32 %v418_v51, %v4412_v27 }
 0x167   :  { %v423_v57 = vmul.f32 %v418_v51, %v4417_v29  ;;  %v424_v14 = vmul.f32 %v418_v51, %v4422_v31  ;;  %v425_v25 = vmul.f32 %v418_v51, %v4427_v33  ;;  %v426_v62 = vmul.f32 %v418_v51, %v4432_v35 }
 0x168   :  { %v436_v52 = vrot.slane %v413_v3, %v4490_v61  ;;  %629 = vmatmul.mubr.f32.gmra.mrb[22].mxu0 %v276_v19  ;;  %v427_v2 = vmul.f32 %v418_v51, %v4437_v45  ;;  %v428_v7 = vmul.f32 %v418_v51, %v4442_v56  ;;  %v429_v63 = vmul.f32 %v418_v51, %v4447_v8 }
 0x169   :  { %634 = vmatprep.mubr.f32.mxu0 %v4216_v32  ;;  %v430_v5 = vmul.f32 %v418_v51, %v4452_v30  ;;  %v431_v6 = vmul.f32 %v418_v51, %v4457_v44  ;;  %v1833_v8 = vstv %s281_s4 }
 0x16a   :  { %v438_v60 = vadd.f32 %v436_v52, %v420_v0  ;;  %v439_v55 = vadd.f32 %v436_v52, %v421_v53  ;;  %v440_v58 = vadd.f32 %v436_v52, %v422_v54  ;;  %v441_v24 = vadd.f32 %v436_v52, %v423_v57  ;;  %v892_v57 = vld [vmem:[#allocation10] sm:$0xff] }
 0x16b   :  { %v442_v27 = vadd.f32 %v436_v52, %v424_v14  ;;  %v443_v29 = vadd.f32 %v436_v52, %v425_v25  ;;  %v444_v31 = vadd.f32 %v436_v52, %v426_v62  ;;  %v445_v33 = vadd.f32 %v436_v52, %v427_v2 }
 0x16c   :  { %635 = vmatmul.mubr.f32.gmra.mrb[24].mxu0 %v438_v60  ;;  %3256 = vmatprep.mubr.f32.mxu1 %v438_v60  ;;  %v446_v35 = vadd.f32 %v436_v52, %v428_v7  ;;  %v447_v45 = vadd.f32 %v436_v52, %v429_v63  ;;  %v448_v56 = vadd.f32 %v436_v52, %v430_v5  ;;  %3893 = vrsqrt.f32 %v1833_v8 }
 0x16d   :  { %640 = vmatprep.mubr.f32.mxu0 %v4216_v32  ;;  %3257 = vmatmul.mubr.f32.gmra.mrb[12].mxu1 %v439_v55  ;;  %v449_v10 = vadd.f32 %v436_v52, %v431_v6  ;;  %vm1836_vm2 = vcmp.eq.f32.partialorder %v1833_v8, inf  ;;  %v1839_v12 = vand.u32 2147483648, %v1833_v8  ;;  %vm1838_vm3 = vcmp.eq.f32.partialorder %v1833_v8, 0.0  ;;  %v895_v6 = vld [vmem:[#allocation10 + $0x18] sm:$0xff] }
 0x16e   :  { %3259 = vmatprep.mubr.f32.mxu1 %v440_v58  ;;  %v4613_v0 = vadd.s32 32, %v4479_v48  ;;  %v4622_v60 = vadd.s32 8, %v4479_v48  ;;  %v4638_v7 = vadd.s32 16, %v4479_v48  ;;  %v4649_v5 = vadd.s32 48, %v4479_v48 }
 0x170   :  { %641 = vmatmul.mubr.f32.gmra.mrb[26].mxu0 %v439_v55  ;;  %5868 = vst [vmem:[#allocation23_spill] sm:$0xff] %v4613_v0  ;;  %5869 = vst [vmem:[#allocation24_spill] sm:$0xff] %v4622_v60  ;;  %vm115_vm5 = vcmp.lt.s32.totalorder %v4613_v0, %v4608_v34  ;;  %vm112_vm6 = vcmp.lt.s32.totalorder %v4622_v60, %v4608_v34  ;;  %vm113_vm8 = vcmp.lt.s32.totalorder %v4638_v7, %v4608_v34 }
 0x171   :  { %646 = vmatprep.mubr.f32.mxu0 %v4216_v32  ;;  %3260 = vmatmul.mubr.f32.gmra.mrb[14].mxu1 %v441_v24  ;;  %5871 = vst [vmem:[#allocation26_spill] sm:$0xff] %v4638_v7  ;;  %5872 = vst [vmem:[#allocation27_spill] sm:$0xff] %v4649_v5  ;;  %vm117_vm9 = vcmp.lt.s32.totalorder %v4649_v5, %v4608_v34 }
 0x172   :  { %3262 = vmatprep.mubr.f32.mxu1 %v442_v27 }
 0x174   :  { %647 = vmatmul.mubr.f32.gmra.mrb[28].mxu0 %v440_v58  ;;  %v893_v58 = vld [vmem:[#allocation10 + $0x8] sm:$0xff] }
 0x175   :  { %652 = vmatprep.mubr.f32.mxu0 %v4216_v32  ;;  %3263 = vmatmul.mubr.f32.gmra.mrb[16].mxu1 %v443_v29  ;;  %v3670_v62 = vpack.c.bf16 %v893_v58, %v892_v57  ;;  %v900_v57 = vld [vmem:[#allocation10 + $0x40] sm:$0xff]  ;;  %v901_v58 = vld [vmem:[#allocation10 + $0x48] sm:$0xff] }
 0x176   :  { %3265 = vmatprep.mubr.f32.mxu1 %v444_v31  ;;  %v3894_v30 = vpop.eup %3893 }
 0x177   :  { %v1835_v44 = vmul.f32 %v3894_v30, %v1833_v8  ;;  %3671 = vmatprep.subr.bf16.mxu1 %v3670_v62 }
 0x178   :  { %653 = vmatmul.mubr.f32.gmra.mrb[30].mxu0 %v441_v24  ;;  %3673 = vmatpush3.bf16.msra.mxu1 %v3670_v62  ;;  %v4728_v62 = vadd.s32 72, %v4479_v48 }
 0x179   :  { %658 = vmatprep.mubr.f32.mxu0 %v4216_v32  ;;  %3266 = vmatmul.mubr.f32.gmra.mrb[18].mxu1 %v445_v33  ;;  %v1837_v16 = vsel %vm1836_vm2, %v1833_v8, %v1835_v44 }
 0x17a   :  { %3268 = vmatprep.mubr.f32.mxu1 %v446_v35  ;;  %v1840_v20 = vsel %vm1838_vm3, %v1839_v12, %v1837_v16  ;;  %5876 = vst [vmem:[#allocation31_spill] sm:$0xff] %v4728_v62  ;;  %vm5805_vm13 = vcmp.lt.s32.totalorder %v4728_v62, %v4608_v34 }
 0x17b   :  { %3866 = vpush %v1840_v20 }
 0x17c   :  { %659 = vmatmul.mubr.f32.gmra.mrb[32].mxu0 %v442_v27  ;;  %v4629_v27 = vadd.s32 40, %v4479_v48 }
 0x17d   :  { %664 = vmatprep.mubr.f32.mxu0 %v4216_v32  ;;  %3269 = vmatmul.mubr.f32.gmra.mrb[20].mxu1 %v447_v45 }
 0x17e   :  { %3271 = vmatprep.mubr.f32.mxu1 %v448_v56  ;;  %5870 = vst [vmem:[#allocation25_spill] sm:$0xff] %v4629_v27  ;;  %vm116_vm7 = vcmp.lt.s32.totalorder %v4629_v27, %v4608_v34 }
 0x180   :  { %665 = vmatmul.mubr.f32.gmra.mrb[34].mxu0 %v443_v29 }
 0x181   :  { %670 = vmatprep.mubr.f32.mxu0 %v4216_v32  ;;  %3272 = vmatmul.mubr.f32.gmra.mrb[22].mxu1 %v449_v10 }
 0x182   :  { %s3865_s1 = spop %3864 }
 0x183   :  { %v4589_v22 = vstv %s3865_s1 }
 0x184   :  { %671 = vmatmul.mubr.f32.gmra.mrb[36].mxu0 %v444_v31 }
 0x185   :  { %676 = vmatprep.mubr.f32.mxu0 %v4216_v32 }
 0x188   :  { %677 = vmatmul.mubr.f32.gmra.mrb[38].mxu0 %v445_v33 }
 0x189   :  { %682 = vmatprep.mubr.f32.mxu0 %v4216_v32 }
 0x18c   :  { %683 = vmatmul.mubr.f32.gmra.mrb[40].mxu0 %v446_v35 }
 0x18d   :  { %688 = vmatprep.mubr.f32.mxu0 %v4216_v32 }
 0x190   :  { %689 = vmatmul.mubr.f32.gmra.mrb[42].mxu0 %v447_v45  ;;  %v894_v45 = vld [vmem:[#allocation10 + $0x10] sm:$0xff] }
 0x191   :  { %694 = vmatprep.mubr.f32.mxu0 %v4216_v32  ;;  %v3674_v44 = vpack.c.bf16 %v895_v6, %v894_v45  ;;  %v4738_v45 = vadd.s32 80, %v4479_v48  ;;  %v902_v6 = vld [vmem:[#allocation10 + $0x50] sm:$0xff] }
 0x193   :  { %3675 = vmatprep.subr.bf16.mxu1 %v3674_v44  ;;  %5877 = vst [vmem:[#allocation32_spill] sm:$0xff] %v4738_v45  ;;  %vm121_vm14 = vcmp.lt.s32.totalorder %v4738_v45, %v4608_v34 }
 0x194   :  { %695 = vmatmul.mubr.f32.gmra.mrb[44].mxu0 %v448_v56  ;;  %3677 = vmatpush3.bf16.msra.mxu1 %v3674_v44 }
 0x195   :  { %700 = vmatprep.mubr.f32.mxu0 %v4216_v32 }
 0x198   :  { %701 = vmatmul.mubr.f32.gmra.mrb[46].mxu0 %v449_v10 }
 0x1ac   :  { %s3867_s12 = spop %3866 }
 0x1ad   :  { %v1842_v9 = vstv %s3867_s12 }
 0x1ae   :  { %3895 = vrcp.f32 %v1842_v9 }
 0x1b8   :  { %v3896_v11 = vpop.eup %3895 }
 0x1b9   :  { %3868 = vpush %v3896_v11  ;;  %v4668_v11 = vadd.s32 24, %v4479_v48 }
 0x1bb   :  { %5873 = vst [vmem:[#allocation28_spill] sm:$0xff] %v4668_v11  ;;  %vm114_vm10 = vcmp.lt.s32.totalorder %v4668_v11, %v4608_v34 }
 0x1ea   :  { %s3869_s14 = spop %3868 }
 0x20f   :  { %v564_v23 = vpop.f32.mrb[0].mxu0 }
 0x210   :  { %v4591_v28 = vmul.f32 0.17677669, %v564_v23  ;;  %v566_v36 = vpop.f32.mrb[1].mxu0  ;;  %v3240_v37 = vpop.f32.mrb[0].mxu1 }
 0x211   :  { %v1322_v13 = vmul.f32 %v4589_v22, %v566_v36  ;;  %v773_v15 = vpop.f32.mrb[1].mxu1 }
 0x212   :  { %v3702_v38 = vpack.c.bf16 %v3240_v37, %v773_v15  ;;  %932 = vmax.xlane.f32.xlu0 %v4591_v28  ;;  %v896_v37 = vld [vmem:[#allocation10 + $0x20] sm:$0xff] }
 0x213   :  { %v570_v32 = vpop.f32.mrb[2].mxu0  ;;  %v4635_v31 = vsel %vm111_vm4, %v1322_v13, -1e+30  ;;  %v897_v13 = vld [vmem:[#allocation10 + $0x28] sm:$0xff] }
 0x214   :  { %v4595_v4 = vmul.f32 0.17677669, %v570_v32  ;;  %v572_v39 = vpop.f32.mrb[3].mxu0  ;;  %v3243_v40 = vpop.f32.mrb[2].mxu1  ;;  %3703 = vmatprep.subr.bf16.mxu0 %v3702_v38 }
 0x215   :  { %v4598_v41 = vmul.f32 %v4589_v22, %v572_v39  ;;  %v783_v42 = vpop.f32.mrb[3].mxu1  ;;  %3705 = vmatpush3.bf16.msra.mxu0 %v3702_v38  ;;  %v4682_v39 = vadd.s32 56, %v4479_v48 }
 0x216   :  { %v3706_v17 = vpack.c.bf16 %v3243_v40, %v783_v42  ;;  %934 = vmax.xlane.f32.xlu1 %v4595_v4  ;;  %v3678_v40 = vpack.c.bf16 %v897_v13, %v896_v37  ;;  %v905_v13 = vld [vmem:[#allocation10 + $0x68] sm:$0xff] }
 0x217   :  { %v576_v43 = vpop.f32.mrb[4].mxu0  ;;  %v4662_v20 = vsel %vm112_vm6, %v4598_v41, -1e+30  ;;  %5874 = vst [vmem:[#allocation29_spill] sm:$0xff] %v4682_v39  ;;  %vm118_vm11 = vcmp.lt.s32.totalorder %v4682_v39, %v4608_v34 }
 0x218   :  { %v4601_v19 = vmul.f32 0.17677669, %v576_v43  ;;  %v578_v46 = vpop.f32.mrb[5].mxu0  ;;  %v3246_v47 = vpop.f32.mrb[4].mxu1  ;;  %3707 = vmatprep.subr.bf16.mxu0 %v3706_v17  ;;  %3679 = vmatprep.subr.bf16.mxu1 %v3678_v40 }
 0x219   :  { %v4604_v49 = vmul.f32 %v4589_v22, %v578_v46  ;;  %v793_v50 = vpop.f32.mrb[5].mxu1  ;;  %3709 = vmatpush3.bf16.msra.mxu0 %v3706_v17  ;;  %v4700_v46 = vadd.s32 64, %v4479_v48  ;;  %3681 = vmatpush3.bf16.msra.mxu1 %v3678_v40 }
 0x21a   :  { %v3710_v21 = vpack.c.bf16 %v3246_v47, %v793_v50  ;;  %936 = vmax.xlane.f32.xlu0 %v4601_v19  ;;  %v898_v47 = vld [vmem:[#allocation10 + $0x30] sm:$0xff]  ;;  %v899_v50 = vld [vmem:[#allocation10 + $0x38] sm:$0xff] }
 0x21b   :  { %v582_v18 = vpop.f32.mrb[6].mxu0  ;;  %v4689_v42 = vsel %vm113_vm8, %v4604_v49, -1e+30  ;;  %5875 = vst [vmem:[#allocation30_spill] sm:$0xff] %v4700_v46  ;;  %vm119_vm12 = vcmp.lt.s32.totalorder %v4700_v46, %v4608_v34 }
 0x21c   :  { %v4610_v1 = vmul.f32 0.17677669, %v582_v18  ;;  %v584_v51 = vpop.f32.mrb[7].mxu0  ;;  %v3249_v3 = vpop.f32.mrb[6].mxu1  ;;  %3711 = vmatprep.subr.bf16.mxu0 %v3710_v21 }
 0x21d   :  { %v4616_v52 = vmul.f32 %v4589_v22, %v584_v51  ;;  %v803_v53 = vpop.f32.mrb[7].mxu1  ;;  %3713 = vmatpush3.bf16.msra.mxu0 %v3710_v21  ;;  %v3682_v51 = vpack.c.bf16 %v899_v50, %v898_v47 }
 0x21e   :  { %v3714_v54 = vpack.c.bf16 %v3249_v3, %v803_v53  ;;  %938 = vmax.xlane.f32.xlu1 %v4610_v1 }
 0x21f   :  { %v588_v55 = vpop.f32.mrb[8].mxu0  ;;  %v4713_v53 = vsel %vm114_vm10, %v4616_v52, -1e+30  ;;  %3683 = vmatprep.subr.bf16.mxu1 %v3682_v51 }
 0x220   :  { %v4624_v14 = vmul.f32 0.17677669, %v588_v55  ;;  %v590_v24 = vpop.f32.mrb[9].mxu0  ;;  %v3252_v25 = vpop.f32.mrb[8].mxu1  ;;  %3715 = vmatprep.subr.bf16.mxu0 %v3714_v54  ;;  %3685 = vmatpush3.bf16.msra.mxu1 %v3682_v51 }
 0x221   :  { %v1326_v29 = vmul.f32 %v4589_v22, %v590_v24  ;;  %v813_v2 = vpop.f32.mrb[9].mxu1  ;;  %3717 = vmatpush3.bf16.msra.mxu0 %v3714_v54 }
 0x222   :  { %v3718_v33 = vpack.c.bf16 %v3252_v25, %v813_v2  ;;  %940 = vmax.xlane.f32.xlu0 %v4624_v14 }
 0x223   :  { %v4646_v63 = vsel %vm115_vm5, %v1326_v29, -1e+30  ;;  %v594_v35 = vpop.f32.mrb[10].mxu0  ;;  %v3686_v29 = vpack.c.bf16 %v901_v58, %v900_v57 }
 0x224   :  { %v1370_v56 = vmax.f32 %v4635_v31, %v4646_v63  ;;  %v4653_v10 = vmul.f32 0.17677669, %v594_v35  ;;  %v596_v8 = vpop.f32.mrb[11].mxu0  ;;  %v3255_v30 = vpop.f32.mrb[10].mxu1  ;;  %3719 = vmatprep.subr.bf16.mxu0 %v3718_v33 }
 0x225   :  { %v1327_v12 = vmul.f32 %v4589_v22, %v596_v8  ;;  %v823_v16 = vpop.f32.mrb[11].mxu1  ;;  %3721 = vmatpush3.bf16.msra.mxu0 %v3718_v33  ;;  %3687 = vmatprep.subr.bf16.mxu1 %v3686_v29  ;;  %v903_v8 = vld [vmem:[#allocation10 + $0x58] sm:$0xff] }
 0x226   :  { %v3722_v9 = vpack.c.bf16 %v3255_v30, %v823_v16  ;;  %942 = vmax.xlane.f32.xlu1 %v4653_v10  ;;  %3689 = vmatpush3.bf16.msra.mxu1 %v3686_v29  ;;  %v3690_v16 = vpack.c.bf16 %v903_v8, %v902_v6 }
 0x227   :  { %v4673_v23 = vsel %vm116_vm7, %v1327_v12, -1e+30  ;;  %v600_v36 = vpop.f32.mrb[12].mxu0 }
 0x228   :  { %v1371_v15 = vmax.f32 %v4662_v20, %v4673_v23  ;;  %v4679_v38 = vmul.f32 0.17677669, %v600_v36  ;;  %v602_v32 = vpop.f32.mrb[13].mxu0  ;;  %3723 = vmatprep.subr.bf16.mxu0 %v3722_v9  ;;  %3691 = vmatprep.subr.bf16.mxu1 %v3690_v16 }
 0x229   :  { %v1328_v41 = vmul.f32 %v4589_v22, %v602_v32  ;;  %3725 = vmatpush3.bf16.msra.mxu0 %v3722_v9 }
 0x22a   :  { %944 = vmax.xlane.f32.xlu0 %v4679_v38  ;;  %3693 = vmatpush3.bf16.msra.mxu1 %v3690_v16 }
 0x22b   :  { %v4697_v17 = vsel %vm117_vm9, %v1328_v41, -1e+30  ;;  %v606_v43 = vpop.f32.mrb[14].mxu0 }
 0x22c   :  { %v1372_v49 = vmax.f32 %v4689_v42, %v4697_v17  ;;  %v4704_v21 = vmul.f32 0.17677669, %v606_v43  ;;  %v608_v18 = vpop.f32.mrb[15].mxu0  ;;  %v4761_v43 = vadd.s32 88, %v4479_v48 }
 0x22d   :  { %v1329_v3 = vmul.f32 %v4589_v22, %v608_v18 }
 0x22e   :  { %946 = vmax.xlane.f32.xlu1 %v4704_v21  ;;  %5878 = vst [vmem:[#allocation33_spill] sm:$0xff] %v4761_v43  ;;  %vm122_vm15 = vcmp.lt.s32.totalorder %v4761_v43, %v4608_v34 }
 0x22f   :  { %v4719_v54 = vsel %vm118_vm11, %v1329_v3, -1e+30  ;;  %v612_v55 = vpop.f32.mrb[16].mxu0 }
 0x230   :  { %v1373_v24 = vmax.f32 %v4713_v53, %v4719_v54  ;;  %v4725_v52 = vmul.f32 0.17677669, %v612_v55  ;;  %v614_v25 = vpop.f32.mrb[17].mxu0  ;;  %v907_v55 = vld [vmem:[#allocation10 + $0x78] sm:$0xff] }
 0x231   :  { %v1330_v2 = vmul.f32 %v4589_v22, %v614_v25 }
 0x232   :  { %948 = vmax.xlane.f32.xlu0 %v4725_v52 }
 0x233   :  { %v4735_v33 = vsel %vm119_vm12, %v1330_v2, -1e+30  ;;  %v618_v35 = vpop.f32.mrb[18].mxu0 }
 0x234   :  { %v1374_v30 = vmax.f32 %v1370_v56, %v4735_v33  ;;  %v4744_v44 = vmul.f32 0.17677669, %v618_v35  ;;  %v620_v12 = vpop.f32.mrb[19].mxu0  ;;  %v904_v56 = vld [vmem:[#allocation10 + $0x60] sm:$0xff] }
 0x235   :  { %v1331_v9 = vmul.f32 %v4589_v22, %v620_v12  ;;  %v3694_v47 = vpack.c.bf16 %v905_v13, %v904_v56 }
 0x236   :  { %950 = vmax.xlane.f32.xlu1 %v4744_v44 }
 0x237   :  { %v4753_v36 = vsel %vm5805_vm13, %v1331_v9, -1e+30  ;;  %v624_v37 = vpop.f32.mrb[20].mxu0  ;;  %3695 = vmatprep.subr.bf16.mxu1 %v3694_v47 }
 0x238   :  { %v1375_v32 = vmax.f32 %v1371_v15, %v4753_v36  ;;  %v4758_v40 = vmul.f32 0.17677669, %v624_v37  ;;  %v626_v41 = vpop.f32.mrb[21].mxu0  ;;  %3697 = vmatpush3.bf16.msra.mxu1 %v3694_v47  ;;  %v906_v15 = vld [vmem:[#allocation10 + $0x70] sm:$0xff] }
 0x239   :  { %v1332_v50 = vmul.f32 %v4589_v22, %v626_v41  ;;  %v3698_v29 = vpack.c.bf16 %v907_v55, %v906_v15 }
 0x23a   :  { %v1378_v18 = vmax.f32 %v1374_v30, %v1375_v32  ;;  %952 = vmax.xlane.f32.xlu0 %v4758_v40 }
 0x23b   :  { %v4768_v51 = vsel %vm121_vm14, %v1332_v50, -1e+30  ;;  %v630_v3 = vpop.f32.mrb[22].mxu0  ;;  %3699 = vmatprep.subr.bf16.mxu1 %v3698_v29  ;;  %v4792_v50 = vstv %s3869_s14 }
 0x23c   :  { %v1376_v57 = vmax.f32 %v1372_v49, %v4768_v51  ;;  %v4771_v58 = vmul.f32 0.17677669, %v630_v3  ;;  %v632_v25 = vpop.f32.mrb[23].mxu0  ;;  %3701 = vmatpush3.bf16.msra.mxu1 %v3698_v29  ;;  %v4795_v3 = vstv %s4476_s27 }
 0x23d   :  { %v1333_v2 = vmul.f32 %v4589_v22, %v632_v25  ;;  %5879 = vst [vmem:[#allocation34_spill] sm:$0xff] %v4795_v3  ;;  %vm284_vm0 = vcmp.lt.s32.totalorder %v4622_v60, %v4795_v3  ;;  %vm283_vm1 = vcmp.lt.s32.totalorder %v4479_v48, %v4795_v3  ;;  %vm5810_vm2 = vcmp.lt.s32.totalorder %v4638_v7, %v4795_v3 }
 0x23e   :  { %954 = vmax.xlane.f32.xlu1 %v4771_v58  ;;  %vm5806_vm3 = vcmp.lt.s32.totalorder %v4613_v0, %v4795_v3  ;;  %vm5809_vm13 = vcmp.lt.s32.totalorder %v4629_v27, %v4795_v3 }
 0x23f   :  { %v4780_v35 = vsel %vm122_vm15, %v1333_v2, -1e+30  ;;  %v636_v6 = vpop.f32.mrb[24].mxu0 }
 0x240   :  { %v1377_v49 = vmax.f32 %v1373_v24, %v4780_v35  ;;  %v4783_v8 = vmul.f32 0.17677669, %v636_v6  ;;  %v638_v30 = vpop.f32.mrb[25].mxu0  ;;  %v3258_v0 = vpop.f32.mrb[12].mxu1 }
 0x241   :  { %v1846_v25 = vmul.f32 %v4792_v50, %v638_v30 }
 0x242   :  { %v1379_v12 = vmax.f32 %v1376_v57, %v1377_v49  ;;  %956 = vmax.xlane.f32.xlu1 %v4783_v8 }
 0x243   :  { %v642_v22 = vpop.f32.mrb[26].mxu0 }
 0x244   :  { %v1380_v16 = vmax.f32 %v1378_v18, %v1379_v12  ;;  %v4786_v9 = vmul.f32 0.17677669, %v642_v22  ;;  %v644_v37 = vpop.f32.mrb[27].mxu0 }
 0x245   :  { %v1847_v29 = vmul.f32 %v4792_v50, %v644_v37 }
 0x246   :  { %v1381_v56 = vrot.slane %v1380_v16, 4  ;;  %958 = vmax.xlane.f32.xlu1 %v4786_v9 }
 0x247   :  { %v648_v13 = vpop.f32.mrb[28].mxu0  ;;  %v4825_v37 = vsel %vm284_vm0, %v1847_v29, -1e+30 }
 0x248   :  { %v1382_v32 = vmax.f32 %v1380_v16, %v1381_v56  ;;  %v4789_v41 = vmul.f32 0.17677669, %v648_v13  ;;  %v650_v24 = vpop.f32.mrb[29].mxu0  ;;  %v4820_v16 = vsel %vm283_vm1, %v1846_v25, -1e+30 }
 0x24a   :  { %v1383_v47 = vrot.slane %v1382_v32, 2  ;;  %960 = vmax.xlane.f32.xlu1 %v4789_v41 }
 0x24b   :  { %v654_v18 = vpop.f32.mrb[30].mxu0 }
 0x24c   :  { %v1384_v15 = vmax.f32 %v1382_v32, %v1383_v47  ;;  %v4797_v55 = vmul.f32 0.17677669, %v654_v18  ;;  %v656_v57 = vpop.f32.mrb[31].mxu0 }
 0x24e   :  { %v1385_v2 = vrot.slane %v1384_v15, 1  ;;  %962 = vmax.xlane.f32.xlu1 %v4797_v55 }
 0x24f   :  { %v660_v6 = vpop.f32.mrb[32].mxu0 }
 0x250   :  { %v4810_v49 = vmax.f32 %v1384_v15, %v1385_v2  ;;  %v4812_v30 = vmul.f32 0.17677669, %v660_v6  ;;  %v662_v12 = vpop.f32.mrb[33].mxu0 }
 0x251   :  { %v1850_v22 = vmul.f32 %v4792_v50, %v662_v12 }
 0x252   :  { %964 = vmax.xlane.f32.xlu1 %v4812_v30  ;;  %v1387_v13 = vsub.f32 %v4635_v31, %v4810_v49  ;;  %v1388_v32 = vsub.f32 %v4662_v20, %v4810_v49  ;;  %v1389_v47 = vsub.f32 %v4689_v42, %v4810_v49  ;;  %v1390_v25 = vsub.f32 %v4713_v53, %v4810_v49 }
 0x253   :  { %v666_v18 = vpop.f32.mrb[34].mxu0  ;;  %v4839_v15 = vsel %vm5806_vm3, %v1850_v22, -1e+30  ;;  %v1391_v29 = vsub.f32 %v4646_v63, %v4810_v49  ;;  %v1392_v31 = vsub.f32 %v4673_v23, %v4810_v49  ;;  %v1848_v42 = vmul.f32 %v4792_v50, %v650_v24 }
 0x254   :  { %v4847_v2 = vmul.f32 0.17677669, %v666_v18  ;;  %v668_v20 = vpop.f32.mrb[35].mxu0  ;;  %v1894_v6 = vmax.f32 %v4820_v16, %v4839_v15  ;;  %v1393_v12 = vsub.f32 %v4697_v17, %v4810_v49  ;;  %v1394_v53 = vsub.f32 %v4719_v54, %v4810_v49 }
 0x255   :  { %v1851_v22 = vmul.f32 %v4792_v50, %v668_v20  ;;  %v1395_v63 = vsub.f32 %v4735_v33, %v4810_v49  ;;  %v1396_v23 = vsub.f32 %v4753_v36, %v4810_v49  ;;  %v1399_v18 = vmul.f32 1.442695, %v1387_v13 }
 0x256   :  { %966 = vmax.xlane.f32.xlu1 %v4847_v2  ;;  %v1401_v56 = vmul.f32 1.442695, %v1388_v32  ;;  %vm5811_vm3 = vcmp.lt.s32.totalorder %v4649_v5, %v4795_v3  ;;  %v1403_v33 = vmul.f32 1.442695, %v1389_v47  ;;  %v4876_v61 = vsel %vm5810_vm2, %v1848_v42, -1e+30 }
 0x257   :  { %v672_v17 = vpop.f32.mrb[36].mxu0  ;;  %v4869_v54 = vsel %vm5809_vm13, %v1851_v22, -1e+30  ;;  %3897 = vpow2.f32 %v1399_v18  ;;  %v1849_v32 = vmul.f32 %v4792_v50, %v656_v57  ;;  %v1405_v22 = vmul.f32 1.442695, %v1390_v25 }
 0x258   :  { %v4871_v20 = vmul.f32 0.17677669, %v672_v17  ;;  %v674_v36 = vpop.f32.mrb[37].mxu0  ;;  %v1895_v13 = vmax.f32 %v4825_v37, %v4869_v54  ;;  %3899 = vpow2.f32 %v1401_v56  ;;  %vm286_vm13 = vcmp.lt.s32.totalorder %v4668_v11, %v4795_v3 }
 0x259   :  { %v1852_v24 = vmul.f32 %v4792_v50, %v674_v36  ;;  %3901 = vpow2.f32 %v1403_v33  ;;  %v1407_v17 = vmul.f32 1.442695, %v1391_v29  ;;  %vm5816_vm2 = vcmp.lt.s32.totalorder %v4682_v39, %v4795_v3 }
 0x25a   :  { %968 = vmax.xlane.f32.xlu1 %v4871_v20  ;;  %v4900_v36 = vsel %vm286_vm13, %v1849_v32, -1e+30  ;;  %3903 = vpow2.f32 %v1405_v22  ;;  %v1413_v22 = vmul.f32 1.442695, %v1394_v53 }
 0x25b   :  { %v678_v47 = vpop.f32.mrb[38].mxu0  ;;  %v4888_v42 = vsel %vm5811_vm3, %v1852_v24, -1e+30  ;;  %v1409_v24 = vmul.f32 1.442695, %v1392_v31  ;;  %3905 = vpow2.f32 %v1407_v17  ;;  %vm5825_vm3 = vcmp.lt.s32.totalorder %v4700_v46, %v4795_v3 }
 0x25c   :  { %v4890_v18 = vmul.f32 0.17677669, %v678_v47  ;;  %v680_v57 = vpop.f32.mrb[39].mxu0  ;;  %v1896_v56 = vmax.f32 %v4876_v61, %v4888_v42  ;;  %v1411_v47 = vmul.f32 1.442695, %v1393_v12  ;;  %v5880_v46 = vsub.f32 %v4768_v51, %v4810_v49 }
 0x25d   :  { %v1853_v25 = vmul.f32 %v4792_v50, %v680_v57  ;;  %3907 = vpow2.f32 %v1409_v24 }
 0x25e   :  { %970 = vmax.xlane.f32.xlu1 %v4890_v18  ;;  %3909 = vpow2.f32 %v1411_v47  ;;  %v1419_v27 = vmul.f32 1.442695, %v5880_v46  ;;  %v833_v46 = vpop.f32.mrb[13].mxu1 }
 0x25f   :  { %v684_v29 = vpop.f32.mrb[40].mxu0  ;;  %v4906_v33 = vsel %vm5816_vm2, %v1853_v25, -1e+30  ;;  %vm5836_vm2 = vcmp.lt.s32.totalorder %v4728_v62, %v4795_v3  ;;  %3911 = vpow2.f32 %v1413_v22  ;;  %v4961_v7 = vpack.c.bf16 %v3258_v0, %v833_v46 }
 0x260   :  { %v4910_v57 = vmul.f32 0.17677669, %v684_v29  ;;  %v686_v26 = vpop.f32.mrb[41].mxu0  ;;  %v1415_v29 = vmul.f32 1.442695, %v1395_v63 }
 0x261   :  { %v1854_v31 = vmul.f32 %v4792_v50, %v686_v26  ;;  %v4915_v59 = vpop.eup %3897  ;;  %5883 = vst [vmem:[#allocation36_spill] sm:$0xff] %v4961_v7 }
 0x262   :  { %972 = vmax.xlane.f32.xlu1 %v4910_v57  ;;  %v4918_v25 = vpop.eup %3899  ;;  %3913 = vpow2.f32 %v1415_v29 }
 0x263   :  { %v690_v12 = vpop.f32.mrb[42].mxu0  ;;  %v4923_v17 = vsel %vm5825_vm3, %v1854_v31, -1e+30  ;;  %v1423_v32 = vadd.f32 %v4918_v25, %v4915_v59  ;;  %v4932_v39 = vpop.eup %3901  ;;  %v1417_v31 = vmul.f32 1.442695, %v1396_v23  ;;  %vm293_vm3 = vcmp.lt.s32.totalorder %v4738_v45, %v4795_v3 }
 0x264   :  { %v4927_v26 = vmul.f32 0.17677669, %v690_v12  ;;  %v692_v53 = vpop.f32.mrb[43].mxu0  ;;  %v1898_v24 = vmax.f32 %v1894_v6, %v4923_v17  ;;  %v4937_v47 = vpop.eup %3903 }
 0x265   :  { %v1855_v5 = vmul.f32 %v4792_v50, %v692_v53  ;;  %v1424_v63 = vadd.f32 %v4932_v39, %v1423_v32  ;;  %v4953_v11 = vpop.eup %3905  ;;  %3915 = vpow2.f32 %v1417_v31  ;;  %v3261_v31 = vpop.f32.mrb[14].mxu1 }
 0x266   :  { %974 = vmax.xlane.f32.xlu1 %v4927_v26  ;;  %3917 = vpow2.f32 %v1419_v27 }
 0x267   :  { %v696_v12 = vpop.f32.mrb[44].mxu0  ;;  %v4942_v6 = vsel %vm5836_vm2, %v1855_v5, -1e+30  ;;  %v1425_v53 = vadd.f32 %v4937_v47, %v1424_v63  ;;  %v5882_v5 = vsub.f32 %v4780_v35, %v4810_v49  ;;  %vm5854_vm2 = vcmp.lt.s32.totalorder %v4761_v43, %v4795_v3 }
 0x268   :  { %v4949_v23 = vmul.f32 0.17677669, %v696_v12  ;;  %v698_v22 = vpop.f32.mrb[45].mxu0  ;;  %v1899_v32 = vmax.f32 %v1895_v13, %v4942_v6  ;;  %v4963_v13 = vpop.eup %3907 }
 0x269   :  { %v1421_v29 = vmul.f32 1.442695, %v5882_v5  ;;  %v1856_v51 = vmul.f32 %v4792_v50, %v698_v22  ;;  %v1426_v62 = vadd.f32 %v4953_v11, %v1425_v53  ;;  %v4976_v22 = vpop.eup %3909  ;;  %v843_v53 = vpop.f32.mrb[15].mxu1 }
 0x26a   :  { %5881 = vst [vmem:[#allocation35_spill] sm:$0xff] %v4949_v23  ;;  %976 = vmax.xlane.f32.xlu1 %v4949_v23  ;;  %v1902_v12 = vmax.f32 %v1898_v24, %v1899_v32  ;;  %v4981_v5 = vpack.c.bf16 %v3261_v31, %v843_v53  ;;  %v4983_v46 = vpop.eup %3911 }
 0x26b   :  { %v702_v63 = vpop.f32.mrb[46].mxu0  ;;  %v4968_v60 = vsel %vm293_vm3, %v1856_v51, -1e+30  ;;  %v1427_v0 = vadd.f32 %v4963_v13, %v1426_v62  ;;  %3919 = vpow2.f32 %v1421_v29  ;;  %v3264_v51 = vpop.f32.mrb[16].mxu1 }
 0x26c   :  { %v4970_v35 = vmul.f32 0.17677669, %v702_v63  ;;  %v704_v49 = vpop.f32.mrb[47].mxu0  ;;  %v1900_v24 = vmax.f32 %v1896_v56, %v4968_v60  ;;  %5885 = vst [vmem:[#allocation38_spill] sm:$0xff] %v4981_v5  ;;  %v853_v56 = vpop.f32.mrb[17].mxu1 }
 0x26d   :  { %v1857_v32 = vmul.f32 %v4792_v50, %v704_v49  ;;  %v1428_v27 = vadd.f32 %v4976_v22, %v1427_v0  ;;  %v5886_v50 = vmax.f32 %v4900_v36, %v4906_v33  ;;  %v4995_v49 = vpack.c.bf16 %v3264_v51, %v853_v56  ;;  %v3267_v0 = vpop.f32.mrb[18].mxu1  ;;  %v4997_v31 = vpop.eup %3913 }
 0x26e   :  { %5884 = vst [vmem:[#allocation37_spill] sm:$0xff] %v4970_v35  ;;  %978 = vmax.xlane.f32.xlu1 %v4970_v35  ;;  %v863_v53 = vpop.f32.mrb[19].mxu1 }
 0x26f   :  { %v4988_v62 = vsel %vm5854_vm2, %v1857_v32, -1e+30  ;;  %v1429_v63 = vadd.f32 %v4983_v46, %v1428_v27  ;;  %5887 = vst [vmem:[#allocation39_spill] sm:$0xff] %v4995_v49  ;;  %v5000_v3 = vpack.c.bf16 %v3267_v0, %v863_v53  ;;  %v3270_v32 = vpop.f32.mrb[20].mxu1  ;;  %v5002_v43 = vpop.eup %3915  ;;  %vm1486_vm2 = vcmask 785408  }
 0x270   :  { %v1901_v29 = vmax.f32 %v5886_v50, %v4988_v62  ;;  %v873_v45 = vpop.f32.mrb[21].mxu1  ;;  %v5007_v51 = vpop.eup %3917 }
 0x271   :  { %v1430_v34 = vadd.f32 %v4997_v31, %v1429_v63  ;;  %5888 = vst [vmem:[#allocation40_spill] sm:$0xff] %v5000_v3  ;;  %v5005_v7 = vpack.c.bf16 %v3270_v32, %v873_v45  ;;  %v3273_v27 = vpop.f32.mrb[22].mxu1 }
 0x272   :  { %v1903_v48 = vmax.f32 %v1900_v24, %v1901_v29  ;;  %v883_v56 = vpop.f32.mrb[23].mxu1 }
 0x273   :  { %v1431_v50 = vadd.f32 %v5002_v43, %v1430_v34  ;;  %5889 = vst [vmem:[#allocation41_spill] sm:$0xff] %v5005_v7  ;;  %v5010_v29 = vpack.c.bf16 %v3273_v27, %v883_v56 }
 0x274   :  { %v1904_v5 = vmax.f32 %v1902_v12, %v1903_v48 }
 0x275   :  { %v1432_v24 = vadd.f32 %v5007_v51, %v1431_v50  ;;  %v3920_v63 = vpop.eup %3919 }
 0x276   :  { %v1905_v49 = vrot.slane %v1904_v5, 4 }
 0x277   :  { %v1433_v53 = vadd.f32 %v3920_v63, %v1432_v24 }
 0x278   :  { %v1906_v0 = vmax.f32 %v1904_v5, %v1905_v49 }
 0x279   :  { %v1434_v35 = vrot.slane %v1433_v53, 4 }
 0x27a   :  { %v1907_v3 = vrot.slane %v1906_v0, 2 }
 0x27b   :  { %v1435_v48 = vadd.f32 %v1434_v35, %v1433_v53 }
 0x27c   :  { %v1908_v23 = vmax.f32 %v1906_v0, %v1907_v3 }
 0x27d   :  { %v1436_v45 = vrot.slane %v1435_v48, 2 }
 0x27e   :  { %v1909_v12 = vrot.slane %v1908_v23, 1 }
 0x27f   :  { %v1437_v49 = vadd.f32 %v1436_v45, %v1435_v48 }
 0x280   :  { %v5012_v34 = vmax.f32 %v1908_v23, %v1909_v12 }
 0x282   :  { %v1911_v32 = vsub.f32 %v4820_v16, %v5012_v34  ;;  %v1912_v7 = vsub.f32 %v4825_v37, %v5012_v34  ;;  %v1913_v50 = vsub.f32 %v4876_v61, %v5012_v34  ;;  %v1914_v5 = vsub.f32 %v4900_v36, %v5012_v34 }
 0x283   :  { %v1915_v3 = vsub.f32 %v4839_v15, %v5012_v34  ;;  %v1916_v23 = vsub.f32 %v4869_v54, %v5012_v34  ;;  %v1917_v35 = vsub.f32 %v4888_v42, %v5012_v34  ;;  %v1918_v16 = vsub.f32 %v4906_v33, %v5012_v34 }
 0x284   :  { %v1919_v37 = vsub.f32 %v4923_v17, %v5012_v34  ;;  %v1920_v61 = vsub.f32 %v4942_v6, %v5012_v34  ;;  %v1921_v36 = vsub.f32 %v4968_v60, %v5012_v34  ;;  %v1922_v15 = vsub.f32 %v4988_v62, %v5012_v34 }
 0x285   :  { %v1438_v54 = vrot.slane %v1437_v49, 1  ;;  %v1925_v27 = vmul.f32 1.442695, %v1912_v7  ;;  %v1923_v42 = vmul.f32 1.442695, %v1911_v32 }
 0x286   :  { %v1927_v24 = vmul.f32 1.442695, %v1913_v50  ;;  %v1929_v33 = vmul.f32 1.442695, %v1914_v5  ;;  %v1931_v17 = vmul.f32 1.442695, %v1915_v3 }
 0x287   :  { %v1439_v56 = vadd.f32 %v1438_v54, %v1437_v49  ;;  %3921 = vpow2.f32 %v1925_v27  ;;  %v1933_v0 = vmul.f32 1.442695, %v1916_v23  ;;  %v1935_v6 = vmul.f32 1.442695, %v1917_v35 }
 0x288   :  { %v1937_v53 = vmul.f32 1.442695, %v1918_v16  ;;  %v1939_v7 = vmul.f32 1.442695, %v1919_v37  ;;  %v1941_v48 = vmul.f32 1.442695, %v1920_v61 }
 0x289   :  { %3923 = vrcp.f32 %v1439_v56  ;;  %v1943_v37 = vmul.f32 1.442695, %v1921_v36 }
 0x28a   :  { %3925 = vpow2.f32 %v1923_v42 }
 0x28b   :  { %3927 = vpow2.f32 %v1927_v24 }
 0x28c   :  { %3929 = vpow2.f32 %v1929_v33 }
 0x28d   :  { %3931 = vpow2.f32 %v1931_v17 }
 0x28e   :  { %3933 = vpow2.f32 %v1933_v0 }
 0x28f   :  { %3935 = vpow2.f32 %v1935_v6 }
 0x290   :  { %3937 = vpow2.f32 %v1937_v53 }
 0x291   :  { %v5038_v60 = vpop.eup %3921  ;;  %3939 = vpow2.f32 %v1939_v7 }
 0x292   :  { %3941 = vpow2.f32 %v1941_v48 }
 0x293   :  { %v3924_v62 = vpop.eup %3923 }
 0x294   :  { %v5040_v12 = vpop.eup %3925  ;;  %v1442_v34 = vmul.f32 %v3924_v62, %v4915_v59  ;;  %v1443_v45 = vmul.f32 %v3924_v62, %v4918_v25  ;;  %v1444_v32 = vmul.f32 %v3924_v62, %v4932_v39  ;;  %v1445_v50 = vmul.f32 %v3924_v62, %v4937_v47 }
 0x295   :  { %v1446_v5 = vmul.f32 %v3924_v62, %v4953_v11  ;;  %v1447_v3 = vmul.f32 %v3924_v62, %v4963_v13  ;;  %v5049_v23 = vmul.f32 %v3924_v62, %v4976_v22  ;;  %v5052_v35 = vmul.f32 %v3924_v62, %v4983_v46  ;;  %v5054_v16 = vpop.eup %3927 }
 0x296   :  { %1454 = vxpose.xlu0.b32.start [1/12] (short) %v1442_v34, 128  ;;  %v5057_v25 = vmul.f32 %v3924_v62, %v4997_v31  ;;  %v5060_v39 = vmul.f32 %v3924_v62, %v5002_v43  ;;  %v5063_v11 = vmul.f32 %v3924_v62, %v5007_v51  ;;  %v5065_v47 = vmul.f32 %v3924_v62, %v3920_v63  ;;  %v5070_v46 = vpop.eup %3929 }
 0x297   :  { %v1947_v22 = vadd.f32 %v5040_v12, %v5038_v60  ;;  %v5073_v49 = vpop.eup %3931  ;;  %v1945_v43 = vmul.f32 1.442695, %v1922_v15 }
 0x298   :  { %v5075_v63 = vpop.eup %3933 }
 0x299   :  { %v1948_v31 = vadd.f32 %v5054_v16, %v1947_v22  ;;  %v5079_v27 = vpop.eup %3935 }
 0x29a   :  { %1455 = vxpose.xlu0.b32.cont [2/12] (short) %v1443_v45, 128  ;;  %v5081_v36 = vpop.eup %3937 }
 0x29b   :  { %v1949_v54 = vadd.f32 %v5070_v46, %v1948_v31  ;;  %v5087_v0 = vpop.eup %3939 }
 0x29c   :  { %v5091_v7 = vpop.eup %3941 }
 0x29d   :  { %v1950_v42 = vadd.f32 %v5073_v49, %v1949_v54 }
 0x29e   :  { %1456 = vxpose.xlu0.b32.cont [3/12] (short) %v1444_v32, 128 }
 0x29f   :  { %v933_v59 = vpop.xlane.xlu0 %932  ;;  %v1951_v33 = vadd.f32 %v5075_v63, %v1950_v42 }
 0x2a0   :  { %v980_v13 = vsub.f32 %v4591_v28, %v933_v59 }
 0x2a2   :  { %v1004_v61 = vmul.f32 1.442695, %v980_v13  ;;  %1457 = vxpose.xlu0.b32.cont [4/12] (short) %v1445_v50, 128 }
 0x2a3   :  { %v935_v51 = vpop.xlane.xlu1 %934 }
 0x2a4   :  { %3943 = vpow2.f32 %v1004_v61  ;;  %v981_v28 = vsub.f32 %v4595_v4, %v935_v51  ;;  %v1952_v4 = vadd.f32 %v5079_v27, %v1951_v33 }
 0x2a5   :  { %3945 = vpow2.f32 %v1943_v37 }
 0x2a6   :  { %v1006_v56 = vmul.f32 1.442695, %v981_v28  ;;  %3947 = vpow2.f32 %v1945_v43  ;;  %v1953_v62 = vadd.f32 %v5081_v36, %v1952_v4  ;;  %1458 = vxpose.xlu0.b32.cont [5/12] (short) %v1446_v5, 128 }
 0x2a7   :  { %v937_v15 = vpop.xlane.xlu0 %936 }
 0x2a8   :  { %3949 = vpow2.f32 %v1006_v56  ;;  %v982_v24 = vsub.f32 %v4601_v19, %v937_v15  ;;  %v1954_v19 = vadd.f32 %v5087_v0, %v1953_v62 }
 0x2aa   :  { %v1008_v17 = vmul.f32 1.442695, %v982_v24  ;;  %1459 = vxpose.xlu0.b32.cont [6/12] (short) %v1447_v3, 128 }
 0x2ab   :  { %v939_v6 = vpop.xlane.xlu1 %938 }
 0x2ac   :  { %3951 = vpow2.f32 %v1008_v17  ;;  %v983_v53 = vsub.f32 %v4610_v1, %v939_v6  ;;  %v1955_v1 = vadd.f32 %v5091_v7, %v1954_v19 }
 0x2ae   :  { %v5093_v48 = vpop.eup %3943  ;;  %v1010_v34 = vmul.f32 1.442695, %v983_v53  ;;  %1460 = vxpose.xlu0.b32.cont [7/12] (short) %v5049_v23, 128 }
 0x2af   :  { %v5096_v45 = vpop.eup %3945  ;;  %3306 = vmatprep.mubr.f32.mxu1 %v5093_v48  ;;  %v941_v32 = vpop.xlane.xlu0 %940 }
 0x2b0   :  { %3953 = vpow2.f32 %v1010_v34  ;;  %v984_v50 = vsub.f32 %v4624_v14, %v941_v32  ;;  %v5101_v59 = vpop.eup %3947  ;;  %v1956_v37 = vadd.f32 %v5096_v45, %v1955_v1 }
 0x2b2   :  { %v5103_v13 = vpop.eup %3949  ;;  %v1012_v22 = vmul.f32 1.442695, %v984_v50  ;;  %v1957_v31 = vadd.f32 %v5101_v59, %v1956_v37  ;;  %1461 = vxpose.xlu0.b32.cont [8/12] (short) %v5052_v35, 128 }
 0x2b3   :  { %3307 = vmatmul.mubr.f32.vlgmr.msra.gmra.mrb[24].mxu1 %v5103_v13  ;;  %v943_v61 = vpop.xlane.xlu1 %942 }
 0x2b4   :  { %3955 = vpow2.f32 %v1012_v22  ;;  %v985_v5 = vsub.f32 %v4653_v10, %v943_v61  ;;  %v1958_v51 = vrot.slane %v1957_v31, 4 }
 0x2b6   :  { %v5109_v43 = vpop.eup %3951  ;;  %v1014_v14 = vmul.f32 1.442695, %v985_v5  ;;  %v1959_v54 = vadd.f32 %v1958_v51, %v1957_v31  ;;  %1462 = vxpose.xlu0.b32.cont [9/12] (short) %v5057_v25, 128 }
 0x2b7   :  { %3309 = vmatprep.mubr.f32.mxu1 %v5109_v43  ;;  %v945_v28 = vpop.xlane.xlu0 %944 }
 0x2b8   :  { %3957 = vpow2.f32 %v1014_v14  ;;  %v986_v3 = vsub.f32 %v4679_v38, %v945_v28  ;;  %v1960_v15 = vrot.slane %v1959_v54, 2 }
 0x2ba   :  { %v5114_v56 = vpop.eup %3953  ;;  %v1016_v42 = vmul.f32 1.442695, %v986_v3  ;;  %v1961_v23 = vadd.f32 %v1960_v15, %v1959_v54  ;;  %1463 = vxpose.xlu0.b32.cont [10/12] (short) %v5060_v39, 128 }
 0x2bb   :  { %3310 = vmatmul.mubr.f32.gmra.mrb[26].mxu1 %v5114_v56  ;;  %v947_v10 = vpop.xlane.xlu1 %946 }
 0x2bc   :  { %3959 = vpow2.f32 %v1016_v42  ;;  %v987_v24 = vsub.f32 %v4704_v21, %v947_v10  ;;  %v1962_v4 = vrot.slane %v1961_v23, 1 }
 0x2be   :  { %v5119_v33 = vpop.eup %3955  ;;  %v1018_v17 = vmul.f32 1.442695, %v987_v24  ;;  %v1963_v35 = vadd.f32 %v1962_v4, %v1961_v23  ;;  %1464 = vxpose.xlu0.b32.cont [11/12] (short) %v5063_v11, 128 }
 0x2bf   :  { %3312 = vmatprep.mubr.f32.mxu1 %v5119_v33  ;;  %v949_v38 = vpop.xlane.xlu0 %948 }
 0x2c0   :  { %3961 = vpow2.f32 %v1018_v17  ;;  %v988_v6 = vsub.f32 %v4725_v52, %v949_v38 }
 0x2c1   :  { %3963 = vrcp.f32 %v1963_v35 }
 0x2c2   :  { %v5124_v53 = vpop.eup %3957  ;;  %v1020_v62 = vmul.f32 1.442695, %v988_v6  ;;  %1465 = vxpose.xlu0.b32.end [12/12] (short) %v5065_v47, 128 }
 0x2c3   :  { %3313 = vmatmul.mubr.f32.gmra.mrb[28].mxu1 %v5124_v53  ;;  %v951_v21 = vpop.xlane.xlu1 %950 }
 0x2c4   :  { %3965 = vpow2.f32 %v1020_v62  ;;  %v989_v34 = vsub.f32 %v4744_v44, %v951_v21 }
 0x2c6   :  { %v5129_v25 = vpop.eup %3959  ;;  %v1022_v19 = vmul.f32 1.442695, %v989_v34 }
 0x2c7   :  { %3315 = vmatprep.mubr.f32.mxu1 %v5129_v25  ;;  %v953_v52 = vpop.xlane.xlu0 %952 }
 0x2c8   :  { %3967 = vpow2.f32 %v1022_v19  ;;  %v990_v32 = vsub.f32 %v4758_v40, %v953_v52 }
 0x2ca   :  { %v5134_v50 = vpop.eup %3961  ;;  %v1024_v39 = vmul.f32 1.442695, %v990_v32 }
 0x2cb   :  { %3316 = vmatmul.mubr.f32.gmra.mrb[30].mxu1 %v5134_v50  ;;  %v955_v1 = vpop.xlane.xlu1 %954  ;;  %v3964_v44 = vpop.eup %3963 }
 0x2cc   :  { %3969 = vpow2.f32 %v1024_v39  ;;  %v991_v22 = vsub.f32 %v4771_v58, %v955_v1  ;;  %v1966_v11 = vmul.f32 %v3964_v44, %v5040_v12  ;;  %v1967_v37 = vmul.f32 %v3964_v44, %v5038_v60 }
 0x2cd   :  { %v1968_v61 = vmul.f32 %v3964_v44, %v5054_v16  ;;  %v1969_v40 = vmul.f32 %v3964_v44, %v5070_v46  ;;  %v1970_v47 = vmul.f32 %v3964_v44, %v5073_v49  ;;  %v1971_v14 = vmul.f32 %v3964_v44, %v5075_v63 }
 0x2ce   :  { %v5143_v5 = vpop.eup %3965  ;;  %v1026_v31 = vmul.f32 1.442695, %v991_v22  ;;  %v1972_v51 = vmul.f32 %v3964_v44, %v5079_v27  ;;  %1978 = vxpose.xlu1.b32.start [1/12] (short) %v1966_v11, 128  ;;  %v1973_v12 = vmul.f32 %v3964_v44, %v5081_v36  ;;  %v1974_v60 = vmul.f32 %v3964_v44, %v5087_v0 }
 0x2cf   :  { %3318 = vmatprep.mubr.f32.mxu1 %v5143_v5  ;;  %v957_v58 = vpop.xlane.xlu1 %956  ;;  %v5152_v16 = vmul.f32 %v3964_v44, %v5091_v7  ;;  %v5156_v49 = vmul.f32 %v3964_v44, %v5096_v45  ;;  %v5159_v63 = vmul.f32 %v3964_v44, %v5101_v59 }
 0x2d0   :  { %3971 = vpow2.f32 %v1026_v31  ;;  %v992_v46 = vsub.f32 %v4783_v8, %v957_v58 }
 0x2d2   :  { %v5161_v27 = vpop.eup %3967  ;;  %v1028_v28 = vmul.f32 1.442695, %v992_v46  ;;  %1979 = vxpose.xlu1.b32.cont [2/12] (short) %v1967_v37, 128 }
 0x2d3   :  { %3319 = vmatmul.mubr.f32.gmra.mrb[32].mxu1 %v5161_v27  ;;  %v959_v36 = vpop.xlane.xlu1 %958 }
 0x2d4   :  { %3973 = vpow2.f32 %v1028_v28  ;;  %v993_v0 = vsub.f32 %v4786_v9, %v959_v36 }
 0x2d6   :  { %v5165_v7 = vpop.eup %3969  ;;  %v1030_v3 = vmul.f32 1.442695, %v993_v0  ;;  %1980 = vxpose.xlu1.b32.cont [3/12] (short) %v1968_v61, 128 }
 0x2d7   :  { %3321 = vmatprep.mubr.f32.mxu1 %v5165_v7  ;;  %v961_v8 = vpop.xlane.xlu1 %960 }
 0x2d8   :  { %3975 = vpow2.f32 %v1030_v3  ;;  %v994_v45 = vsub.f32 %v4789_v41, %v961_v8 }
 0x2da   :  { %v5169_v59 = vpop.eup %3971  ;;  %v1032_v54 = vmul.f32 1.442695, %v994_v45  ;;  %1981 = vxpose.xlu1.b32.cont [4/12] (short) %v1969_v40, 128 }
 0x2db   :  { %3322 = vmatmul.mubr.f32.gmra.mrb[34].mxu1 %v5169_v59  ;;  %v963_v42 = vpop.xlane.xlu1 %962 }
 0x2dc   :  { %3977 = vpow2.f32 %v1032_v54  ;;  %v995_v9 = vsub.f32 %v4797_v55, %v963_v42 }
 0x2de   :  { %v5173_v15 = vpop.eup %3973  ;;  %v1034_v10 = vmul.f32 1.442695, %v995_v9  ;;  %1982 = vxpose.xlu1.b32.cont [5/12] (short) %v1970_v47, 128 }
 0x2df   :  { %v965_v24 = vpop.xlane.xlu1 %964  ;;  %3324 = vmatprep.mubr.f32.mxu1 %v5173_v15 }
 0x2e0   :  { %3979 = vpow2.f32 %v1034_v10  ;;  %v996_v41 = vsub.f32 %v4812_v30, %v965_v24 }
 0x2e2   :  { %v5177_v23 = vpop.eup %3975  ;;  %v1036_v17 = vmul.f32 1.442695, %v996_v41  ;;  %1983 = vxpose.xlu1.b32.cont [6/12] (short) %v1971_v14, 128 }
 0x2e3   :  { %3325 = vmatmul.mubr.f32.gmra.mrb[36].mxu1 %v5177_v23  ;;  %v967_v4 = vpop.xlane.xlu1 %966 }
 0x2e4   :  { %3981 = vpow2.f32 %v1036_v17  ;;  %v997_v55 = vsub.f32 %v4847_v2, %v967_v4 }
 0x2e6   :  { %v5181_v38 = vpop.eup %3977  ;;  %v1038_v6 = vmul.f32 1.442695, %v997_v55  ;;  %1984 = vxpose.xlu1.b32.cont [7/12] (short) %v1972_v51, 128 }
 0x2e7   :  { %v969_v35 = vpop.xlane.xlu1 %968  ;;  %3327 = vmatprep.mubr.f32.mxu1 %v5181_v38 }
 0x2e8   :  { %3983 = vpow2.f32 %v1038_v6  ;;  %v998_v30 = vsub.f32 %v4871_v20, %v969_v35 }
 0x2ea   :  { %v5185_v62 = vpop.eup %3979  ;;  %v1040_v21 = vmul.f32 1.442695, %v998_v30  ;;  %1985 = vxpose.xlu1.b32.cont [8/12] (short) %v1973_v12, 128 }
 0x2eb   :  { %3328 = vmatmul.mubr.f32.gmra.mrb[38].mxu1 %v5185_v62  ;;  %v971_v34 = vpop.xlane.xlu1 %970 }
 0x2ec   :  { %3985 = vpow2.f32 %v1040_v21  ;;  %v999_v2 = vsub.f32 %v4890_v18, %v971_v34 }
 0x2ee   :  { %v5189_v19 = vpop.eup %3981  ;;  %v1042_v52 = vmul.f32 1.442695, %v999_v2  ;;  %1986 = vxpose.xlu1.b32.cont [9/12] (short) %v1974_v60, 128 }
 0x2ef   :  { %5890 = vst [vmem:[#allocation42_spill] sm:$0xff] %v5189_v19  ;;  %v973_v32 = vpop.xlane.xlu1 %972  ;;  %3330 = vmatprep.mubr.f32.mxu1 %v5189_v19 }
 0x2f0   :  { %3987 = vpow2.f32 %v1042_v52  ;;  %v1000_v20 = vsub.f32 %v4910_v57, %v973_v32  ;;  %v5893_v57 = vld [vmem:[#allocation35_spill] sm:$0xff] }
 0x2f2   :  { %v5193_v39 = vpop.eup %3983  ;;  %v1044_v1 = vmul.f32 1.442695, %v1000_v20  ;;  %1987 = vxpose.xlu1.b32.cont [10/12] (short) %v5152_v16, 128 }
 0x2f3   :  { %5891 = vst [vmem:[#allocation43_spill] sm:$0xff] %v5193_v39  ;;  %3331 = vmatmul.mubr.f32.gmra.mrb[40].mxu1 %v5193_v39  ;;  %v975_v44 = vpop.xlane.xlu1 %974 }
 0x2f4   :  { %3989 = vpow2.f32 %v1044_v1  ;;  %v1001_v18 = vsub.f32 %v4927_v26, %v975_v44  ;;  %v5895_v26 = vld [vmem:[#allocation37_spill] sm:$0xff] }
 0x2f6   :  { %v5198_v22 = vpop.eup %3985  ;;  %v1046_v11 = vmul.f32 1.442695, %v1001_v18  ;;  %1988 = vxpose.xlu1.b32.cont [11/12] (short) %v5156_v49, 128 }
 0x2f7   :  { %5892 = vst [vmem:[#allocation44_spill] sm:$0xff] %v5198_v22  ;;  %v977_v37 = vpop.xlane.xlu1 %976  ;;  %3333 = vmatprep.mubr.f32.mxu1 %v5198_v22 }
 0x2f8   :  { %3991 = vpow2.f32 %v1046_v11  ;;  %v1002_v61 = vsub.f32 %v5893_v57, %v977_v37 }
 0x2fa   :  { %v5203_v40 = vpop.eup %3987  ;;  %v1048_v31 = vmul.f32 1.442695, %v1002_v61  ;;  %1989 = vxpose.xlu1.b32.end [12/12] (short) %v5159_v63, 128 }
 0x2fb   :  { %5894 = vst [vmem:[#allocation35_spill] sm:$0xff] %v5203_v40  ;;  %3334 = vmatmul.mubr.f32.gmra.mrb[42].mxu1 %v5203_v40  ;;  %v979_v47 = vpop.xlane.xlu1 %978 }
 0x2fc   :  { %3993 = vpow2.f32 %v1048_v31  ;;  %v1003_v14 = vsub.f32 %v5895_v26, %v979_v47 }
 0x2fe   :  { %v5208_v51 = vpop.eup %3989  ;;  %v1050_v58 = vmul.f32 1.442695, %v1003_v14 }
 0x2ff   :  { %5896 = vst [vmem:[#allocation37_spill] sm:$0xff] %v5208_v51  ;;  %3336 = vmatprep.mubr.f32.mxu1 %v5208_v51  ;;  %v5321_v51 = vld [vmem:[#allocation10 + $0x50] sm:$0xff] }
 0x300   :  { %3995 = vpow2.f32 %v1050_v58 }
 0x302   :  { %v5211_v12 = vpop.eup %3991 }
 0x303   :  { %5897 = vst [vmem:[#allocation45_spill] sm:$0xff] %v5211_v12  ;;  %3337 = vmatmul.mubr.f32.gmra.mrb[44].mxu1 %v5211_v12 }
 0x306   :  { %v5214_v60 = vpop.eup %3993 }
 0x307   :  { %5898 = vst [vmem:[#allocation46_spill] sm:$0xff] %v5214_v60  ;;  %3339 = vmatprep.mubr.f32.mxu1 %v5214_v60 }
 0x30a   :  { %v5217_v16 = vpop.eup %3995 }
 0x30b   :  { %5899 = vst [vmem:[#allocation47_spill] sm:$0xff] %v5217_v16  ;;  %3340 = vmatmul.mubr.f32.gmra.mrb[46].mxu1 %v5217_v16  ;;  %v5313_v16 = vld [vmem:[#allocation10 + $0x40] sm:$0xff] }
 0x316   :  { %v1470_v46 = vpop.trf.xlu0 }
 0x317   :  { %3366 = vmatprep.mubr.msk.f32.mxu0 %vm1486_vm2, %v1470_v46 }
 0x31a   :  { %v1471_v49 = vpop.trf.xlu0 }
 0x31b   :  { %3367 = vmatmul.mubr.msk.f32.vlgmr.msra.gmra.mrb[48].mxu0 %vm1486_vm2, %v1471_v49 }
 0x31e   :  { %v1472_v63 = vpop.trf.xlu0 }
 0x31f   :  { %3369 = vmatprep.mubr.msk.f32.mxu0 %vm1486_vm2, %v1472_v63 }
 0x322   :  { %v1473_v28 = vpop.trf.xlu0 }
 0x323   :  { %3370 = vmatmul.mubr.msk.f32.gmra.mrb[50].mxu0 %vm1486_vm2, %v1473_v28 }
 0x326   :  { %v1474_v36 = vpop.trf.xlu0 }
 0x327   :  { %3372 = vmatprep.mubr.msk.f32.mxu0 %vm1486_vm2, %v1474_v36 }
 0x32a   :  { %v1475_v0 = vpop.trf.xlu0 }
 0x32b   :  { %3373 = vmatmul.mubr.msk.f32.gmra.mrb[52].mxu0 %vm1486_vm2, %v1475_v0  ;;  %v5282_v0 = vld [vmem:[#allocation10 + $0x8] sm:$0xff] }
 0x32e   :  { %v1476_v3 = vpop.trf.xlu0 }
 0x32f   :  { %3375 = vmatprep.mubr.msk.f32.mxu0 %vm1486_vm2, %v1476_v3 }
 0x332   :  { %v1477_v8 = vpop.trf.xlu0 }
 0x333   :  { %3376 = vmatmul.mubr.msk.f32.gmra.mrb[54].mxu0 %vm1486_vm2, %v1477_v8  ;;  %v5285_v8 = vld [vmem:[#allocation10] sm:$0xff] }
 0x336   :  { %v1478_v45 = vpop.trf.xlu0 }
 0x337   :  { %3378 = vmatprep.mubr.msk.f32.mxu0 %vm1486_vm2, %v1478_v45 }
 0x33a   :  { %v1479_v54 = vpop.trf.xlu0 }
 0x33b   :  { %3379 = vmatmul.mubr.msk.f32.gmra.mrb[56].mxu0 %vm1486_vm2, %v1479_v54 }
 0x33e   :  { %v1480_v42 = vpop.trf.xlu0 }
 0x33f   :  { %3381 = vmatprep.mubr.msk.f32.mxu0 %vm1486_vm2, %v1480_v42 }
 0x342   :  { %v1481_v9 = vpop.trf.xlu0 }
 0x343   :  { %3382 = vmatmul.mubr.msk.f32.gmra.mrb[58].mxu0 %vm1486_vm2, %v1481_v9  ;;  %v5288_v9 = vld [vmem:[#allocation10 + $0x18] sm:$0xff] }
 0x346   :  { %v1482_v10 = vpop.trf.xlu0 }
 0x347   :  { %3384 = vmatprep.mubr.msk.f32.mxu0 %vm1486_vm2, %v1482_v10 }
 0x34a   :  { %v1483_v24 = vpop.trf.xlu0 }
 0x34b   :  { %3385 = vmatmul.mubr.msk.f32.gmra.mrb[60].mxu0 %vm1486_vm2, %v1483_v24 }
 0x34e   :  { %v1484_v41 = vpop.trf.xlu0 }
 0x34f   :  { %3387 = vmatprep.mubr.msk.f32.mxu0 %vm1486_vm2, %v1484_v41  ;;  %v5291_v41 = vld [vmem:[#allocation10 + $0x10] sm:$0xff] }
 0x352   :  { %v1485_v17 = vpop.trf.xlu0 }
 0x353   :  { %3388 = vmatmul.mubr.msk.f32.gmra.mrb[62].mxu0 %vm1486_vm2, %v1485_v17 }
 0x386   :  { %v5236_v4 = vpop.f32.mrb[24].mxu1 }
 0x387   :  { %v1118_v55 = vpop.f32.mrb[25].mxu1 }
 0x388   :  { %3997 = vrcp.f32 %v1118_v55 }
 0x38e   :  { %v5238_v6 = vpop.f32.mrb[26].mxu1 }
 0x38f   :  { %v5240_v35 = vpop.f32.mrb[27].mxu1 }
 0x392   :  { %v3998_v30 = vpop.eup %3997 }
 0x393   :  { %v1285_v21 = vmul.f32 %v3998_v30, %v5093_v48 }
 0x395   :  { %3422 = vmatprep.mubr.f32.mxu1 %v1285_v21  ;;  %v5294_v21 = vld [vmem:[#allocation10 + $0x28] sm:$0xff] }
 0x396   :  { %v5243_v34 = vpop.f32.mrb[28].mxu1 }
 0x397   :  { %v5245_v2 = vpop.f32.mrb[29].mxu1 }
 0x39e   :  { %v5247_v52 = vpop.f32.mrb[30].mxu1 }
 0x39f   :  { %v5249_v32 = vpop.f32.mrb[31].mxu1 }
 0x3a6   :  { %v5251_v20 = vpop.f32.mrb[32].mxu1 }
 0x3a7   :  { %v5253_v1 = vpop.f32.mrb[33].mxu1 }
 0x3ae   :  { %v5255_v44 = vpop.f32.mrb[34].mxu1 }
 0x3af   :  { %v5257_v18 = vpop.f32.mrb[35].mxu1 }
 0x3b6   :  { %v5259_v11 = vpop.f32.mrb[36].mxu1 }
 0x3b7   :  { %v1178_v48 = vpop.f32.mrb[37].mxu1 }
 0x3b8   :  { %3999 = vrcp.f32 %v1178_v48 }
 0x3b9   :  { %4001 = vrcp.f32 %v5236_v4 }
 0x3ba   :  { %4003 = vrcp.f32 %v5240_v35 }
 0x3bb   :  { %4005 = vrcp.f32 %v5238_v6 }
 0x3bc   :  { %4007 = vrcp.f32 %v5245_v2 }
 0x3bd   :  { %4009 = vrcp.f32 %v5243_v34 }
 0x3be   :  { %v5261_v37 = vpop.f32.mrb[38].mxu1  ;;  %4011 = vrcp.f32 %v5249_v32 }
 0x3bf   :  { %v5263_v57 = vpop.f32.mrb[39].mxu1  ;;  %4013 = vrcp.f32 %v5247_v52  ;;  %v5902_v52 = vld [vmem:[#allocation38_spill] sm:$0xff] }
 0x3c0   :  { %4015 = vrcp.f32 %v5253_v1 }
 0x3c1   :  { %4017 = vrcp.f32 %v5251_v20 }
 0x3c2   :  { %v4000_v61 = vpop.eup %3999  ;;  %4019 = vrcp.f32 %v5257_v18 }
 0x3c3   :  { %v1297_v31 = vmul.f32 %v4000_v61, %v5173_v15  ;;  %v4002_v35 = vpop.eup %4001  ;;  %4021 = vrcp.f32 %v5255_v44 }
 0x3c4   :  { %v1286_v2 = vmul.f32 %v4002_v35, %v5103_v13  ;;  %4023 = vrcp.f32 %v5259_v11 }
 0x3c5   :  { %3520 = vmatprep.mubr.f32.mxu0 %v1297_v31  ;;  %v5297_v31 = vld [vmem:[#allocation10 + $0x20] sm:$0xff]  ;;  %4025 = vrcp.f32 %v5263_v57 }
 0x3c6   :  { %v5266_v47 = vpop.f32.mrb[40].mxu1  ;;  %4027 = vrcp.f32 %v5261_v37 }
 0x3c7   :  { %v5268_v26 = vpop.f32.mrb[41].mxu1 }
 0x3c8   :  { %4029 = vrcp.f32 %v5268_v26 }
 0x3c9   :  { %4031 = vrcp.f32 %v5266_v47 }
 0x3ce   :  { %v5270_v14 = vpop.f32.mrb[42].mxu1 }
 0x3cf   :  { %v5272_v58 = vpop.f32.mrb[43].mxu1 }
 0x3d0   :  { %4033 = vrcp.f32 %v5272_v58  ;;  %v5909_v58 = vld [vmem:[#allocation42_spill] sm:$0xff] }
 0x3d6   :  { %v5274_v46 = vpop.f32.mrb[44].mxu1 }
 0x3d7   :  { %v5276_v49 = vpop.f32.mrb[45].mxu1 }
 0x3de   :  { %v5278_v63 = vpop.f32.mrb[46].mxu1 }
 0x3df   :  { %5900 = vst [vmem:[#allocation48_spill] sm:$0xff] %v5278_v63  ;;  %v5280_v28 = vpop.f32.mrb[47].mxu1  ;;  %v5331_v63 = vld [vmem:[#allocation10 + $0x60] sm:$0xff] }
 0x3ee   :  { %v3368_v36 = vpop.f32.mrb[48].mxu0 }
 0x3ef   :  { %v1681_v15 = vmul.f32 %v5282_v0, %v3368_v36  ;;  %v1601_v3 = vpop.f32.mrb[49].mxu0 }
 0x3f0   :  { %v1680_v45 = vmul.f32 %v5285_v8, %v1601_v3 }
 0x3f2   :  { %v3726_v54 = vpack.c.bf16 %v1681_v15, %v1680_v45  ;;  %v5300_v45 = vld [vmem:[#allocation10 + $0x38] sm:$0xff] }
 0x3f4   :  { %3727 = vmatprep.subr.bf16.mxu1 %v3726_v54 }
 0x3f5   :  { %3729 = vmatpush3.bf16.msra.mxu1 %v3726_v54 }
 0x3f6   :  { %v3371_v42 = vpop.f32.mrb[50].mxu0 }
 0x3f7   :  { %v1683_v10 = vmul.f32 %v5288_v9, %v3371_v42  ;;  %v1611_v24 = vpop.f32.mrb[51].mxu0 }
 0x3f8   :  { %v1682_v17 = vmul.f32 %v5291_v41, %v1611_v24  ;;  %v5305_v24 = vld [vmem:[#allocation10 + $0x30] sm:$0xff] }
 0x3fa   :  { %v3730_v55 = vpack.c.bf16 %v1683_v10, %v1682_v17  ;;  %v5303_v10 = vpop.trf.xlu1 }
 0x3fc   :  { %3731 = vmatprep.subr.bf16.mxu1 %v3730_v55 }
 0x3fd   :  { %3733 = vmatpush3.bf16.msra.mxu1 %v3730_v55 }
 0x3fe   :  { %v3374_v30 = vpop.f32.mrb[52].mxu0 }
 0x3ff   :  { %v1685_v48 = vmul.f32 %v5294_v21, %v3374_v30  ;;  %v1621_v61 = vpop.f32.mrb[53].mxu0  ;;  %v5308_v30 = vpop.trf.xlu1 }
 0x400   :  { %v1684_v36 = vmul.f32 %v5297_v31, %v1621_v61  ;;  %v5310_v61 = vld [vmem:[#allocation10 + $0x48] sm:$0xff] }
 0x402   :  { %v3734_v15 = vpack.c.bf16 %v1685_v48, %v1684_v36 }
 0x403   :  { %v5316_v12 = vpop.trf.xlu1 }
 0x404   :  { %3735 = vmatprep.subr.bf16.mxu1 %v3734_v15 }
 0x405   :  { %3737 = vmatpush3.bf16.msra.mxu1 %v3734_v15 }
 0x406   :  { %v3377_v3 = vpop.f32.mrb[54].mxu0 }
 0x407   :  { %v1687_v54 = vmul.f32 %v5300_v45, %v3377_v3  ;;  %v1631_v42 = vpop.f32.mrb[55].mxu0  ;;  %v5324_v40 = vpop.trf.xlu1 }
 0x408   :  { %v1686_v17 = vmul.f32 %v5305_v24, %v1631_v42  ;;  %v5318_v42 = vld [vmem:[#allocation10 + $0x58] sm:$0xff] }
 0x40a   :  { %v3738_v55 = vpack.c.bf16 %v1687_v54, %v1686_v17 }
 0x40b   :  { %v5329_v39 = vpop.trf.xlu1 }
 0x40c   :  { %3739 = vmatprep.subr.bf16.mxu1 %v3738_v55 }
 0x40d   :  { %3741 = vmatpush3.bf16.msra.mxu1 %v3738_v55 }
 0x40e   :  { %v3380_v48 = vpop.f32.mrb[56].mxu0 }
 0x40f   :  { %v1689_v36 = vmul.f32 %v5310_v61, %v3380_v48  ;;  %v1641_v15 = vpop.f32.mrb[57].mxu0 }
 0x410   :  { %v1688_v3 = vmul.f32 %v5313_v16, %v1641_v15  ;;  %v5326_v15 = vld [vmem:[#allocation10 + $0x68] sm:$0xff] }
 0x412   :  { %v3742_v60 = vpack.c.bf16 %v1689_v36, %v1688_v3 }
 0x414   :  { %3743 = vmatprep.subr.bf16.mxu1 %v3742_v60 }
 0x415   :  { %3745 = vmatpush3.bf16.msra.mxu1 %v3742_v60 }
 0x416   :  { %v3383_v54 = vpop.f32.mrb[58].mxu0 }
 0x417   :  { %v1691_v17 = vmul.f32 %v5318_v42, %v3383_v54  ;;  %v1651_v55 = vpop.f32.mrb[59].mxu0 }
 0x418   :  { %v1690_v48 = vmul.f32 %v5321_v51, %v1651_v55 }
 0x41a   :  { %v3746_v22 = vpack.c.bf16 %v1691_v17, %v1690_v48  ;;  %v5340_v48 = vld [vmem:[#allocation10 + $0x78] sm:$0xff] }
 0x41c   :  { %3747 = vmatprep.subr.bf16.mxu1 %v3746_v22 }
 0x41d   :  { %3749 = vmatpush3.bf16.msra.mxu1 %v3746_v22  ;;  %v5337_v22 = vpop.trf.xlu1 }
 0x41e   :  { %v3386_v36 = vpop.f32.mrb[60].mxu0 }
 0x41f   :  { %v1693_v60 = vmul.f32 %v5326_v15, %v3386_v36  ;;  %v1661_v3 = vpop.f32.mrb[61].mxu0 }
 0x420   :  { %v1692_v54 = vmul.f32 %v5331_v63, %v1661_v3  ;;  %v5343_v3 = vld [vmem:[#allocation10 + $0x70] sm:$0xff] }
 0x422   :  { %v3750_v55 = vpack.c.bf16 %v1693_v60, %v1692_v54  ;;  %v5348_v60 = vpop.trf.xlu1  ;;  %v4004_v54 = vpop.eup %4003  ;;  %4035 = vrcp.f32 %v5270_v14 }
 0x423   :  { %v1287_v34 = vmul.f32 %v4004_v54, %v5109_v43  ;;  %v5903_v43 = vld [vmem:[#allocation39_spill] sm:$0xff] }
 0x424   :  { %3751 = vmatprep.subr.bf16.mxu1 %v3750_v55 }
 0x425   :  { %3753 = vmatpush3.bf16.msra.mxu1 %v3750_v55  ;;  %v5901_v55 = vld [vmem:[#allocation36_spill] sm:$0xff] }
 0x426   :  { %v3389_v17 = vpop.f32.mrb[62].mxu0  ;;  %v5357_v32 = vpop.trf.xlu1 }
 0x427   :  { %v1695_v36 = vmul.f32 %v5340_v48, %v3389_v17  ;;  %v1671_v19 = vpop.f32.mrb[63].mxu0 }
 0x428   :  { %v1694_v4 = vmul.f32 %v5343_v3, %v1671_v19  ;;  %v4006_v19 = vpop.eup %4005  ;;  %4037 = vrcp.f32 %v5276_v49 }
 0x429   :  { %v4008_v17 = vpop.eup %4007  ;;  %v1288_v13 = vmul.f32 %v4006_v19, %v5114_v56  ;;  %v5904_v56 = vld [vmem:[#allocation40_spill] sm:$0xff]  ;;  %4039 = vrcp.f32 %v5274_v46 }
 0x42a   :  { %v3754_v6 = vpack.c.bf16 %v1695_v36, %v1694_v4  ;;  %v4010_v1 = vpop.eup %4009  ;;  %v1289_v36 = vmul.f32 %v4008_v17, %v5119_v33  ;;  %v2002_v35 = vpop.trf.xlu1  ;;  %4041 = vrcp.f32 %v5280_v28  ;;  %v5912_v28 = vld [vmem:[#allocation44_spill] sm:$0xff] }
 0x42b   :  { %v4012_v4 = vpop.eup %4011  ;;  %v1290_v20 = vmul.f32 %v4010_v1, %v5124_v53 }
 0x42c   :  { %3755 = vmatprep.subr.bf16.mxu1 %v3754_v6  ;;  %v1291_v18 = vmul.f32 %v4012_v4, %v5129_v25  ;;  %v5905_v25 = vld [vmem:[#allocation41_spill] sm:$0xff] }
 0x42d   :  { %3757 = vmatpush3.bf16.msra.mxu1 %v3754_v6  ;;  %v4014_v6 = vpop.eup %4013  ;;  %v2359_v4 = vld [vmem:[#allocation9 + $0x18] sm:$0xff] }
 0x42e   :  { %3759 = vmatprep.subr.bf16.mxu1 %v5901_v55  ;;  %v4016_v54 = vpop.eup %4015  ;;  %v1292_v33 = vmul.f32 %v4014_v6, %v5134_v50  ;;  %v2003_v53 = vpop.trf.xlu1 }
 0x42f   :  { %v4018_v44 = vpop.eup %4017 }
 0x430   :  { %3423 = vmatmul.mubr.f32.vlgmr.msra.gmra.mrb[48].mxu1 %v1286_v2  ;;  %v1293_v2 = vmul.f32 %v4016_v54, %v5143_v5  ;;  %v1294_v19 = vmul.f32 %v4018_v44, %v5161_v27 }
 0x431   :  { %3425 = vmatprep.mubr.f32.mxu1 %v1287_v34  ;;  %3761 = vmatpush3.bf16.msra.mxu1 %v5901_v55  ;;  %v4020_v55 = vpop.eup %4019 }
 0x432   :  { %3763 = vmatprep.subr.bf16.mxu1 %v5902_v52  ;;  %v4022_v34 = vpop.eup %4021  ;;  %v1295_v17 = vmul.f32 %v4020_v55, %v5165_v7  ;;  %v2004_v1 = vpop.trf.xlu1  ;;  %v2360_v7 = vld [vmem:[#allocation9 + $0x20] sm:$0xff]  ;;  %v2371_v55 = vld [vmem:[#allocation9 + $0x78] sm:$0xff] }
 0x433   :  { %v1296_v50 = vmul.f32 %v4022_v34, %v5169_v59 }
 0x434   :  { %3426 = vmatmul.mubr.f32.gmra.mrb[50].mxu1 %v1288_v13  ;;  %v2357_v13 = vld [vmem:[#allocation9 + $0x8] sm:$0xff] }
 0x435   :  { %3428 = vmatprep.mubr.f32.mxu1 %v1289_v36  ;;  %3765 = vmatpush3.bf16.msra.mxu1 %v5902_v52  ;;  %v2356_v52 = vld [vmem:[#allocation9] sm:$0xff]  ;;  %v2358_v36 = vld [vmem:[#allocation9 + $0x10] sm:$0xff] }
 0x436   :  { %3767 = vmatprep.subr.bf16.mxu1 %v5903_v43  ;;  %v5379_v5 = vpack.c.bf16 %v2357_v13, %v2356_v52  ;;  %v5385_v27 = vpack.c.bf16 %v2359_v4, %v2358_v36  ;;  %v2005_v59 = vpop.trf.xlu1 }
 0x438   :  { %3429 = vmatmul.mubr.f32.gmra.mrb[52].mxu1 %v1290_v20  ;;  %v2365_v20 = vld [vmem:[#allocation9 + $0x48] sm:$0xff] }
 0x439   :  { %3431 = vmatprep.mubr.f32.mxu1 %v1291_v18  ;;  %3769 = vmatpush3.bf16.msra.mxu1 %v5903_v43  ;;  %v2361_v43 = vld [vmem:[#allocation9 + $0x28] sm:$0xff]  ;;  %v2366_v18 = vld [vmem:[#allocation9 + $0x50] sm:$0xff] }
 0x43a   :  { %3771 = vmatprep.subr.bf16.mxu1 %v5904_v56 }
 0x43c   :  { %3432 = vmatmul.mubr.f32.gmra.mrb[54].mxu1 %v1292_v33  ;;  %v2369_v33 = vld [vmem:[#allocation9 + $0x68] sm:$0xff] }
 0x43d   :  { %3434 = vmatprep.mubr.f32.mxu1 %v1293_v2  ;;  %3773 = vmatpush3.bf16.msra.mxu1 %v5904_v56  ;;  %v2368_v56 = vld [vmem:[#allocation9 + $0x60] sm:$0xff]  ;;  %v2370_v2 = vld [vmem:[#allocation9 + $0x70] sm:$0xff] }
 0x43e   :  { %3775 = vmatprep.subr.bf16.mxu1 %v5905_v25  ;;  %v5428_v44 = vpack.c.bf16 %v2369_v33, %v2368_v56 }
 0x440   :  { %3435 = vmatmul.mubr.f32.gmra.mrb[56].mxu1 %v1294_v19 }
 0x441   :  { %3437 = vmatprep.mubr.f32.mxu1 %v1295_v17  ;;  %3777 = vmatpush3.bf16.msra.mxu1 %v5905_v25 }
 0x442   :  { %3779 = vmatprep.subr.bf16.mxu1 %v5010_v29 }
 0x444   :  { %3438 = vmatmul.mubr.f32.gmra.mrb[58].mxu1 %v1296_v50 }
 0x445   :  { %3781 = vmatpush3.bf16.msra.mxu1 %v5010_v29  ;;  %3464 = vmatprep.mubr.msk.f32.mxu1 %vm1486_vm2, %v5303_v10  ;;  %v5393_v29 = vpack.c.bf16 %v2361_v43, %v2360_v7  ;;  %v2006_v10 = vpop.trf.xlu1 }
 0x446   :  { %3846 = vmatprep.subr.bf16.mxu1 %v5379_v5 }
 0x448   :  { %3465 = vmatmul.mubr.msk.f32.vlgmr.msra.gmra.mrb[60].mxu1 %vm1486_vm2, %v5308_v30  ;;  %v2362_v30 = vld [vmem:[#allocation9 + $0x30] sm:$0xff] }
 0x449   :  { %3467 = vmatprep.mubr.msk.f32.mxu1 %vm1486_vm2, %v5316_v12  ;;  %3854 = vmatpush3.bf16.msra.mxu1 %v5379_v5 }
 0x44a   :  { %3847 = vmatprep.subr.bf16.mxu1 %v5385_v27 }
 0x44c   :  { %3468 = vmatmul.mubr.msk.f32.gmra.mrb[62].mxu1 %vm1486_vm2, %v5324_v40  ;;  %v2007_v40 = vpop.trf.xlu1 }
 0x44d   :  { %3470 = vmatprep.mubr.msk.f32.mxu1 %vm1486_vm2, %v5329_v39  ;;  %3855 = vmatpush3.bf16.msra.mxu1 %v5385_v27 }
 0x44e   :  { %3848 = vmatprep.subr.bf16.mxu1 %v5393_v29 }
 0x450   :  { %3471 = vmatmul.mubr.msk.f32.gmra.mrb[64].mxu1 %vm1486_vm2, %v5337_v22  ;;  %v2008_v39 = vpop.trf.xlu1  ;;  %v2363_v22 = vld [vmem:[#allocation9 + $0x38] sm:$0xff] }
 0x451   :  { %3473 = vmatprep.mubr.msk.f32.mxu1 %vm1486_vm2, %v5348_v60  ;;  %3856 = vmatpush3.bf16.msra.mxu1 %v5393_v29  ;;  %v5416_v60 = vpack.c.bf16 %v2363_v22, %v2362_v30 }
 0x453   :  { %3849 = vmatprep.subr.bf16.mxu1 %v5416_v60 }
 0x454   :  { %3474 = vmatmul.mubr.msk.f32.gmra.mrb[66].mxu1 %vm1486_vm2, %v5357_v32  ;;  %v2009_v12 = vpop.trf.xlu1  ;;  %v2364_v32 = vld [vmem:[#allocation9 + $0x40] sm:$0xff] }
 0x455   :  { %3476 = vmatprep.mubr.msk.f32.mxu1 %vm1486_vm2, %v2002_v35  ;;  %3857 = vmatpush3.bf16.msra.mxu1 %v5416_v60  ;;  %v5420_v6 = vpack.c.bf16 %v2365_v20, %v2364_v32  ;;  %v2367_v35 = vld [vmem:[#allocation9 + $0x58] sm:$0xff] }
 0x456   :  { %v5424_v54 = vpack.c.bf16 %v2367_v35, %v2366_v18 }
 0x457   :  { %3850 = vmatprep.subr.bf16.mxu1 %v5420_v6 }
 0x458   :  { %3477 = vmatmul.mubr.msk.f32.gmra.mrb[68].mxu1 %vm1486_vm2, %v2003_v53  ;;  %v5432_v53 = vpack.c.bf16 %v2371_v55, %v2370_v2 }
 0x459   :  { %3479 = vmatprep.mubr.msk.f32.mxu1 %vm1486_vm2, %v2004_v1  ;;  %3858 = vmatpush3.bf16.msra.mxu1 %v5420_v6 }
 0x45a   :  { %3851 = vmatprep.subr.bf16.mxu1 %v5424_v54 }
 0x45c   :  { %3480 = vmatmul.mubr.msk.f32.gmra.mrb[70].mxu1 %vm1486_vm2, %v2005_v59 }
 0x45d   :  { %3482 = vmatprep.mubr.msk.f32.mxu1 %vm1486_vm2, %v2006_v10  ;;  %3859 = vmatpush3.bf16.msra.mxu1 %v5424_v54  ;;  %v5907_v10 = vld [vmem:[#allocation22_spill] sm:$0xff] }
 0x45e   :  { %3852 = vmatprep.subr.bf16.mxu1 %v5428_v44 }
 0x460   :  { %3483 = vmatmul.mubr.msk.f32.gmra.mrb[72].mxu1 %vm1486_vm2, %v2007_v40  ;;  %v5908_v40 = vld [vmem:[#allocation33_spill] sm:$0xff] }
 0x461   :  { %3485 = vmatprep.mubr.msk.f32.mxu1 %vm1486_vm2, %v2008_v39  ;;  %3860 = vmatpush3.bf16.msra.mxu1 %v5428_v44 }
 0x462   :  { %3853 = vmatprep.subr.bf16.mxu1 %v5432_v53 }
 0x464   :  { %3486 = vmatmul.mubr.msk.f32.gmra.mrb[74].mxu1 %vm1486_vm2, %v2009_v12 }
 0x465   :  { %3861 = vmatpush3.bf16.msra.mxu1 %v5432_v53 }
 0x503   :  { %v5436_v25 = vpop.f32.mrb[48].mxu1 }
 0x504   :  { %v5438_v19 = vpop.f32.mrb[49].mxu1 }
 0x507   :  { %v5440_v34 = vpop.f32.mrb[50].mxu1 }
 0x508   :  { %v5442_v17 = vpop.f32.mrb[51].mxu1 }
 0x50b   :  { %v5444_v52 = vpop.f32.mrb[52].mxu1 }
 0x50c   :  { %v5446_v13 = vpop.f32.mrb[53].mxu1 }
 0x50f   :  { %v5448_v50 = vpop.f32.mrb[54].mxu1 }
 0x510   :  { %v5450_v1 = vpop.f32.mrb[55].mxu1 }
 0x513   :  { %v5452_v36 = vpop.f32.mrb[56].mxu1 }
 0x514   :  { %v5454_v4 = vpop.f32.mrb[57].mxu1 }
 0x517   :  { %v3439_v7 = vpop.f32.mrb[58].mxu1 }
 0x518   :  { %v1812_v43 = vpop.f32.mrb[59].mxu1 }
 0x519   :  { %3585 = vmatprep.mubr.msk.f32.mxu1 %vm121_vm14, %v1812_v43 }
 0x51a   :  { %3586 = vmatmul.mubr.msk.f32.vlgmr.msra.gmra.mrb[76].mxu1 %vm122_vm15, %v3439_v7 }
 0x51b   :  { %v3466_v39 = vpop.f32.mrb[60].mxu1 }
 0x51c   :  { %v2204_v12 = vmul.f32 %v5282_v0, %v3466_v39  ;;  %v2124_v30 = vpop.f32.mrb[61].mxu1 }
 0x51d   :  { %v2203_v22 = vmul.f32 %v5285_v8, %v2124_v30 }
 0x51f   :  { %v3782_v32 = vpack.c.bf16 %v2204_v12, %v2203_v22  ;;  %v3469_v20 = vpop.f32.mrb[62].mxu1 }
 0x520   :  { %v2206_v18 = vmul.f32 %v5288_v9, %v3469_v20  ;;  %v2134_v35 = vpop.f32.mrb[63].mxu1 }
 0x521   :  { %v2205_v56 = vmul.f32 %v5291_v41, %v2134_v35  ;;  %3783 = vmatprep.subr.bf16.mxu0 %v3782_v32 }
 0x522   :  { %3785 = vmatpush3.bf16.msra.mxu0 %v3782_v32 }
 0x523   :  { %v3786_v33 = vpack.c.bf16 %v2206_v18, %v2205_v56  ;;  %v3472_v2 = vpop.f32.mrb[64].mxu1 }
 0x524   :  { %v2208_v55 = vmul.f32 %v5294_v21, %v3472_v2  ;;  %v2144_v7 = vpop.f32.mrb[65].mxu1 }
 0x525   :  { %v2207_v43 = vmul.f32 %v5297_v31, %v2144_v7  ;;  %3787 = vmatprep.subr.bf16.mxu0 %v3786_v33  ;;  %v5910_v7 = vld [vmem:[#allocation48_spill] sm:$0xff] }
 0x526   :  { %3789 = vmatpush3.bf16.msra.mxu0 %v3786_v33  ;;  %4043 = vrcp.f32 %v5910_v7 }
 0x527   :  { %v3790_v0 = vpack.c.bf16 %v2208_v55, %v2207_v43  ;;  %v3475_v8 = vpop.f32.mrb[66].mxu1 }
 0x528   :  { %v2210_v39 = vmul.f32 %v5300_v45, %v3475_v8  ;;  %v2154_v12 = vpop.f32.mrb[67].mxu1 }
 0x529   :  { %v2209_v9 = vmul.f32 %v5305_v24, %v2154_v12  ;;  %3791 = vmatprep.subr.bf16.mxu0 %v3790_v0  ;;  %v5914_v12 = vld [vmem:[#allocation37_spill] sm:$0xff] }
 0x52a   :  { %3793 = vmatpush3.bf16.msra.mxu0 %v3790_v0  ;;  %v5913_v0 = vld [vmem:[#allocation35_spill] sm:$0xff] }
 0x52b   :  { %v3794_v41 = vpack.c.bf16 %v2210_v39, %v2209_v9  ;;  %v3478_v30 = vpop.f32.mrb[68].mxu1 }
 0x52c   :  { %v2212_v22 = vmul.f32 %v5310_v61, %v3478_v30  ;;  %v2164_v32 = vpop.f32.mrb[69].mxu1 }
 0x52d   :  { %v2211_v21 = vmul.f32 %v5313_v16, %v2164_v32  ;;  %3795 = vmatprep.subr.bf16.mxu0 %v3794_v41  ;;  %v5916_v32 = vld [vmem:[#allocation46_spill] sm:$0xff] }
 0x52e   :  { %3797 = vmatpush3.bf16.msra.mxu0 %v3794_v41  ;;  %v5915_v41 = vld [vmem:[#allocation45_spill] sm:$0xff] }
 0x52f   :  { %v3798_v31 = vpack.c.bf16 %v2212_v22, %v2211_v21  ;;  %v3481_v20 = vpop.f32.mrb[70].mxu1 }
 0x530   :  { %v2214_v18 = vmul.f32 %v5318_v42, %v3481_v20  ;;  %v2174_v35 = vpop.f32.mrb[71].mxu1 }
 0x531   :  { %v2213_v45 = vmul.f32 %v5321_v51, %v2174_v35  ;;  %3799 = vmatprep.subr.bf16.mxu0 %v3798_v31 }
 0x532   :  { %3801 = vmatpush3.bf16.msra.mxu0 %v3798_v31 }
 0x533   :  { %v3802_v24 = vpack.c.bf16 %v2214_v18, %v2213_v45  ;;  %v3484_v61 = vpop.f32.mrb[72].mxu1 }
 0x534   :  { %v2216_v56 = vmul.f32 %v5326_v15, %v3484_v61  ;;  %v2184_v16 = vpop.f32.mrb[73].mxu1  ;;  %v4024_v15 = vpop.eup %4023 }
 0x535   :  { %v2215_v33 = vmul.f32 %v5331_v63, %v2184_v16  ;;  %3803 = vmatprep.subr.bf16.mxu0 %v3802_v24  ;;  %v4026_v55 = vpop.eup %4025  ;;  %v1298_v37 = vmul.f32 %v4024_v15, %v5177_v23 }
 0x536   :  { %3805 = vmatpush3.bf16.msra.mxu0 %v3802_v24  ;;  %v4028_v26 = vpop.eup %4027 }
 0x537   :  { %v3806_v51 = vpack.c.bf16 %v2216_v56, %v2215_v33  ;;  %v3487_v42 = vpop.f32.mrb[74].mxu1  ;;  %v4030_v47 = vpop.eup %4029  ;;  %v1300_v14 = vmul.f32 %v4028_v26, %v5185_v62 }
 0x538   :  { %v2218_v11 = vmul.f32 %v5340_v48, %v3487_v42  ;;  %v2194_v2 = vpop.f32.mrb[75].mxu1  ;;  %v1299_v48 = vmul.f32 %v4026_v55, %v5181_v38  ;;  %v4032_v23 = vpop.eup %4031  ;;  %v1301_v49 = vmul.f32 %v4030_v47, %v5909_v58  ;;  %v5911_v38 = vld [vmem:[#allocation43_spill] sm:$0xff] }
 0x539   :  { %v2217_v57 = vmul.f32 %v5343_v3, %v2194_v2  ;;  %3807 = vmatprep.subr.bf16.mxu0 %v3806_v51  ;;  %v4034_v3 = vpop.eup %4033  ;;  %v1302_v46 = vmul.f32 %v4032_v23, %v5911_v38 }
 0x53a   :  { %3809 = vmatpush3.bf16.msra.mxu0 %v3806_v51  ;;  %v1303_v43 = vmul.f32 %v4034_v3, %v5912_v28 }
 0x53b   :  { %v3810_v63 = vpack.c.bf16 %v2218_v11, %v2217_v57 }
 0x53d   :  { %3811 = vmatprep.subr.bf16.mxu0 %v3810_v63 }
 0x53e   :  { %3813 = vmatpush3.bf16.msra.mxu0 %v3810_v63 }
 0x53f   :  { %3815 = vmatprep.subr.bf16.mxu0 %v5379_v5 }
 0x541   :  { %3521 = vmatmul.mubr.f32.vlgmr.msra.gmra.mrb[64].mxu0 %v1298_v37 }
 0x542   :  { %3523 = vmatprep.mubr.f32.mxu0 %v1299_v48  ;;  %3817 = vmatpush3.bf16.msra.mxu0 %v5379_v5  ;;  %v4036_v5 = vpop.eup %4035 }
 0x543   :  { %3819 = vmatprep.subr.bf16.mxu0 %v5385_v27  ;;  %v4038_v62 = vpop.eup %4037  ;;  %v1304_v8 = vmul.f32 %v4036_v5, %v5913_v0 }
 0x544   :  { %v4040_v39 = vpop.eup %4039  ;;  %v1305_v9 = vmul.f32 %v4038_v62, %v5914_v12 }
 0x545   :  { %3524 = vmatmul.mubr.f32.gmra.mrb[66].mxu0 %v1300_v14  ;;  %v1306_v30 = vmul.f32 %v4040_v39, %v5915_v41 }
 0x546   :  { %3526 = vmatprep.mubr.f32.mxu0 %v1301_v49  ;;  %3821 = vmatpush3.bf16.msra.mxu0 %v5385_v27  ;;  %v4042_v27 = vpop.eup %4041 }
 0x547   :  { %3823 = vmatprep.subr.bf16.mxu0 %v5393_v29  ;;  %v4044_v22 = vpop.eup %4043  ;;  %v1307_v21 = vmul.f32 %v4042_v27, %v5916_v32 }
 0x549   :  { %3527 = vmatmul.mubr.f32.gmra.mrb[68].mxu0 %v1302_v46 }
 0x54a   :  { %3529 = vmatprep.mubr.f32.mxu0 %v1303_v43  ;;  %3825 = vmatpush3.bf16.msra.mxu0 %v5393_v29  ;;  %v5917_v29 = vld [vmem:[#allocation47_spill] sm:$0xff] }
 0x54b   :  { %3827 = vmatprep.subr.bf16.mxu0 %v5416_v60  ;;  %v1308_v31 = vmul.f32 %v4044_v22, %v5917_v29 }
 0x54d   :  { %3530 = vmatmul.mubr.f32.gmra.mrb[70].mxu0 %v1304_v8 }
 0x54e   :  { %3532 = vmatprep.mubr.f32.mxu0 %v1305_v9  ;;  %3829 = vmatpush3.bf16.msra.mxu0 %v5416_v60 }
 0x54f   :  { %3831 = vmatprep.subr.bf16.mxu0 %v5420_v6 }
 0x551   :  { %3533 = vmatmul.mubr.f32.gmra.mrb[72].mxu0 %v1306_v30 }
 0x552   :  { %3535 = vmatprep.mubr.f32.mxu0 %v1307_v21  ;;  %3833 = vmatpush3.bf16.msra.mxu0 %v5420_v6 }
 0x553   :  { %3835 = vmatprep.subr.bf16.mxu0 %v5424_v54 }
 0x555   :  { %3536 = vmatmul.mubr.f32.gmra.mrb[74].mxu0 %v1308_v31 }
 0x556   :  { %3837 = vmatpush3.bf16.msra.mxu0 %v5424_v54  ;;  %3570 = vmatprep.mubr.msk.f32.mxu0 %vm111_vm4, %v5438_v19  ;;  %v5920_v54 = vld [vmem:[#allocation26_spill] sm:$0xff] }
 0x557   :  { %3839 = vmatprep.subr.bf16.mxu0 %v5428_v44 }
 0x55a   :  { %3841 = vmatpush3.bf16.msra.mxu0 %v5428_v44  ;;  %v5922_v44 = vld [vmem:[#allocation23_spill] sm:$0xff] }
 0x55b   :  { %3843 = vmatprep.subr.bf16.mxu0 %v5432_v53 }
 0x55e   :  { %3845 = vmatpush3.bf16.msra.mxu0 %v5432_v53  ;;  %v5923_v53 = vld [vmem:[#allocation25_spill] sm:$0xff] }
 0x561   :  { %3571 = vmatmul.mubr.msk.f32.vlgmr.msra.gmra.mrb[76].mxu0 %vm112_vm6, %v5436_v25  ;;  %v5924_v25 = vld [vmem:[#allocation27_spill] sm:$0xff] }
 0x562   :  { %3573 = vmatprep.mubr.msk.f32.mxu0 %vm113_vm8, %v5442_v17  ;;  %v5925_v17 = vld [vmem:[#allocation29_spill] sm:$0xff] }
 0x565   :  { %3574 = vmatmul.mubr.msk.f32.gmra.mrb[78].mxu0 %vm114_vm10, %v5440_v34  ;;  %v5926_v34 = vld [vmem:[#allocation30_spill] sm:$0xff] }
 0x566   :  { %3576 = vmatprep.mubr.msk.f32.mxu0 %vm115_vm5, %v5446_v13  ;;  %v5927_v13 = vld [vmem:[#allocation31_spill] sm:$0xff] }
 0x567   :  { %vm5928_vm4 = vcmp.lt.s32.totalorder %v5927_v13, %v5907_v10 }
 0x569   :  { %3577 = vmatmul.mubr.msk.f32.gmra.mrb[80].mxu0 %vm116_vm7, %v5444_v52 }
 0x56a   :  { %3579 = vmatprep.mubr.msk.f32.mxu0 %vm117_vm9, %v5450_v1 }
 0x56d   :  { %3580 = vmatmul.mubr.msk.f32.gmra.mrb[82].mxu0 %vm118_vm11, %v5448_v50 }
 0x56e   :  { %3582 = vmatprep.mubr.msk.f32.mxu0 %vm119_vm12, %v5454_v4  ;;  %v5929_v4 = vld [vmem:[#allocation34_spill] sm:$0xff] }
 0x56f   :  { %vm5930_vm5 = vcmp.lt.s32.totalorder %v5920_v54, %v5929_v4  ;;  %vm5931_vm6 = vcmp.lt.s32.totalorder %v5922_v44, %v5929_v4  ;;  %vm5932_vm7 = vcmp.lt.s32.totalorder %v5923_v53, %v5929_v4  ;;  %vm5933_vm8 = vcmp.lt.s32.totalorder %v5924_v25, %v5929_v4 }
 0x570   :  { %vm5934_vm9 = vcmp.lt.s32.totalorder %v5925_v17, %v5929_v4  ;;  %vm5935_vm10 = vcmp.lt.s32.totalorder %v5926_v34, %v5929_v4  ;;  %vm5936_vm11 = vcmp.lt.s32.totalorder %v5927_v13, %v5929_v4  ;;  %vm5937_vm12 = vcmp.lt.s32.totalorder %v5908_v40, %v5929_v4 }
 0x571   :  { %3583 = vmatmul.mubr.msk.f32.gmra.mrb[84].mxu0 %vm5928_vm4, %v5452_v36 }
 0x5ed   :  { %v5556_v52 = vpop.f32.mrb[76].mxu1 }
 0x5ee   :  { %2581 = vadd.xlane.f32.xlu0 %v5556_v52  ;;  %v5559_v1 = vpop.f32.mrb[77].mxu1 }
 0x5ef   :  { %v2611_v20 = vmul.f32 %v5559_v1, %v5559_v1 }
 0x5f1   :  { %2633 = vadd.xlane.f32.xlu1 %v2611_v20 }
 0x5f2   :  { %2579 = vadd.xlane.f32.xlu0 %v5559_v1 }
 0x614   :  { %v3522_v50 = vpop.f32.mrb[64].mxu0 }
 0x615   :  { %v2285_v18 = vpop.f32.mrb[65].mxu0 }
 0x616   :  { %3588 = vmatprep.mubr.msk.f32.mxu1 %vm283_vm1, %v2285_v18 }
 0x617   :  { %3589 = vmatmul.mubr.msk.f32.gmra.mrb[78].mxu1 %vm284_vm0, %v3522_v50 }
 0x618   :  { %v3525_v36 = vpop.f32.mrb[66].mxu0 }
 0x619   :  { %v2295_v10 = vpop.f32.mrb[67].mxu0 }
 0x61a   :  { %3591 = vmatprep.mubr.msk.f32.mxu1 %vm5930_vm5, %v2295_v10 }
 0x61b   :  { %3592 = vmatmul.mubr.msk.f32.gmra.mrb[80].mxu1 %vm286_vm13, %v3525_v36 }
 0x61c   :  { %v3528_v35 = vpop.f32.mrb[68].mxu0 }
 0x61d   :  { %v2305_v45 = vpop.f32.mrb[69].mxu0 }
 0x61e   :  { %3594 = vmatprep.mubr.msk.f32.mxu1 %vm5931_vm6, %v2305_v45 }
 0x61f   :  { %3595 = vmatmul.mubr.msk.f32.gmra.mrb[82].mxu1 %vm5932_vm7, %v3528_v35 }
 0x620   :  { %v3531_v24 = vpop.f32.mrb[70].mxu0 }
 0x621   :  { %v2315_v61 = vpop.f32.mrb[71].mxu0 }
 0x622   :  { %3597 = vmatprep.mubr.msk.f32.mxu1 %vm5933_vm8, %v2315_v61 }
 0x623   :  { %3598 = vmatmul.mubr.msk.f32.gmra.mrb[84].mxu1 %vm5934_vm9, %v3531_v24 }
 0x624   :  { %v3534_v56 = vpop.f32.mrb[72].mxu0 }
 0x625   :  { %v2325_v16 = vpop.f32.mrb[73].mxu0 }
 0x626   :  { %3600 = vmatprep.mubr.msk.f32.mxu1 %vm5935_vm10, %v2325_v16 }
 0x627   :  { %3601 = vmatmul.mubr.msk.f32.gmra.mrb[86].mxu1 %vm5936_vm11, %v3534_v56 }
 0x628   :  { %v3537_v33 = vpop.f32.mrb[74].mxu0 }
 0x629   :  { %v2335_v51 = vpop.f32.mrb[75].mxu0 }
 0x62a   :  { %3603 = vmatprep.mubr.msk.f32.mxu1 %vm293_vm3, %v2335_v51 }
 0x62b   :  { %3604 = vmatmul.mubr.msk.f32.gmra.mrb[88].mxu1 %vm5937_vm12, %v3537_v33 }
 0x634   :  { %v5600_v42 = vpop.f32.mrb[76].mxu0 }
 0x635   :  { %2561 = vadd.xlane.f32.xlu1 %v5600_v42  ;;  %v5603_v11 = vpop.f32.mrb[77].mxu0  ;;  %v2602_v2 = vmul.f32 %v5600_v42, %v5600_v42 }
 0x636   :  { %2559 = vadd.xlane.f32.xlu0 %v5603_v11  ;;  %v2601_v40 = vmul.f32 %v5603_v11, %v5603_v11 }
 0x638   :  { %v5608_v57 = vpop.f32.mrb[78].mxu0 }
 0x639   :  { %v2604_v59 = vmul.f32 %v5608_v57, %v5608_v57  ;;  %v5612_v63 = vpop.f32.mrb[79].mxu0 }
 0x63a   :  { %2615 = vadd.xlane.f32.xlu0 %v2602_v2  ;;  %v2603_v49 = vmul.f32 %v5612_v63, %v5612_v63 }
 0x63b   :  { %2619 = vadd.xlane.f32.xlu1 %v2604_v59 }
 0x63c   :  { %v5616_v15 = vpop.f32.mrb[80].mxu0 }
 0x63d   :  { %v2606_v55 = vmul.f32 %v5616_v15, %v5616_v15  ;;  %v5620_v37 = vpop.f32.mrb[81].mxu0 }
 0x63e   :  { %2613 = vadd.xlane.f32.xlu0 %v2601_v40  ;;  %v2605_v48 = vmul.f32 %v5620_v37, %v5620_v37 }
 0x63f   :  { %2623 = vadd.xlane.f32.xlu1 %v2606_v55 }
 0x640   :  { %v5622_v26 = vpop.f32.mrb[82].mxu0 }
 0x641   :  { %v5626_v47 = vpop.f32.mrb[83].mxu0  ;;  %v2608_v23 = vmul.f32 %v5622_v26, %v5622_v26 }
 0x642   :  { %2565 = vadd.xlane.f32.xlu0 %v5608_v57  ;;  %v2607_v3 = vmul.f32 %v5626_v47, %v5626_v47 }
 0x643   :  { %2621 = vadd.xlane.f32.xlu1 %v2605_v48 }
 0x644   :  { %v5629_v14 = vpop.f32.mrb[84].mxu0 }
 0x645   :  { %v5633_v58 = vpop.f32.mrb[85].mxu0  ;;  %v2610_v7 = vmul.f32 %v5629_v14, %v5629_v14 }
 0x646   :  { %2563 = vadd.xlane.f32.xlu0 %v5612_v63  ;;  %v2609_v38 = vmul.f32 %v5633_v58, %v5633_v58 }
 0x647   :  { %2627 = vadd.xlane.f32.xlu1 %v2608_v23 }
 0x64a   :  { %2617 = vadd.xlane.f32.xlu0 %v2603_v49 }
 0x64b   :  { %2625 = vadd.xlane.f32.xlu1 %v2607_v3 }
 0x64e   :  { %2569 = vadd.xlane.f32.xlu0 %v5616_v15 }
 0x64f   :  { %2631 = vadd.xlane.f32.xlu1 %v2610_v7 }
 0x652   :  { %2567 = vadd.xlane.f32.xlu0 %v5620_v37 }
 0x653   :  { %2629 = vadd.xlane.f32.xlu1 %v2609_v38 }
 0x656   :  { %2573 = vadd.xlane.f32.xlu0 %v5622_v26 }
 0x65a   :  { %2571 = vadd.xlane.f32.xlu0 %v5626_v47 }
 0x65e   :  { %2577 = vadd.xlane.f32.xlu0 %v5629_v14 }
 0x662   :  { %2575 = vadd.xlane.f32.xlu0 %v5633_v58 }
 0x67b   :  { %v5650_v46 = vpop.xlane.xlu0 %2581 }
 0x67e   :  { %v2634_v28 = vpop.xlane.xlu1 %2633 }
 0x67f   :  { %v2580_v5 = vpop.xlane.xlu0 %2579 }
 0x6c2   :  { %v2562_v62 = vpop.xlane.xlu1 %2561 }
 0x6c3   :  { %v2560_v43 = vpop.xlane.xlu0 %2559 }
 0x6c4   :  { %v2583_v30 = vadd.f32 %v2562_v62, %v2560_v43 }
 0x6c7   :  { %v2616_v0 = vpop.xlane.xlu0 %2615 }
 0x6c8   :  { %v2620_v8 = vpop.xlane.xlu1 %2619 }
 0x6cb   :  { %v2614_v39 = vpop.xlane.xlu0 %2613 }
 0x6cc   :  { %v2637_v12 = vadd.f32 %v2616_v0, %v2614_v39  ;;  %v2624_v9 = vpop.xlane.xlu1 %2623 }
 0x6cf   :  { %v2566_v27 = vpop.xlane.xlu0 %2565 }
 0x6d0   :  { %v2622_v41 = vpop.xlane.xlu1 %2621 }
 0x6d3   :  { %v2564_v22 = vpop.xlane.xlu0 %2563 }
 0x6d4   :  { %v2584_v32 = vadd.f32 %v2583_v30, %v2564_v22  ;;  %v2628_v21 = vpop.xlane.xlu1 %2627 }
 0x6d6   :  { %v2585_v29 = vadd.f32 %v2584_v32, %v2566_v27 }
 0x6d7   :  { %v2618_v31 = vpop.xlane.xlu0 %2617 }
 0x6d8   :  { %v2638_v60 = vadd.f32 %v2637_v12, %v2618_v31  ;;  %v2626_v6 = vpop.xlane.xlu1 %2625 }
 0x6da   :  { %v2639_v54 = vadd.f32 %v2638_v60, %v2620_v8 }
 0x6db   :  { %v2570_v19 = vpop.xlane.xlu0 %2569 }
 0x6dc   :  { %v2640_v44 = vadd.f32 %v2639_v54, %v2622_v41  ;;  %v2632_v53 = vpop.xlane.xlu1 %2631 }
 0x6de   :  { %v2641_v25 = vadd.f32 %v2640_v44, %v2624_v9 }
 0x6df   :  { %v2568_v17 = vpop.xlane.xlu0 %2567 }
 0x6e0   :  { %v2642_v34 = vadd.f32 %v2641_v25, %v2626_v6  ;;  %v2586_v13 = vadd.f32 %v2585_v29, %v2568_v17  ;;  %v2630_v18 = vpop.xlane.xlu1 %2629  ;;  %v2612_v29 = vmul.f32 %v5556_v52, %v5556_v52 }
 0x6e2   :  { %v2643_v20 = vadd.f32 %v2642_v34, %v2628_v21  ;;  %v2587_v50 = vadd.f32 %v2586_v13, %v2570_v19 }
 0x6e3   :  { %v2574_v4 = vpop.xlane.xlu0 %2573 }
 0x6e4   :  { %v2644_v36 = vadd.f32 %v2643_v20, %v2630_v18 }
 0x6e6   :  { %v2645_v10 = vadd.f32 %v2644_v36, %v2632_v53 }
 0x6e7   :  { %v2572_v35 = vpop.xlane.xlu0 %2571 }
 0x6e8   :  { %v2588_v45 = vadd.f32 %v2587_v50, %v2572_v35  ;;  %v5652_v24 = vadd.f32 %v2645_v10, %v2634_v28 }
 0x6ea   :  { %v5654_v61 = vpop.f32.mrb[78].mxu1  ;;  %v2589_v56 = vadd.f32 %v2588_v45, %v2574_v4 }
 0x6eb   :  { %v5656_v16 = vpop.f32.mrb[79].mxu1  ;;  %v2578_v33 = vpop.xlane.xlu0 %2577  ;;  %2724 = vadd.xlane.f32.xlu0 %v5654_v61  ;;  %v2765_v48 = vmul.f32 %v5654_v61, %v5654_v61 }
 0x6ec   :  { %v2764_v28 = vmul.f32 %v5656_v16, %v5656_v16 }
 0x6ee   :  { %v5659_v51 = vpop.f32.mrb[80].mxu1 }
 0x6ef   :  { %v2767_v2 = vmul.f32 %v5659_v51, %v5659_v51  ;;  %v5663_v59 = vpop.f32.mrb[81].mxu1  ;;  %2722 = vadd.xlane.f32.xlu0 %v5656_v16  ;;  %v2576_v40 = vpop.xlane.xlu0 %2575 }
 0x6f0   :  { %v2590_v55 = vadd.f32 %v2589_v56, %v2576_v40  ;;  %v2766_v41 = vmul.f32 %v5663_v59, %v5663_v59 }
 0x6f1   :  { %2782 = vadd.xlane.f32.xlu1 %v2767_v2 }
 0x6f2   :  { %v2591_v23 = vadd.f32 %v2590_v55, %v2578_v33  ;;  %v5668_v49 = vpop.f32.mrb[82].mxu1 }
 0x6f3   :  { %v2769_v3 = vmul.f32 %v5668_v49, %v5668_v49  ;;  %v5672_v7 = vpop.f32.mrb[83].mxu1  ;;  %2778 = vadd.xlane.f32.xlu0 %v2765_v48 }
 0x6f4   :  { %v5674_v38 = vadd.f32 %v2591_v23, %v2580_v5  ;;  %v2768_v62 = vmul.f32 %v5672_v7, %v5672_v7 }
 0x6f5   :  { %2786 = vadd.xlane.f32.xlu1 %v2769_v3 }
 0x6f6   :  { %v5678_v43 = vpop.f32.mrb[84].mxu1 }
 0x6f7   :  { %v5682_v0 = vpop.f32.mrb[85].mxu1  ;;  %2776 = vadd.xlane.f32.xlu0 %v2764_v28  ;;  %v2771_v39 = vmul.f32 %v5678_v43, %v5678_v43 }
 0x6f8   :  { %v2770_v9 = vmul.f32 %v5682_v0, %v5682_v0 }
 0x6f9   :  { %2784 = vadd.xlane.f32.xlu1 %v2768_v62 }
 0x6fa   :  { %v5684_v8 = vpop.f32.mrb[86].mxu1 }
 0x6fb   :  { %v5688_v5 = vpop.f32.mrb[87].mxu1  ;;  %2728 = vadd.xlane.f32.xlu0 %v5659_v51  ;;  %v2773_v30 = vmul.f32 %v5684_v8, %v5684_v8 }
 0x6fc   :  { %v2772_v22 = vmul.f32 %v5688_v5, %v5688_v5 }
 0x6fd   :  { %2790 = vadd.xlane.f32.xlu1 %v2771_v39 }
 0x6fe   :  { %v5691_v12 = vpop.f32.mrb[88].mxu1 }
 0x6ff   :  { %v5695_v27 = vpop.f32.mrb[89].mxu1  ;;  %2726 = vadd.xlane.f32.xlu0 %v5663_v59  ;;  %v2775_v21 = vmul.f32 %v5691_v12, %v5691_v12 }
 0x700   :  { %v2774_v32 = vmul.f32 %v5695_v27, %v5695_v27 }
 0x701   :  { %2788 = vadd.xlane.f32.xlu1 %v2770_v9 }
 0x703   :  { %2780 = vadd.xlane.f32.xlu0 %v2766_v41 }
 0x705   :  { %2794 = vadd.xlane.f32.xlu1 %v2773_v30  ;;  %v2593_v30 = vadd.f32 %v5674_v38, %v5650_v46 }
 0x707   :  { %2732 = vadd.xlane.f32.xlu0 %v5668_v49 }
 0x709   :  { %2792 = vadd.xlane.f32.xlu1 %v2772_v22 }
 0x70b   :  { %2730 = vadd.xlane.f32.xlu0 %v5672_v7 }
 0x70d   :  { %2796 = vadd.xlane.f32.xlu1 %v2774_v32 }
 0x70f   :  { %2736 = vadd.xlane.f32.xlu0 %v5678_v43 }
 0x711   :  { %2798 = vadd.xlane.f32.xlu1 %v2775_v21 }
 0x713   :  { %2734 = vadd.xlane.f32.xlu0 %v5682_v0 }
 0x717   :  { %2740 = vadd.xlane.f32.xlu0 %v5684_v8 }
 0x71b   :  { %2738 = vadd.xlane.f32.xlu0 %v5688_v5 }
 0x71f   :  { %2744 = vadd.xlane.f32.xlu0 %v5691_v12 }
 0x723   :  { %2742 = vadd.xlane.f32.xlu0 %v5695_v27 }
 0x727   :  { %2635 = vadd.xlane.f32.xlu0 %v2612_v29 }
 0x778   :  { %v2725_v31 = vpop.xlane.xlu0 %2724 }
 0x77c   :  { %v2723_v60 = vpop.xlane.xlu0 %2722 }
 0x77d   :  { %v2746_v45 = vadd.f32 %v2725_v31, %v2723_v60  ;;  %v2594_v60 = vrot.slane %v2593_v30, 4 }
 0x77e   :  { %v2783_v6 = vpop.xlane.xlu1 %2782 }
 0x780   :  { %v2779_v54 = vpop.xlane.xlu0 %2778 }
 0x782   :  { %v2787_v19 = vpop.xlane.xlu1 %2786 }
 0x784   :  { %v2777_v44 = vpop.xlane.xlu0 %2776 }
 0x785   :  { %v2800_v20 = vadd.f32 %v2779_v54, %v2777_v44  ;;  %v2595_v44 = vadd.f32 %v2594_v60, %v2593_v30  ;;  %v5938_v30 = vld [vmem:[#allocation18_spill] sm:$0xff] }
 0x786   :  { %v2785_v53 = vpop.xlane.xlu1 %2784 }
 0x788   :  { %v2729_v25 = vpop.xlane.xlu0 %2728 }
 0x78a   :  { %v2791_v17 = vpop.xlane.xlu1 %2790 }
 0x78c   :  { %v2727_v34 = vpop.xlane.xlu0 %2726 }
 0x78d   :  { %v2747_v2 = vadd.f32 %v2746_v45, %v2727_v34  ;;  %v2596_v34 = vrot.slane %v2595_v44, 2 }
 0x78e   :  { %v2789_v13 = vpop.xlane.xlu1 %2788 }
 0x78f   :  { %v2748_v28 = vadd.f32 %v2747_v2, %v2729_v25 }
 0x790   :  { %v2781_v50 = vpop.xlane.xlu0 %2780 }
 0x791   :  { %v2801_v18 = vadd.f32 %v2800_v20, %v2781_v50 }
 0x792   :  { %v2795_v36 = vpop.xlane.xlu1 %2794 }
 0x793   :  { %v2802_v4 = vadd.f32 %v2801_v18, %v2783_v6 }
 0x794   :  { %v2733_v10 = vpop.xlane.xlu0 %2732 }
 0x795   :  { %v2803_v35 = vadd.f32 %v2802_v4, %v2785_v53  ;;  %v2597_v4 = vadd.f32 %v2596_v34, %v2595_v44 }
 0x796   :  { %v2793_v55 = vpop.xlane.xlu1 %2792 }
 0x797   :  { %v2804_v56 = vadd.f32 %v2803_v35, %v2787_v19  ;;  %v2598_v45 = vrot.slane %v2597_v4, 1 }
 0x798   :  { %v2731_v33 = vpop.xlane.xlu0 %2730 }
 0x799   :  { %v2805_v40 = vadd.f32 %v2804_v56, %v2789_v13  ;;  %v2749_v62 = vadd.f32 %v2748_v28, %v2731_v33 }
 0x79a   :  { %v2797_v9 = vpop.xlane.xlu1 %2796 }
 0x79b   :  { %v2806_v48 = vadd.f32 %v2805_v40, %v2791_v17  ;;  %v2750_v32 = vadd.f32 %v2749_v62, %v2733_v10 }
 0x79c   :  { %v2737_v23 = vpop.xlane.xlu0 %2736 }
 0x79d   :  { %v2807_v3 = vadd.f32 %v2806_v48, %v2793_v55  ;;  %v2599_v48 = vadd.f32 %v2598_v45, %v2597_v4 }
 0x79e   :  { %v2799_v31 = vpop.xlane.xlu1 %2798 }
 0x79f   :  { %v2808_v39 = vadd.f32 %v2807_v3, %v2795_v36 }
 0x7a0   :  { %v2735_v41 = vpop.xlane.xlu0 %2734 }
 0x7a1   :  { %v2809_v22 = vadd.f32 %v2808_v39, %v2797_v9  ;;  %v2751_v29 = vadd.f32 %v2750_v32, %v2735_v41 }
 0x7a3   :  { %v2810_v6 = vadd.f32 %v2809_v22, %v2799_v31  ;;  %v2752_v19 = vadd.f32 %v2751_v29, %v2737_v23  ;;  %v2600_v22 = vmul.f32 %v5938_v30, %v2599_v48 }
 0x7a4   :  { %v2741_v21 = vpop.xlane.xlu0 %2740 }
 0x7a5   :  { %v2811_v53 = vrot.slane %v2810_v6, 4 }
 0x7a7   :  { %v2812_v13 = vadd.f32 %v2811_v53, %v2810_v6  ;;  %v2655_v6 = vmul.f32 %v2600_v22, %v2600_v22 }
 0x7a8   :  { %v2739_v54 = vpop.xlane.xlu0 %2738 }
 0x7a9   :  { %v2753_v17 = vadd.f32 %v2752_v19, %v2739_v54  ;;  %v2813_v46 = vrot.slane %v2812_v13, 2 }
 0x7ab   :  { %v2754_v20 = vadd.f32 %v2753_v17, %v2741_v21  ;;  %v2814_v56 = vadd.f32 %v2813_v46, %v2812_v13  ;;  %v5939_v21 = vld [vmem:[#allocation21_spill] sm:$0xff]  ;;  %v5940_v46 = vld [vmem:[#allocation20_spill] sm:$0xff] }
 0x7ac   :  { %v2745_v25 = vpop.xlane.xlu0 %2744 }
 0x7ad   :  { %v2815_v23 = vrot.slane %v2814_v56, 1 }
 0x7af   :  { %v2816_v9 = vadd.f32 %v2815_v23, %v2814_v56 }
 0x7b0   :  { %v2743_v50 = vpop.xlane.xlu0 %2742 }
 0x7b1   :  { %v2755_v18 = vadd.f32 %v2754_v20, %v2743_v50  ;;  %v2817_v31 = vmul.f32 %v5939_v21, %v2816_v9  ;;  %v5731_v50 = vld [vmem:[%s5802_s7] sm:$0x1]  ;;  %v2866_v9 = vld [vmem:[#allocation4 + $0x88] sm:$0xff] }
 0x7b3   :  { %v2756_v38 = vadd.f32 %v2755_v18, %v2745_v25  ;;  %v2557_v25 = vld [vmem:[%s5801_s6] sm:$0x1]  ;;  %s4217_s6 = smov [#allocation12]  }
 0x7b4   :  { %v2636_v36 = vpop.xlane.xlu0 %2635  ;;  %s2903_s7 = sshll.u32 %s4217_s6, 4  ;;  %s2904_s7 = int_to_ptr.vmem [resolvable:$true] %s2903_s7 }
 0x7b5   :  { %v2757_v10 = vrot.slane %v2756_v38, 4  ;;  %v2647_v35 = vadd.f32 %v5652_v24, %v2636_v36  ;;  %s4175_s19 = scalar_lea.vmem %s2904_s7, 3072  ;;  %p4180_p10 = scmp.lt.s32.totalorder %s2904_s7, %s2904_s7 }
 0x7b6   :  { %p4176_p9 = scmp.ne.s32.totalorder %s2904_s7, %s4175_s19  ;;  %p4181_p11 = scmp.lt.s32.totalorder %s4175_s19, %s4175_s19 }
 0x7b7   :  { %v2758_v33 = vadd.f32 %v2757_v10, %v2756_v38  ;;  %v2648_v2 = vrot.slane %v2647_v35, 4 }
 0x7b8   :  { %p4182_p12 = por %p4181_p11, %p4180_p10 }
 0x7b9   :  { %v2759_v40 = vrot.slane %v2758_v33, 2  ;;  %v2649_v55 = vadd.f32 %v2648_v2, %v2647_v35 }
 0x7ba   :  { %p4183_p13 = pnand %p4182_p12, %p4176_p9 }
 0x7bb   :  { %v2760_v3 = vadd.f32 %v2759_v40, %v2758_v33  ;;  %v2650_v28 = vrot.slane %v2649_v55, 2 }
 0x7bd   :  { %v2761_v62 = vrot.slane %v2760_v3, 1  ;;  %v2651_v39 = vadd.f32 %v2650_v28, %v2649_v55 }
 0x7bf   :  { %v2762_v41 = vadd.f32 %v2761_v62, %v2760_v3  ;;  %v2652_v32 = vrot.slane %v2651_v39, 1  ;;  %v2863_v62 = vld [vmem:[#allocation4 + $0x70] sm:$0xff] }
 0x7c1   :  { %v2763_v29 = vmul.f32 %v5939_v21, %v2762_v41  ;;  %v2653_v24 = vadd.f32 %v2652_v32, %v2651_v39  ;;  %v2865_v39 = vld [vmem:[#allocation4 + $0x80] sm:$0xff]  ;;  %v2867_v32 = vld [vmem:[#allocation4 + $0x90] sm:$0xff]  ;;  %v2868_v21 = vld [vmem:[#allocation4 + $0x98] sm:$0xff] }
 0x7c3   :  { %v2818_v60 = vmul.f32 %v2763_v29, %v2763_v29  ;;  %v2654_v54 = vmul.f32 %v5938_v30, %v2653_v24 }
 0x7c5   :  { %v2819_v19 = vsub.f32 %v2817_v31, %v2818_v60  ;;  %v2656_v44 = vsub.f32 %v2654_v54, %v2655_v6  ;;  %v2870_v60 = vld [vmem:[#allocation4 + $0xa8] sm:$0xff]  ;;  %v2871_v6 = vld [vmem:[#allocation4 + $0xb0] sm:$0xff] }
 0x7c7   :  { %v2820_v53 = vadd.f32 1e-05, %v2819_v19  ;;  %v2657_v17 = vadd.f32 1e-05, %v2656_v44 }
 0x7c9   :  { %4045 = vrsqrt.f32 %v2820_v53 }
 0x7ca   :  { %4047 = vrsqrt.f32 %v2657_v17 }
 0x7d3   :  { %v4046_v34 = vpop.eup %4045 }
 0x7d4   :  { %v4048_v13 = vpop.eup %4047  ;;  %v2822_v20 = vmul.f32 %v4046_v34, %v2557_v25 }
 0x7d5   :  { %v2659_v18 = vmul.f32 %v4048_v13, %v2557_v25 }
 0x7d6   :  { %v2823_v4 = vmul.f32 %v2822_v20, %v2763_v29  ;;  %v2829_v38 = vrot.slane %v2822_v20, %v5940_v46  ;;  %v2869_v29 = vld [vmem:[#allocation4 + $0xa0] sm:$0xff] }
 0x7d7   :  { %v5734_v36 = vmul.f32 %v2659_v18, %v2600_v22  ;;  %v5737_v10 = vrot.slane %v2659_v18, %v5940_v46 }
 0x7d8   :  { %v2824_v35 = vsub.f32 %v5731_v50, %v2823_v4  ;;  %v2831_v45 = vmul.f32 %v2829_v38, %v5656_v16  ;;  %v2832_v56 = vmul.f32 %v5654_v61, %v2829_v38  ;;  %v2833_v33 = vmul.f32 %v2829_v38, %v5663_v59 }
 0x7d9   :  { %v2834_v2 = vmul.f32 %v5659_v51, %v2829_v38  ;;  %v2835_v40 = vmul.f32 %v2829_v38, %v5672_v7  ;;  %v2836_v55 = vmul.f32 %v5668_v49, %v2829_v38  ;;  %v2837_v48 = vmul.f32 %v2829_v38, %v5682_v0  ;;  %v2861_v7 = vld [vmem:[#allocation4 + $0x60] sm:$0xff]  ;;  %v2862_v0 = vld [vmem:[#allocation4 + $0x68] sm:$0xff] }
 0x7da   :  { %v2838_v23 = vmul.f32 %v5678_v43, %v2829_v38  ;;  %v2839_v3 = vmul.f32 %v2829_v38, %v5688_v5  ;;  %v2840_v28 = vmul.f32 %v5684_v8, %v2829_v38  ;;  %v2841_v16 = vmul.f32 %v2829_v38, %v5695_v27  ;;  %v2864_v27 = vld [vmem:[#allocation4 + $0x78] sm:$0xff] }
 0x7db   :  { %v2842_v61 = vmul.f32 %v5691_v12, %v2829_v38  ;;  %v2847_v59 = vrot.slane %v2824_v35, %v5940_v46  ;;  %v2661_v51 = vsub.f32 %v5731_v50, %v5734_v36  ;;  %v2668_v49 = vmul.f32 %v5737_v10, %v5603_v11 }
 0x7dc   :  { %v2669_v43 = vmul.f32 %v5600_v42, %v5737_v10  ;;  %v2670_v8 = vmul.f32 %v5737_v10, %v5612_v63  ;;  %v2671_v5 = vmul.f32 %v5608_v57, %v5737_v10  ;;  %v2672_v12 = vmul.f32 %v5737_v10, %v5620_v37  ;;  %v2872_v57 = vld [vmem:[#allocation4 + $0xb8] sm:$0xff] }
 0x7dd   :  { %v2849_v41 = vadd.f32 %v2847_v59, %v2831_v45  ;;  %v2850_v11 = vadd.f32 %v2847_v59, %v2832_v56  ;;  %v2851_v30 = vadd.f32 %v2847_v59, %v2833_v33  ;;  %v2852_v22 = vadd.f32 %v2847_v59, %v2834_v2 }
 0x7de   :  { %v2853_v42 = vadd.f32 %v2847_v59, %v2835_v40  ;;  %v2854_v24 = vadd.f32 %v2847_v59, %v2836_v55  ;;  %v2855_v31 = vadd.f32 %v2847_v59, %v2837_v48  ;;  %v2856_v63 = vadd.f32 %v2847_v59, %v2838_v23 }
 0x7df   :  { %v2857_v54 = vadd.f32 %v2847_v59, %v2839_v3  ;;  %v2858_v19 = vadd.f32 %v2847_v59, %v2840_v28  ;;  %v2859_v37 = vadd.f32 %v2847_v59, %v2841_v16  ;;  %v2860_v44 = vadd.f32 %v2847_v59, %v2842_v61 }
 0x7e0   :  { %v2873_v53 = vadd.f32 %v2861_v7, %v2849_v41  ;;  %v2874_v17 = vadd.f32 %v2862_v0, %v2850_v11  ;;  %v2875_v25 = vadd.f32 %v2863_v62, %v2851_v30  ;;  %v2876_v34 = vadd.f32 %v2864_v27, %v2852_v22  ;;  %v4066_v27 = vld [vmem:[#allocation4 + $0x8] sm:$0xff]  ;;  %v4072_v41 = vld [vmem:[#allocation4 + $0x38] sm:$0xff]  ;;  %v4073_v30 = vld [vmem:[#allocation4 + $0x40] sm:$0xff] }
 0x7e1   :  { %v2877_v13 = vadd.f32 %v2865_v39, %v2853_v42  ;;  %v2878_v20 = vadd.f32 %v2866_v9, %v2854_v24  ;;  %v2879_v50 = vadd.f32 %v2867_v32, %v2855_v31  ;;  %v2880_v18 = vadd.f32 %v2868_v21, %v2856_v63  ;;  %v4071_v39 = vld [vmem:[#allocation4 + $0x30] sm:$0xff]  ;;  %v4074_v32 = vld [vmem:[#allocation4 + $0x48] sm:$0xff]  ;;  %v4076_v24 = vld [vmem:[#allocation4 + $0x58] sm:$0xff] }
 0x7e2   :  { %v2881_v4 = vadd.f32 %v2869_v29, %v2857_v54  ;;  %v2882_v38 = vadd.f32 %v2870_v60, %v2858_v19  ;;  %v2883_v36 = vadd.f32 %v2871_v6, %v2859_v37  ;;  %v2884_v35 = vadd.f32 %v2872_v57, %v2860_v44  ;;  %2886 = vst [vmem:[#allocation12 + $0x60] sm:$0xff] %v2873_v53  ;;  %v4075_v29 = vld [vmem:[#allocation4 + $0x50] sm:$0xff] }
 0x7e3   :  { %2887 = vst [vmem:[#allocation12 + $0x68] sm:$0xff] %v2874_v17  ;;  %2888 = vst [vmem:[#allocation12 + $0x70] sm:$0xff] %v2875_v25  ;;  %v2673_v45 = vmul.f32 %v5616_v15, %v5737_v10  ;;  %v2674_v56 = vmul.f32 %v5737_v10, %v5626_v47  ;;  %v2675_v33 = vmul.f32 %v5622_v26, %v5737_v10 }
 0x7e4   :  { %2889 = vst [vmem:[#allocation12 + $0x78] sm:$0xff] %v2876_v34  ;;  %2890 = vst [vmem:[#allocation12 + $0x80] sm:$0xff] %v2877_v13  ;;  %v2676_v2 = vmul.f32 %v5737_v10, %v5633_v58  ;;  %v2677_v40 = vmul.f32 %v5629_v14, %v5737_v10  ;;  %v2678_v55 = vmul.f32 %v5737_v10, %v5559_v1  ;;  %v4065_v1 = vld [vmem:[#allocation4] sm:$0xff] }
 0x7e5   :  { %2891 = vst [vmem:[#allocation12 + $0x88] sm:$0xff] %v2878_v20  ;;  %2892 = vst [vmem:[#allocation12 + $0x90] sm:$0xff] %v2879_v50  ;;  %v2679_v15 = vmul.f32 %v5556_v52, %v5737_v10  ;;  %v2684_v47 = vrot.slane %v2661_v51, %v5940_v46  ;;  %v4067_v10 = vld [vmem:[#allocation4 + $0x10] sm:$0xff]  ;;  %v4068_v51 = vld [vmem:[#allocation4 + $0x18] sm:$0xff] }
 0x7e6   :  { %2893 = vst [vmem:[#allocation12 + $0x98] sm:$0xff] %v2880_v18  ;;  %2894 = vst [vmem:[#allocation12 + $0xa0] sm:$0xff] %v2881_v4 }
 0x7e7   :  { %2895 = vst [vmem:[#allocation12 + $0xa8] sm:$0xff] %v2882_v38  ;;  %2896 = vst [vmem:[#allocation12 + $0xb0] sm:$0xff] %v2883_v36  ;;  %v2686_v48 = vadd.f32 %v2684_v47, %v2668_v49  ;;  %v2687_v26 = vadd.f32 %v2684_v47, %v2669_v43  ;;  %v2688_v23 = vadd.f32 %v2684_v47, %v2670_v8  ;;  %v4069_v43 = vld [vmem:[#allocation4 + $0x20] sm:$0xff] }
 0x7e8   :  { %2897 = vst [vmem:[#allocation12 + $0xb8] sm:$0xff] %v2884_v35  ;;  %v2689_v3 = vadd.f32 %v2684_v47, %v2671_v5  ;;  %v2690_v58 = vadd.f32 %v2684_v47, %v2672_v12  ;;  %v2691_v28 = vadd.f32 %v2684_v47, %v2673_v45  ;;  %v2692_v16 = vadd.f32 %v2684_v47, %v2674_v56  ;;  %v4070_v5 = vld [vmem:[#allocation4 + $0x28] sm:$0xff] }
 0x7e9   :  { %v2693_v61 = vadd.f32 %v2684_v47, %v2675_v33  ;;  %v2694_v59 = vadd.f32 %v2684_v47, %v2676_v2  ;;  %v2695_v7 = vadd.f32 %v2684_v47, %v2677_v40  ;;  %v2696_v0 = vadd.f32 %v2684_v47, %v2678_v55 }
 0x7ea   :  { %v2697_v14 = vadd.f32 %v2684_v47, %v2679_v15  ;;  %v2698_v62 = vadd.f32 %v4065_v1, %v2686_v48  ;;  %v2699_v52 = vadd.f32 %v4066_v27, %v2687_v26  ;;  %v2700_v46 = vadd.f32 %v4067_v10, %v2688_v23 }
 0x7eb   :  { %v2701_v49 = vadd.f32 %v4068_v51, %v2689_v3  ;;  %v2702_v8 = vadd.f32 %v4069_v43, %v2690_v58  ;;  %v2703_v12 = vadd.f32 %v4070_v5, %v2691_v28  ;;  %v2704_v9 = vadd.f32 %v4071_v39, %v2692_v16 }
 0x7ec   :  { %v2705_v11 = vadd.f32 %v4072_v41, %v2693_v61  ;;  %v2706_v22 = vadd.f32 %v4073_v30, %v2694_v59  ;;  %v2707_v21 = vadd.f32 %v4074_v32, %v2695_v7  ;;  %v2708_v42 = vadd.f32 %v4075_v29, %v2696_v0  ;;  %2710 = vst [vmem:[#allocation12] sm:$0xff] %v2698_v62 }
 0x7ed   :  { %v2709_v31 = vadd.f32 %v4076_v24, %v2697_v14  ;;  %2711 = vst [vmem:[#allocation12 + $0x8] sm:$0xff] %v2699_v52  ;;  %2712 = vst [vmem:[#allocation12 + $0x10] sm:$0xff] %v2700_v46 }
 0x7ee   :  { %2713 = vst [vmem:[#allocation12 + $0x18] sm:$0xff] %v2701_v49  ;;  %2714 = vst [vmem:[#allocation12 + $0x20] sm:$0xff] %v2702_v8 }
 0x7ef   :  { %2715 = vst [vmem:[#allocation12 + $0x28] sm:$0xff] %v2703_v12  ;;  %2716 = vst [vmem:[#allocation12 + $0x30] sm:$0xff] %v2704_v9 }
 0x7f0   :  { %2717 = vst [vmem:[#allocation12 + $0x38] sm:$0xff] %v2705_v11  ;;  %2718 = vst [vmem:[#allocation12 + $0x40] sm:$0xff] %v2706_v22 }
 0x7f1   :  { %2719 = vst [vmem:[#allocation12 + $0x48] sm:$0xff] %v2707_v21  ;;  %2720 = vst [vmem:[#allocation12 + $0x50] sm:$0xff] %v2708_v42 }
 0x7f2   :  { %2721 = vst [vmem:[#allocation12 + $0x58] sm:$0xff] %v2709_v31 }
 0x7f3   :  { %4186 = shalt.err (!%p4183_p13)
}
 0x7f4   :  { %s4187_s23 = scalar_lea.hbm %s5804_s9, 3072 }
 0x7f5   :  { %p4188_p0 = scmp.ne.s32.totalorder %s5804_s9, %s4187_s23  ;;  %p4191_p1 = scmp.lt.u32.totalorder %s4187_s23, %s5804_s9 }
 0x7f7   :  { %p4193_p2 = pnand %p4191_p1, %p4188_p0 }
 0x7f9   :  { %4196 = shalt.err (!%p4193_p2)
}
 0x7fa   :  { %2909 = dma.vmem_to_hbm [thread:$0]  %s2904_s7, 3072, %s5804_s9, [#allocation6], %s4212_s2, %s4212_s2, %s4213_s20  }
 0x7fb   :  { %4205 = dma.done.wait [#allocation6], 3072  }
 0x7fc   :  { %4206 = vsyncadd [#allocation6], 4294964224 }
 0x7fd   :  { %2913 = vsyncpa [#allocation5], 1 }
 0x7fe   :  { %2914 = vsyncpa [#allocation8], 1 }
 0x7ff   :  { %2915 = vsyncpa [#allocation11], 1 }
 0x800   :  { %2916 = vsyncpa [#allocation6], 1 }

</bundles_post_ra>
